<compile_context>
chip_gen: v7x
topology: tpu7x:2x2x1
jax: 0.10.0
libtpu: 0.0.40
codegen_flags: <defaults>
</compile_context>

<pallas_src>
import numpy as np
import jax
import jax.numpy as jnp
from jax import lax
from jax.experimental import pallas as pl
from jax.experimental.pallas import tpu as pltpu

# ----- static problem sizes (small, consistent with the module) -----
CIN = 4                    # n_layers  (Conv3d in_channels)
COUT = 20                  # Conv3d out_channels
D, H, W = 5, 4, 160        # input spatial dims (W=160 forced by fc1 in_features=80)
# TODO(synk): PyTorch would raise for AvgPool3d stride=(2,2); interpreted as (2,2,2).
DO = (D - 3) // 2 + 1      # 2
HO = (H - 2) // 2 + 1      # 2
WO = (W - 2) // 2 + 1      # 80  == fc1 in_features
DHW = D * H * W            # 3200
DOHO = DO * HO             # 4
K_IM2COL = 27 * CIN + 1    # 109  (27 taps x Cin, +1 ones row carrying conv bias)
F1, F2, F3 = 40, 20, 1     # fc widths
# n_filters / dropout are accepted by __init__ but unused in forward -> no-op here.


def make_kernel(nb):
    def cnn3d_kernel(xc_ref, wc_ref, sr_ref, b1_ref, w2_ref, b2_ref, w3_ref,
                     b3_ref, o_ref):
        for b in range(nb):
            cols = xc_ref[b]                                   # (109, 3200) bf16
            # Conv3d + bias as one im2col matmul (bias folded via ones row)
            y = jnp.dot(wc_ref[...], cols,
                        preferred_element_type=jnp.float32)    # (20, 3200) f32
            y = jnp.maximum(y, 0.0)                            # ReLU
            # fused AvgPool3d((3,2,2),s=2) + fc1  (SR embeds selection, /12, w1)
            h1 = jnp.dot(y.astype(jnp.bfloat16), sr_ref[...],
                         preferred_element_type=jnp.float32)   # (20, 160)
            h1 = jnp.maximum(h1 + b1_ref[...], 0.0)
            # fc2 (block-diagonal over the (d',h') windows) + ReLU
            h2 = jnp.maximum(
                jnp.dot(h1, w2_ref[...], preferred_element_type=jnp.float32)
                + b2_ref[...], 0.0)                            # (20, 80)
            # fc3 (block-diagonal)
            o_ref[b] = (jnp.dot(h2, w3_ref[...],
                                preferred_element_type=jnp.float32)
                        + b3_ref[...])                         # (20, 4)
    return cnn3d_kernel


def _pick_nb(n):
    # largest divisor of N that is <= 4 AND leaves >= 2 grid steps (v7x megacore)
    for nb in (4, 3, 2):
        if nb <= n and n % nb == 0 and (n // nb) >= 2:
            return nb
    return 1


def cnn3d_forward(x, params):
    """x: (N, Cin, D, H, W) float32 (PyTorch NCDHW). Returns (N, Cout, D', H', 1)."""
    N = x.shape[0]
    wconv, bconv, w1, b1, w2, b2, w3, b3 = params
    nb = _pick_nb(N)

    # ---- glue: host-side im2col (27 shifted views + ones row), bf16 ----
    xp = jnp.pad(x, ((0, 0), (0, 0), (1, 1), (1, 1), (1, 1)))
    patches = []
    for kd in range(3):
        for kh in range(3):
            for kw in range(3):
                patches.append(
                    xp[:, :, kd:kd + D, kh:kh + H, kw:kw + W].reshape(N, CIN, DHW))
    patches.append(jnp.ones((N, 1, DHW), x.dtype))             # bias row
    cols = jnp.concatenate(patches, axis=1).astype(jnp.bfloat16)   # (N, 109, 3200)

    # conv weight (Cout, Cin, 3,3,3) -> (Cout, kd,kh,kw,Cin) -> (20,108), + bias col
    wc = jnp.transpose(wconv, (0, 2, 3, 4, 1)).reshape(COUT, 27 * CIN)
    wcb = jnp.concatenate([wc, bconv[:, None]], axis=1).astype(jnp.bfloat16)  # (20,109)

    # ---- glue: fuse AvgPool3d + fc1 into SR (3200, DOHO*40) ----
    A = np.zeros((D * H, DOHO), np.float32)     # (d,h) pool selection (0/1)
    for do in range(DO):
        for ho in range(HO):
            for dd in range(3):
                for hh in range(2):
                    A[(2 * do + dd) * H + (2 * ho + hh), do * HO + ho] = 1.0
    A = jnp.asarray(A)                                          # (20, 4)
    B = jnp.repeat(w1.T, 2, axis=0) * (1.0 / 12.0)              # (160, 40): w1[f,w//2]/12
    SR = (A[:, None, :, None] * B[None, :, None, :]).reshape(DHW, DOHO * F1)
    SR = SR.astype(jnp.bfloat16)                                # (3200, 160)
    b1bd = jnp.tile(b1, DOHO).reshape(1, DOHO * F1)             # (1, 160)

    # fc2 / fc3 as block-diagonal matmuls over the 4 (d',h') windows (f32, tiny)
    eye4 = jnp.eye(DOHO, dtype=jnp.float32)
    w2bd = jnp.kron(eye4, w2.T)                                 # (160, 80)
    b2bd = jnp.tile(b2, DOHO).reshape(1, DOHO * F2)             # (1, 80)
    w3bd = jnp.kron(eye4, w3.T)                                 # (80, 4)
    b3bd = jnp.tile(b3, DOHO).reshape(1, DOHO * F3)             # (1, 4)

    const = lambda shp: pl.BlockSpec(shp, lambda i, _n=len(shp): (0,) * _n)

    out = pl.pallas_call(
        make_kernel(nb),
        out_shape=jax.ShapeDtypeStruct((N, COUT, DOHO), jnp.float32),
        grid=(N // nb,),
        in_specs=[
            pl.BlockSpec((nb, K_IM2COL, DHW), lambda i: (i, 0, 0)),  # im2col patches
            const((COUT, K_IM2COL)),        # conv weight (+bias col)
            const((DHW, DOHO * F1)),        # fused pool+fc1 matrix
            const((1, DOHO * F1)),          # fc1 bias (tiled)
            const((DOHO * F1, DOHO * F2)),  # fc2 block-diag
            const((1, DOHO * F2)),          # fc2 bias (tiled)
            const((DOHO * F2, DOHO * F3)),  # fc3 block-diag
            const((1, DOHO * F3)),          # fc3 bias (tiled)
        ],
        out_specs=pl.BlockSpec((nb, COUT, DOHO), lambda i: (i, 0, 0)),
        compiler_params=pltpu.CompilerParams(dimension_semantics=("parallel",)),
    )(cols, wcb, SR, b1bd, w2bd, b2bd, w3bd, b3bd)

    # (N, Cout, D'*H') -> (N, Cout, D', H', 1)  (PyTorch NCDHW-style output)
    return out.reshape(N, COUT, DO, HO, 1)


def cnn3d_reference(x, params):
    """Pure-JAX f32 reference with identical semantics, for correctness check."""
    wconv, bconv, w1, b1, w2, b2, w3, b3 = params
    y = lax.conv_general_dilated(
        x, wconv, window_strides=(1, 1, 1),
        padding=((1, 1), (1, 1), (1, 1)),
        dimension_numbers=('NCDHW', 'OIDHW', 'NCDHW'))
    y = jnp.maximum(y + bconv.reshape(1, COUT, 1, 1, 1), 0.0)
    y = lax.reduce_window(y, 0.0, lax.add,
                          window_dimensions=(1, 1, 3, 2, 2),
                          window_strides=(1, 1, 2, 2, 2),
                          padding='VALID') / 12.0
    y = jnp.maximum(jnp.einsum('ncdhw,fw->ncdhf', y, w1) + b1, 0.0)
    y = jnp.maximum(jnp.einsum('ncdhw,fw->ncdhf', y, w2) + b2, 0.0)
    y = jnp.einsum('ncdhw,fw->ncdhf', y, w3) + b3
    return y


if __name__ == "__main__":
    key = jax.random.PRNGKey(0)
    ks = jax.random.split(key, 9)
    N = 2
    x = jax.random.normal(ks[0], (N, CIN, D, H, W), jnp.float32)

    # deterministic synthetic parameters (shapes from the module's __init__)
    wconv = jax.random.normal(ks[1], (COUT, CIN, 3, 3, 3), jnp.float32) * 0.1
    bconv = jax.random.normal(ks[2], (COUT,), jnp.float32) * 0.1
    w1 = jax.random.normal(ks[3], (F1, WO), jnp.float32) * 0.1
    b1 = jax.random.normal(ks[4], (F1,), jnp.float32) * 0.1
    w2 = jax.random.normal(ks[5], (F2, F1), jnp.float32) * 0.1
    b2 = jax.random.normal(ks[6], (F2,), jnp.float32) * 0.1
    w3 = jax.random.normal(ks[7], (F3, F2), jnp.float32) * 0.1
    b3 = jax.random.normal(ks[8], (F3,), jnp.float32) * 0.1
    params = (wconv, bconv, w1, b1, w2, b2, w3, b3)

    out = jax.block_until_ready(cnn3d_forward(x, params))
    ref = jax.block_until_ready(cnn3d_reference(x, params))

    assert out.shape == (N, COUT, DO, HO, 1), out.shape
    assert jnp.allclose(out, ref, rtol=5e-2, atol=5e-2), \
        float(jnp.max(jnp.abs(out - ref)))
    print("KERNEL_OK")
</pallas_src>

<mosaic_0001>
module attributes {stable_mosaic.version = 11 : i64} {
  func.func @cnn3d_kernel(%arg0: i32, %arg1: memref<1x109x3200xbf16, #tpu.memory_space<vmem>>, %arg2: memref<20x109xbf16, #tpu.memory_space<vmem>>, %arg3: memref<3200x160xbf16, #tpu.memory_space<vmem>>, %arg4: memref<1x160xf32, #tpu.memory_space<vmem>>, %arg5: memref<160x80xf32, #tpu.memory_space<vmem>>, %arg6: memref<1x80xf32, #tpu.memory_space<vmem>>, %arg7: memref<80x4xf32, #tpu.memory_space<vmem>>, %arg8: memref<1x4xf32, #tpu.memory_space<vmem>>, %arg9: memref<1x20x4xf32, #tpu.memory_space<vmem>>) attributes {dimension_semantics = [#tpu.dimension_semantics<parallel>], iteration_bounds = array<i64: 2>, scalar_prefetch = 0 : i64, scratch_operands = 0 : i64, tpu.core_type = #tpu.core_type<tc>, window_params = [{transform_indices = @transform_0, window_bounds = array<i64: 1, 109, 3200>}, {pipeline_mode = #tpu.pipeline_mode<synchronous>, transform_indices = @transform_1, window_bounds = array<i64: 20, 109>}, {pipeline_mode = #tpu.pipeline_mode<synchronous>, transform_indices = @transform_2, window_bounds = array<i64: 3200, 160>}, {pipeline_mode = #tpu.pipeline_mode<synchronous>, transform_indices = @transform_3, window_bounds = array<i64: 1, 160>}, {pipeline_mode = #tpu.pipeline_mode<synchronous>, transform_indices = @transform_4, window_bounds = array<i64: 160, 80>}, {pipeline_mode = #tpu.pipeline_mode<synchronous>, transform_indices = @transform_5, window_bounds = array<i64: 1, 80>}, {pipeline_mode = #tpu.pipeline_mode<synchronous>, transform_indices = @transform_6, window_bounds = array<i64: 80, 4>}, {pipeline_mode = #tpu.pipeline_mode<synchronous>, transform_indices = @transform_7, window_bounds = array<i64: 1, 4>}, {transform_indices = @transform_8, window_bounds = array<i64: 1, 20, 4>}]} {
    %c0 = arith.constant 0 : index
    %c0_0 = arith.constant 0 : index
    %c0_1 = arith.constant 0 : index
    %0 = vector.load %arg1[%c0, %c0_0, %c0_1] : memref<1x109x3200xbf16, #tpu.memory_space<vmem>>, vector<1x109x3200xbf16>
    %1 = vector.shape_cast %0 : vector<1x109x3200xbf16> to vector<109x3200xbf16>
    %c0_2 = arith.constant 0 : index
    %c0_3 = arith.constant 0 : index
    %2 = vector.load %arg2[%c0_2, %c0_3] : memref<20x109xbf16, #tpu.memory_space<vmem>>, vector<20x109xbf16>
    %cst = arith.constant dense<0.000000e+00> : vector<20x3200xf32>
    %3 = tpu.matmul %2, %1, %cst {dimension_numbers = #tpu.dot_dimension_numbers<[1], [0], [0], [1], [0, 0, 1, 1], [], []>} : vector<20x109xbf16>, vector<109x3200xbf16>, vector<20x3200xf32> -> vector<20x3200xf32>
    %cst_4 = arith.constant 0.000000e+00 : f32
    %4 = vector.broadcast %cst_4 : f32 to vector<20x3200xf32>
    %5 = arith.maximumf %3, %4 : vector<20x3200xf32>
    %6 = arith.truncf %5 : vector<20x3200xf32> to vector<20x3200xbf16>
    %c0_5 = arith.constant 0 : index
    %c0_6 = arith.constant 0 : index
    %7 = vector.load %arg3[%c0_5, %c0_6] : memref<3200x160xbf16, #tpu.memory_space<vmem>>, vector<3200x160xbf16>
    %cst_7 = arith.constant dense<0.000000e+00> : vector<20x160xf32>
    %8 = tpu.matmul %6, %7, %cst_7 {dimension_numbers = #tpu.dot_dimension_numbers<[1], [0], [0], [1], [0, 0, 1, 1], [], []>} : vector<20x3200xbf16>, vector<3200x160xbf16>, vector<20x160xf32> -> vector<20x160xf32>
    %c0_8 = arith.constant 0 : index
    %c0_9 = arith.constant 0 : index
    %9 = vector.load %arg4[%c0_8, %c0_9] : memref<1x160xf32, #tpu.memory_space<vmem>>, vector<1x160xf32>
    %10 = vector.broadcast %9 : vector<1x160xf32> to vector<20x160xf32>
    %11 = arith.addf %8, %10 : vector<20x160xf32>
    %cst_10 = arith.constant 0.000000e+00 : f32
    %12 = vector.broadcast %cst_10 : f32 to vector<20x160xf32>
    %13 = arith.maximumf %11, %12 : vector<20x160xf32>
    %c0_11 = arith.constant 0 : index
    %c0_12 = arith.constant 0 : index
    %14 = vector.load %arg5[%c0_11, %c0_12] : memref<160x80xf32, #tpu.memory_space<vmem>>, vector<160x80xf32>
    %cst_13 = arith.constant dense<0.000000e+00> : vector<20x80xf32>
    %15 = tpu.matmul %13, %14, %cst_13 {dimension_numbers = #tpu.dot_dimension_numbers<[1], [0], [0], [1], [0, 0, 1, 1], [], []>} : vector<20x160xf32>, vector<160x80xf32>, vector<20x80xf32> -> vector<20x80xf32>
    %c0_14 = arith.constant 0 : index
    %c0_15 = arith.constant 0 : index
    %16 = vector.load %arg6[%c0_14, %c0_15] : memref<1x80xf32, #tpu.memory_space<vmem>>, vector<1x80xf32>
    %17 = vector.broadcast %16 : vector<1x80xf32> to vector<20x80xf32>
    %18 = arith.addf %15, %17 : vector<20x80xf32>
    %cst_16 = arith.constant 0.000000e+00 : f32
    %19 = vector.broadcast %cst_16 : f32 to vector<20x80xf32>
    %20 = arith.maximumf %18, %19 : vector<20x80xf32>
    %c0_17 = arith.constant 0 : index
    %c0_18 = arith.constant 0 : index
    %21 = vector.load %arg7[%c0_17, %c0_18] : memref<80x4xf32, #tpu.memory_space<vmem>>, vector<80x4xf32>
    %cst_19 = arith.constant dense<0.000000e+00> : vector<20x4xf32>
    %22 = tpu.matmul %20, %21, %cst_19 {dimension_numbers = #tpu.dot_dimension_numbers<[1], [0], [0], [1], [0, 0, 1, 1], [], []>} : vector<20x80xf32>, vector<80x4xf32>, vector<20x4xf32> -> vector<20x4xf32>
    %c0_20 = arith.constant 0 : index
    %c0_21 = arith.constant 0 : index
    %23 = vector.load %arg8[%c0_20, %c0_21] : memref<1x4xf32, #tpu.memory_space<vmem>>, vector<1x4xf32>
    %24 = vector.broadcast %23 : vector<1x4xf32> to vector<20x4xf32>
    %25 = arith.addf %22, %24 : vector<20x4xf32>
    %c0_22 = arith.constant 0 : index
    %c0_23 = arith.constant 0 : index
    %c0_24 = arith.constant 0 : index
    %26 = vector.load %arg9[%c0_22, %c0_23, %c0_24] : memref<1x20x4xf32, #tpu.memory_space<vmem>>, vector<1x20x4xf32>
    %27 = vector.shape_cast %26 : vector<1x20x4xf32> to vector<20x4xf32>
    %28 = vector.shape_cast %25 : vector<20x4xf32> to vector<1x20x4xf32>
    tpu.vector_store %arg9[%c0_22, %c0_23, %c0_24], %28 {strides = array<i32>} : memref<1x20x4xf32, #tpu.memory_space<vmem>>, vector<1x20x4xf32>,
    return
  }
  func.func @transform_0(%arg0: i32) -> (i32, i32, i32) {
    %c0_i32 = arith.constant 0 : i32
    %c0_i32_0 = arith.constant 0 : i32
    %c0_i32_1 = arith.constant 0 : i32
    return %arg0, %c0_i32, %c0_i32_0 : i32, i32, i32
  }
  func.func @transform_1(%arg0: i32) -> (i32, i32) {
    %c0_i32 = arith.constant 0 : i32
    %c0_i32_0 = arith.constant 0 : i32
    %c0_i32_1 = arith.constant 0 : i32
    return %c0_i32, %c0_i32_0 : i32, i32
  }
  func.func @transform_2(%arg0: i32) -> (i32, i32) {
    %c0_i32 = arith.constant 0 : i32
    %c0_i32_0 = arith.constant 0 : i32
    %c0_i32_1 = arith.constant 0 : i32
    return %c0_i32, %c0_i32_0 : i32, i32
  }
  func.func @transform_3(%arg0: i32) -> (i32, i32) {
    %c0_i32 = arith.constant 0 : i32
    %c0_i32_0 = arith.constant 0 : i32
    %c0_i32_1 = arith.constant 0 : i32
    return %c0_i32, %c0_i32_0 : i32, i32
  }
  func.func @transform_4(%arg0: i32) -> (i32, i32) {
    %c0_i32 = arith.constant 0 : i32
    %c0_i32_0 = arith.constant 0 : i32
    %c0_i32_1 = arith.constant 0 : i32
    return %c0_i32, %c0_i32_0 : i32, i32
  }
  func.func @transform_5(%arg0: i32) -> (i32, i32) {
    %c0_i32 = arith.constant 0 : i32
    %c0_i32_0 = arith.constant 0 : i32
    %c0_i32_1 = arith.constant 0 : i32
    return %c0_i32, %c0_i32_0 : i32, i32
  }
  func.func @transform_6(%arg0: i32) -> (i32, i32) {
    %c0_i32 = arith.constant 0 : i32
    %c0_i32_0 = arith.constant 0 : i32
    %c0_i32_1 = arith.constant 0 : i32
    return %c0_i32, %c0_i32_0 : i32, i32
  }
  func.func @transform_7(%arg0: i32) -> (i32, i32) {
    %c0_i32 = arith.constant 0 : i32
    %c0_i32_0 = arith.constant 0 : i32
    %c0_i32_1 = arith.constant 0 : i32
    return %c0_i32, %c0_i32_0 : i32, i32
  }
  func.func @transform_8(%arg0: i32) -> (i32, i32, i32) {
    %c0_i32 = arith.constant 0 : i32
    %c0_i32_0 = arith.constant 0 : i32
    %c0_i32_1 = arith.constant 0 : i32
    return %arg0, %c0_i32, %c0_i32_0 : i32, i32, i32
  }
}

</mosaic_0001>

<bundles_post_ra>
// kernel: tpu_custom_call.1
= control target key start
LH: loop header
LB: loop body
LE: loop exit
PB: predicated region body
PF: predicated region fallthrough
CT: control target
= control target key end

     0   :  { %s7364_s27 = smov 0   ;;  %s9120_s0 = inlined_call_operand.vmem [shape: bf16[2,109,3200], index: 0, kind: input, shape index: {}]   ;;  %s9121_s1 = inlined_call_operand.vmem [shape: bf16[20,109], index: 1, kind: input, shape index: {}]   ;;  %s9122_s2 = inlined_call_operand.vmem [shape: bf16[3200,160], index: 2, kind: input, shape index: {}]   ;;  %s9123_s3 = inlined_call_operand.vmem [shape: f32[1,160], index: 3, kind: input, shape index: {}]   ;;  %s9124_s4 = inlined_call_operand.vmem [shape: f32[160,80], index: 4, kind: input, shape index: {}]   ;;  %s9125_s5 = inlined_call_operand.vmem [shape: f32[1,80], index: 5, kind: input, shape index: {}]   ;;  %s9126_s6 = inlined_call_operand.vmem [shape: f32[80,4], index: 6, kind: input, shape index: {}]   ;;  %s9127_s7 = inlined_call_operand.vmem [shape: f32[1,4], index: 7, kind: input, shape index: {}]   ;;  %s9128_s8 = inlined_call_operand.vmem [shape: f32[2,20,4], index: 8, kind: output, shape index: {}]  }
   0x1 LB: > { %s5596_s28 = sadd.s32 4294967295, %s7312_s27   ;;  %p5600_p0 = scmp.ge.s32.totalorder %s7312_s27, 1  ;;  %s7312_s27 = sphi %s7364_s27, %s18_s27  }
   0x2   : > { %p262_p1 = scmp.lt.s32.totalorder %s7312_s27, 3 }
   0x4   : > { %p263_p2 = pnand %p5600_p0, %p262_p1 }
   0x5   : > { %p296_p3 = scmp.lt.s32.totalorder (!%p263_p2), %s5596_s28, 1  ;;  %v7314_v0 = vmov (!%p263_p2), 0   ;;  %vm1364_vm0 = vcmask (!%p263_p2), 1045504   ;;  %vm1365_vm1 = vcmask (!%p263_p2), 1046528   ;;  %v7315_v20 = vmov (!%p263_p2), 65535   ;;  %v7421_v38 = vld [vmem:[%s9121_s1] sm:$0xff] (!%p263_p2)  }
   0x6   : > { %266 = sbr.rel (%p263_p2) target bundleno = 1365 (0x555), region = 52  ;;  %1526 = vmatprep.mubr.bf16.mxu1 (!%p263_p2), %v7314_v0  ;;  %1475 = vmatprep.mubr.bf16.mxu0 (!%p263_p2), %v7314_v0  ;;  %v1366_v21 = vsel (!%p263_p2), %vm1364_vm0, 4294967295, %v7315_v20  ;;  %vm1357_vm2 = vcmask (!%p263_p2), 891904   ;;  %v7439_v47 = vld [vmem:[%s9121_s1 + $0x8] ss:$0 sps:$4 sm:$0x33] (!%p263_p2)  }
   0x7   : > { %v7408_v29 = vsel (!%p263_p2), %vm1365_vm1, %v1366_v21, 0  ;;  %vm5336_vm3 = vcmask (!%p263_p2), 261120   ;;  %vm7317_vm4 = vmmov (!%p263_p2), 0   ;;  %vm5446_vm5 = vcmask (!%p263_p2), 654336  }
   0x8   : > { %vm5536_vm6 = vcmask (!%p263_p2), 31744   ;;  %vm5539_vm7 = vcmask (!%p263_p2), 27648  }
   0xd   : > { %s9130_s28 = smov (!%p296_p3, %s5596_s28), 1 }
   0xe   : > { %s6428_s29 = smul.u32 1400, %s9130_s28 }
  0x10   : > { %s7380_s10 = scalar_lea.vmem %s9120_s0, %s6428_s29 }
  0x11   : > { %v6443_v1 = vld [vmem:[%s7380_s10 + $0x4] ss:$100 sps:$4 sm:$0xff]   ;;  %v6445_v2 = vld [vmem:[%s7380_s10 + $0xc] ss:$100 sps:$4 sm:$0xff]   ;;  %v6451_v6 = vld [vmem:[%s7380_s10 + $0xd4] ss:$100 sps:$4 sm:$0xff]  }
  0x12   : > { %1443 = vmatprep.subr.bf16.mxu0 %v6443_v1  ;;  %v6447_v3 = vld [vmem:[%s7380_s10] ss:$100 sps:$4 sm:$0xff]   ;;  %v6448_v4 = vld [vmem:[%s7380_s10 + $0x8] ss:$100 sps:$4 sm:$0xff]   ;;  %1494 = vmatprep.subr.bf16.mxu1 %v6445_v2  ;;  %v6454_v8 = vld [vmem:[%s7380_s10 + $0xd0] ss:$100 sps:$4 sm:$0xff]  }
  0x13   : > { %v6449_v5 = vld [vmem:[%s7380_s10 + $0xcc] ss:$100 sps:$4 sm:$0xff]   ;;  %1444 = vmatpush1.bf16.msra.mxu0 %v6447_v3  ;;  %1495 = vmatpush1.bf16.msra.mxu1 %v6448_v4  ;;  %v6455_v9 = vld [vmem:[%s7380_s10 + $0x194] ss:$100 sps:$4 sm:$0xff]   ;;  %v6457_v10 = vld [vmem:[%s7380_s10 + $0x19c] ss:$100 sps:$4 sm:$0xff]  }
  0x14   : > { %v6453_v7 = vld [vmem:[%s7380_s10 + $0xc8] ss:$100 sps:$4 sm:$0xff]   ;;  %1445 = vmatprep.subr.bf16.mxu0 %v6449_v5  ;;  %1496 = vmatprep.subr.bf16.mxu1 %v6451_v6  ;;  %v6459_v11 = vld [vmem:[%s7380_s10 + $0x190] ss:$100 sps:$4 sm:$0xff]   ;;  %v6460_v12 = vld [vmem:[%s7380_s10 + $0x198] ss:$100 sps:$4 sm:$0xff]  }
  0x15   : > { %v6461_v13 = vld [vmem:[%s7380_s10 + $0x25c] ss:$100 sps:$4 sm:$0xff]   ;;  %v6463_v14 = vld [vmem:[%s7380_s10 + $0x264] ss:$100 sps:$4 sm:$0xff]   ;;  %v6469_v18 = vld [vmem:[%s7380_s10 + $0x32c] ss:$100 sps:$4 sm:$0xff]  }
  0x16   : > { %v6465_v15 = vld [vmem:[%s7380_s10 + $0x258] ss:$100 sps:$4 sm:$0xff]   ;;  %v6466_v16 = vld [vmem:[%s7380_s10 + $0x260] ss:$100 sps:$4 sm:$0xff]   ;;  %v6472_v22 = vld [vmem:[%s7380_s10 + $0x328] ss:$100 sps:$4 sm:$0xff]  }
  0x17   : > { %1446 = vmatpush1.bf16.msra.mxu0 %v6453_v7  ;;  %1497 = vmatpush1.bf16.msra.mxu1 %v6454_v8  ;;  %v6467_v17 = vld [vmem:[%s7380_s10 + $0x324] ss:$100 sps:$4 sm:$0xff]   ;;  %v6473_v23 = vld [vmem:[%s7380_s10 + $0x3ec] ss:$100 sps:$4 sm:$0xff]   ;;  %v6475_v24 = vld [vmem:[%s7380_s10 + $0x3f4] ss:$100 sps:$4 sm:$0xff]  }
  0x18   : > { %1447 = vmatprep.subr.bf16.mxu0 %v6455_v9  ;;  %1498 = vmatprep.subr.bf16.mxu1 %v6457_v10  ;;  %v6471_v19 = vld [vmem:[%s7380_s10 + $0x320] ss:$100 sps:$4 sm:$0xff]   ;;  %v6479_v25 = vld [vmem:[%s7380_s10 + $0x4b4] ss:$100 sps:$4 sm:$0x7f]  }
  0x19   : > { %v6481_v26 = vld [vmem:[%s7380_s10 + $0x4bc] ss:$100 sps:$4 sm:$0x7f]   ;;  %v6477_v27 = vld [vmem:[%s7380_s10 + $0x3e8] ss:$100 sps:$4 sm:$0xff]   ;;  %v1372_v32 = vand.u32 %v6479_v25, %v7408_v29 }
  0x1a   : > { %v6478_v28 = vld [vmem:[%s7380_s10 + $0x3f0] ss:$100 sps:$4 sm:$0xff]   ;;  %v6484_v31 = vld [vmem:[%s7380_s10 + $0x4b8] ss:$100 sps:$4 sm:$0x7f]   ;;  %v1378_v33 = vand.u32 %v6481_v26, %v7408_v29 }
  0x1b   : > { %1448 = vmatpush1.bf16.msra.mxu0 %v6459_v11  ;;  %1499 = vmatpush1.bf16.msra.mxu1 %v6460_v12  ;;  %v6483_v30 = vld [vmem:[%s7380_s10 + $0x4b0] ss:$100 sps:$4 sm:$0x7f]   ;;  %v1375_v35 = vand.u32 %v6484_v31, %v7408_v29  ;;  %v6491_v37 = vld [vmem:[%s7380_s10 + $0x1c] ss:$100 sps:$4 sm:$0xff]  }
  0x1c   : > { %1449 = vmatprep.subr.bf16.mxu0 %v6461_v13  ;;  %1500 = vmatprep.subr.bf16.mxu1 %v6463_v14  ;;  %v1369_v34 = vand.u32 %v6483_v30, %v7408_v29  ;;  %v6488_v36 = vld [vmem:[%s7380_s10 + $0x14] ss:$100 sps:$4 sm:$0xff]   ;;  %v6494_v41 = vld [vmem:[%s7380_s10 + $0xdc] ss:$100 sps:$4 sm:$0xff]   ;;  %v6497_v42 = vld [vmem:[%s7380_s10 + $0xe4] ss:$100 sps:$4 sm:$0xff]  }
  0x1d   : > { %v6486_v39 = vld [vmem:[%s7380_s10 + $0x10] ss:$100 sps:$4 sm:$0xff]   ;;  %v6489_v40 = vld [vmem:[%s7380_s10 + $0x18] ss:$100 sps:$4 sm:$0xff]   ;;  %v6495_v44 = vld [vmem:[%s7380_s10 + $0xe0] ss:$100 sps:$4 sm:$0xff]  }
  0x1e   : > { %v6492_v43 = vld [vmem:[%s7380_s10 + $0xd8] ss:$100 sps:$4 sm:$0xff]   ;;  %v6500_v45 = vld [vmem:[%s7380_s10 + $0x1a4] ss:$100 sps:$4 sm:$0xff]   ;;  %v6503_v46 = vld [vmem:[%s7380_s10 + $0x1ac] ss:$100 sps:$4 sm:$0xff]  }
  0x1f   : > { %1450 = vmatpush1.bf16.msra.mxu0 %v6465_v15  ;;  %1501 = vmatpush1.bf16.msra.mxu1 %v6466_v16  ;;  %v6498_v48 = vld [vmem:[%s7380_s10 + $0x1a0] ss:$100 sps:$4 sm:$0xff]   ;;  %v6501_v49 = vld [vmem:[%s7380_s10 + $0x1a8] ss:$100 sps:$4 sm:$0xff]   ;;  %v6509_v51 = vld [vmem:[%s7380_s10 + $0x274] ss:$100 sps:$4 sm:$0xff]  }
  0x20   : > { %1451 = vmatprep.subr.bf16.mxu0 %v6467_v17  ;;  %1502 = vmatprep.subr.bf16.mxu1 %v6469_v18  ;;  %v6506_v50 = vld [vmem:[%s7380_s10 + $0x26c] ss:$100 sps:$4 sm:$0xff]   ;;  %v6512_v54 = vld [vmem:[%s7380_s10 + $0x334] ss:$100 sps:$4 sm:$0xff]   ;;  %v6515_v55 = vld [vmem:[%s7380_s10 + $0x33c] ss:$100 sps:$4 sm:$0xff]  }
  0x21   : > { %v6504_v52 = vld [vmem:[%s7380_s10 + $0x268] ss:$100 sps:$4 sm:$0xff]   ;;  %v6507_v53 = vld [vmem:[%s7380_s10 + $0x270] ss:$100 sps:$4 sm:$0xff]   ;;  %v6513_v57 = vld [vmem:[%s7380_s10 + $0x338] ss:$100 sps:$4 sm:$0xff]  }
  0x22   : > { %v6510_v56 = vld [vmem:[%s7380_s10 + $0x330] ss:$100 sps:$4 sm:$0xff]   ;;  %v6519_v58 = vld [vmem:[%s7380_s10 + $0x3fc] ss:$100 sps:$4 sm:$0xff]   ;;  %v6522_v60 = vld [vmem:[%s7380_s10 + $0x404] ss:$100 sps:$4 sm:$0xff]  }
  0x23   : > { %1452 = vmatpush1.bf16.msra.mxu0 %v6471_v19  ;;  %1503 = vmatpush1.bf16.msra.mxu1 %v6472_v22  ;;  %v6525_v59 = vld [vmem:[%s7380_s10 + $0x4c4] ss:$100 sps:$4 sm:$0x7f]   ;;  %v6528_v61 = vld [vmem:[%s7380_s10 + $0x4cc] ss:$100 sps:$4 sm:$0x7f]  }
  0x24   : > { %1453 = vmatprep.subr.bf16.mxu0 %v6473_v23  ;;  %1504 = vmatprep.subr.bf16.mxu1 %v6475_v24  ;;  %v6517_v62 = vld [vmem:[%s7380_s10 + $0x3f8] ss:$100 sps:$4 sm:$0xff]   ;;  %v6523_v63 = vld [vmem:[%s7380_s10 + $0x4c0] ss:$100 sps:$4 sm:$0x7f]   ;;  %v1384_v3 = vand.u32 %v6525_v59, %v7408_v29  ;;  %v1390_v4 = vand.u32 %v6528_v61, %v7408_v29 }
  0x25   : > { %v6520_v1 = vld [vmem:[%s7380_s10 + $0x400] ss:$100 sps:$4 sm:$0xff]   ;;  %v6526_v2 = vld [vmem:[%s7380_s10 + $0x4c8] ss:$100 sps:$4 sm:$0x7f]   ;;  %v1381_v5 = vand.u32 %v6523_v63, %v7408_v29 }
  0x26   : > { %v1387_v6 = vand.u32 %v6526_v2, %v7408_v29  ;;  %v6531_v7 = vld [vmem:[%s7380_s10 + $0x24] ss:$100 sps:$4 sm:$0xff]   ;;  %v6534_v8 = vld [vmem:[%s7380_s10 + $0x2c] ss:$100 sps:$4 sm:$0xff]   ;;  %v6540_v12 = vld [vmem:[%s7380_s10 + $0xf4] ss:$100 sps:$4 sm:$0xff]  }
  0x27   : > { %1454 = vmatpush1.bf16.msra.mxu0 %v6477_v27  ;;  %1505 = vmatpush1.bf16.msra.mxu1 %v6478_v28  ;;  %v6529_v9 = vld [vmem:[%s7380_s10 + $0x20] ss:$100 sps:$4 sm:$0xff]   ;;  %v6532_v10 = vld [vmem:[%s7380_s10 + $0x28] ss:$100 sps:$4 sm:$0xff]   ;;  %v6538_v14 = vld [vmem:[%s7380_s10 + $0xf0] ss:$100 sps:$4 sm:$0xff]  }
  0x28   : > { %1455 = vmatprep.subr.bf16.mxu0 %v1372_v32  ;;  %1506 = vmatprep.subr.bf16.mxu1 %v1378_v33  ;;  %v6537_v11 = vld [vmem:[%s7380_s10 + $0xec] ss:$100 sps:$4 sm:$0xff]   ;;  %v6543_v15 = vld [vmem:[%s7380_s10 + $0x1b4] ss:$100 sps:$4 sm:$0xff]   ;;  %v6546_v16 = vld [vmem:[%s7380_s10 + $0x1bc] ss:$100 sps:$4 sm:$0xff]  }
  0x29   : > { %v6535_v13 = vld [vmem:[%s7380_s10 + $0xe8] ss:$100 sps:$4 sm:$0xff]   ;;  %v6541_v17 = vld [vmem:[%s7380_s10 + $0x1b0] ss:$100 sps:$4 sm:$0xff]   ;;  %v6544_v18 = vld [vmem:[%s7380_s10 + $0x1b8] ss:$100 sps:$4 sm:$0xff]  }
  0x2a   : > { %v6549_v19 = vld [vmem:[%s7380_s10 + $0x27c] ss:$100 sps:$4 sm:$0xff]   ;;  %v6552_v20 = vld [vmem:[%s7380_s10 + $0x284] ss:$100 sps:$4 sm:$0xff]   ;;  %v6558_v24 = vld [vmem:[%s7380_s10 + $0x34c] ss:$100 sps:$4 sm:$0xff]  }
  0x2b   : > { %1456 = vmatpush1.bf16.msra.mxu0 %v1369_v34  ;;  %1507 = vmatpush1.bf16.msra.mxu1 %v1375_v35  ;;  %v6547_v21 = vld [vmem:[%s7380_s10 + $0x278] ss:$100 sps:$4 sm:$0xff]   ;;  %v6550_v22 = vld [vmem:[%s7380_s10 + $0x280] ss:$100 sps:$4 sm:$0xff]   ;;  %v6556_v26 = vld [vmem:[%s7380_s10 + $0x348] ss:$100 sps:$4 sm:$0xff]  }
  0x2c   : > { %1545 = vmatprep.subr.bf16.mxu0 %v6488_v36  ;;  %1596 = vmatprep.subr.bf16.mxu1 %v6491_v37  ;;  %v6555_v23 = vld [vmem:[%s7380_s10 + $0x344] ss:$100 sps:$4 sm:$0xff]   ;;  %v6561_v27 = vld [vmem:[%s7380_s10 + $0x40c] ss:$100 sps:$4 sm:$0xff]   ;;  %v6564_v28 = vld [vmem:[%s7380_s10 + $0x414] ss:$100 sps:$4 sm:$0xff]  }
  0x2d   : > { %v6553_v25 = vld [vmem:[%s7380_s10 + $0x340] ss:$100 sps:$4 sm:$0xff]   ;;  %v6567_v30 = vld [vmem:[%s7380_s10 + $0x4d4] ss:$100 sps:$4 sm:$0x7f]  }
  0x2e   : > { %5782 = vmatmul.mubr.msk.bf16.vlgmr.msra.gmra.mrb[0].mxu1 %vm1357_vm2, %v7421_v38  ;;  %5780 = vmatmul.mubr.msk.bf16.vlgmr.msra.gmra.mrb[0].mxu0 %vm1357_vm2, %v7421_v38  ;;  %v6570_v31 = vld [vmem:[%s7380_s10 + $0x4dc] ss:$100 sps:$4 sm:$0x7f]   ;;  %v6559_v32 = vld [vmem:[%s7380_s10 + $0x408] ss:$100 sps:$4 sm:$0xff]   ;;  %v1396_v36 = vand.u32 %v6567_v30, %v7408_v29 }
  0x2f   : > { %1546 = vmatpush1.bf16.msra.mxu0 %v6486_v39  ;;  %1597 = vmatpush1.bf16.msra.mxu1 %v6489_v40  ;;  %v6562_v33 = vld [vmem:[%s7380_s10 + $0x410] ss:$100 sps:$4 sm:$0xff]   ;;  %v6568_v35 = vld [vmem:[%s7380_s10 + $0x4d8] ss:$100 sps:$4 sm:$0x7f]   ;;  %v1402_v37 = vand.u32 %v6570_v31, %v7408_v29 }
  0x30   : > { %1547 = vmatprep.subr.bf16.mxu0 %v6494_v41  ;;  %1598 = vmatprep.subr.bf16.mxu1 %v6497_v42  ;;  %v6565_v34 = vld [vmem:[%s7380_s10 + $0x4d0] ss:$100 sps:$4 sm:$0x7f]   ;;  %v1399_v40 = vand.u32 %v6568_v35, %v7408_v29  ;;  %v6627_v42 = vld [vmem:[%s7380_s10 + $0x3c] ss:$100 sps:$4 sm:$0xff]  }
  0x31   : > { %1536 = vmatprep.mubr.bf16.mxu1 %v7314_v0  ;;  %1485 = vmatprep.mubr.bf16.mxu0 %v7314_v0  ;;  %v1393_v39 = vand.u32 %v6565_v34, %v7408_v29  ;;  %v6573_v41 = vld [vmem:[%s7380_s10 + $0x34] ss:$100 sps:$4 sm:$0xff]   ;;  %v6588_v61 = vld [vmem:[%s7380_s10 + $0x41c] ss:$100 sps:$4 sm:$0xff]   ;;  %v6679_v30 = vld [vmem:[%s7380_s10 + $0x36c] ss:$100 sps:$4 sm:$0xff]  }
  0x32   : > { %v6643_v59 = vld [vmem:[%s7380_s10 + $0x290] ss:$100 sps:$4 sm:$0xff]   ;;  %v6647_v63 = vld [vmem:[%s7380_s10 + $0x358] ss:$100 sps:$4 sm:$0xff]  }
  0x33   : > { %1548 = vmatpush1.bf16.msra.mxu0 %v6492_v43  ;;  %1599 = vmatpush1.bf16.msra.mxu1 %v6495_v44  ;;  %v6571_v43 = vld [vmem:[%s7380_s10 + $0x30] ss:$100 sps:$4 sm:$0xff]   ;;  %v6576_v44 = vld [vmem:[%s7380_s10 + $0xfc] ss:$100 sps:$4 sm:$0xff]  }
  0x34   : > { %1549 = vmatprep.subr.bf16.mxu0 %v6500_v45  ;;  %1600 = vmatprep.subr.bf16.mxu1 %v6503_v46  ;;  %v6625_v45 = vld [vmem:[%s7380_s10 + $0x38] ss:$100 sps:$4 sm:$0xff]   ;;  %v6633_v46 = vld [vmem:[%s7380_s10 + $0x104] ss:$100 sps:$4 sm:$0xff]   ;;  %v6609_v31 = vld [vmem:[%s7380_s10 + $0x42c] ss:$100 sps:$4 sm:$0xff]  }
  0x35   : > { %v6657_v2 = vld [vmem:[%s7380_s10 + $0x4ec] ss:$100 sps:$4 sm:$0x7f]   ;;  %v6685_v34 = vld [vmem:[%s7380_s10 + $0x434] ss:$100 sps:$4 sm:$0xff]  }
  0x36   : > { %5783 = vmatmul.mubr.msk.bf16.gmra.mrb[4].mxu1 %vm1357_vm2, %v7439_v47  ;;  %5781 = vmatmul.mubr.msk.bf16.gmra.mrb[4].mxu0 %vm1357_vm2, %v7439_v47  ;;  %v6691_v35 = vld [vmem:[%s7380_s10 + $0x4fc] ss:$100 sps:$4 sm:$0x7f]  }
  0x37   : > { %1550 = vmatpush1.bf16.msra.mxu0 %v6498_v48  ;;  %1601 = vmatpush1.bf16.msra.mxu1 %v6501_v49  ;;  %v6574_v48 = vld [vmem:[%s7380_s10 + $0xf8] ss:$100 sps:$4 sm:$0xff]   ;;  %v6579_v49 = vld [vmem:[%s7380_s10 + $0x1c4] ss:$100 sps:$4 sm:$0xff]  }
  0x38   : > { %1551 = vmatprep.subr.bf16.mxu0 %v6506_v50  ;;  %1602 = vmatprep.subr.bf16.mxu1 %v6509_v51  ;;  %v6631_v50 = vld [vmem:[%s7380_s10 + $0x100] ss:$100 sps:$4 sm:$0xff]  }
  0x39   : > { %1628 = vmatprep.mubr.bf16.mxu1 %v7314_v0  ;;  %1577 = vmatprep.mubr.bf16.mxu0 %v7314_v0  ;;  %v6577_v51 = vld [vmem:[%s7380_s10 + $0x1c0] ss:$100 sps:$4 sm:$0xff]  }
  0x3b   : > { %1552 = vmatpush1.bf16.msra.mxu0 %v6504_v52  ;;  %1603 = vmatpush1.bf16.msra.mxu1 %v6507_v53  ;;  %v6582_v52 = vld [vmem:[%s7380_s10 + $0x28c] ss:$100 sps:$4 sm:$0xff]  }
  0x3c   : > { %1553 = vmatprep.subr.bf16.mxu0 %v6512_v54  ;;  %1604 = vmatprep.subr.bf16.mxu1 %v6515_v55  ;;  %v6639_v53 = vld [vmem:[%s7380_s10 + $0x1cc] ss:$100 sps:$4 sm:$0xff]   ;;  %v6645_v55 = vld [vmem:[%s7380_s10 + $0x294] ss:$100 sps:$4 sm:$0xff]  }
  0x3d   : > { %v6637_v54 = vld [vmem:[%s7380_s10 + $0x1c8] ss:$100 sps:$4 sm:$0xff]  }
  0x3f   : > { %1554 = vmatpush1.bf16.msra.mxu0 %v6510_v56  ;;  %1605 = vmatpush1.bf16.msra.mxu1 %v6513_v57  ;;  %v6580_v56 = vld [vmem:[%s7380_s10 + $0x288] ss:$100 sps:$4 sm:$0xff]   ;;  %v6585_v57 = vld [vmem:[%s7380_s10 + $0x354] ss:$100 sps:$4 sm:$0xff]  }
  0x40   : > { %1555 = vmatprep.subr.bf16.mxu0 %v6519_v58  ;;  %1606 = vmatprep.subr.bf16.mxu1 %v6522_v60  ;;  %v6583_v58 = vld [vmem:[%s7380_s10 + $0x350] ss:$100 sps:$4 sm:$0xff]   ;;  %v6649_v60 = vld [vmem:[%s7380_s10 + $0x35c] ss:$100 sps:$4 sm:$0xff]  }
  0x43   : > { %1556 = vmatpush1.bf16.msra.mxu0 %v6517_v62  ;;  %1607 = vmatpush1.bf16.msra.mxu1 %v6520_v1  ;;  %v6591_v62 = vld [vmem:[%s7380_s10 + $0x4e4] ss:$100 sps:$4 sm:$0x7f]  }
  0x44   : > { %1557 = vmatprep.subr.bf16.mxu0 %v1384_v3  ;;  %1608 = vmatprep.subr.bf16.mxu1 %v1390_v4  ;;  %v6653_v1 = vld [vmem:[%s7380_s10 + $0x424] ss:$100 sps:$4 sm:$0xff]   ;;  %v6586_v3 = vld [vmem:[%s7380_s10 + $0x418] ss:$100 sps:$4 sm:$0xff]  }
  0x45   : > { %v6589_v4 = vld [vmem:[%s7380_s10 + $0x4e0] ss:$100 sps:$4 sm:$0x7f]  }
  0x47   : > { %1558 = vmatpush1.bf16.msra.mxu0 %v1381_v5  ;;  %1609 = vmatpush1.bf16.msra.mxu1 %v1387_v6  ;;  %v1408_v5 = vand.u32 %v6591_v62, %v7408_v29  ;;  %v6651_v6 = vld [vmem:[%s7380_s10 + $0x420] ss:$100 sps:$4 sm:$0xff]  }
  0x48   : > { %1647 = vmatprep.subr.bf16.mxu0 %v6531_v7  ;;  %1698 = vmatprep.subr.bf16.mxu1 %v6534_v8  ;;  %v6655_v7 = vld [vmem:[%s7380_s10 + $0x4e8] ss:$100 sps:$4 sm:$0x7f]   ;;  %v1414_v8 = vand.u32 %v6657_v2, %v7408_v29  ;;  %v6721_v62 = vld [vmem:[%s7380_s10 + $0x37c] ss:$100 sps:$4 sm:$0xff]  }
  0x49   : > { %v6642_v2 = vld [vmem:[%s7380_s10 + $0x504] ss:$100 sps:$4 sm:$0x7f]  }
  0x4a   : > { %5786 = vmatmul.mubr.msk.bf16.vlgmr.msra.gmra.mrb[8].mxu1 %vm1357_vm2, %v7421_v38  ;;  %5784 = vmatmul.mubr.msk.bf16.vlgmr.msra.gmra.mrb[8].mxu0 %vm1357_vm2, %v7421_v38 }
  0x4b   : > { %1648 = vmatpush1.bf16.msra.mxu0 %v6529_v9  ;;  %1699 = vmatpush1.bf16.msra.mxu1 %v6532_v10  ;;  %v1405_v9 = vand.u32 %v6589_v4, %v7408_v29  ;;  %v6594_v10 = vld [vmem:[%s7380_s10 + $0x44] ss:$100 sps:$4 sm:$0xff]  }
  0x4c   : > { %1649 = vmatprep.subr.bf16.mxu0 %v6537_v11  ;;  %1700 = vmatprep.subr.bf16.mxu1 %v6540_v12  ;;  %v1411_v11 = vand.u32 %v6655_v7, %v7408_v29  ;;  %v6661_v12 = vld [vmem:[%s7380_s10 + $0x4c] ss:$100 sps:$4 sm:$0xff]   ;;  %v6727_v4 = vld [vmem:[%s7380_s10 + $0x444] ss:$100 sps:$4 sm:$0xff]   ;;  %v1432_v7 = vand.u32 %v6642_v2, %v7408_v29  ;;  %v6718_v2 = vld [vmem:[%s9122_s2 + $0x74] ss:$8 sps:$4 sm:$0xff]  }
  0x4d   : > { %1638 = vmatprep.mubr.bf16.mxu1 %v7314_v0  ;;  %1587 = vmatprep.mubr.bf16.mxu0 %v7314_v0 }
  0x4f   : > { %1650 = vmatpush1.bf16.msra.mxu0 %v6535_v13  ;;  %1701 = vmatpush1.bf16.msra.mxu1 %v6538_v14  ;;  %v6592_v13 = vld [vmem:[%s7380_s10 + $0x40] ss:$100 sps:$4 sm:$0xff]   ;;  %v6597_v14 = vld [vmem:[%s7380_s10 + $0x10c] ss:$100 sps:$4 sm:$0xff]  }
  0x50   : > { %1651 = vmatprep.subr.bf16.mxu0 %v6543_v15  ;;  %1702 = vmatprep.subr.bf16.mxu1 %v6546_v16  ;;  %v6659_v15 = vld [vmem:[%s7380_s10 + $0x48] ss:$100 sps:$4 sm:$0xff]   ;;  %v6665_v16 = vld [vmem:[%s7380_s10 + $0x114] ss:$100 sps:$4 sm:$0xff]  }
  0x52   : > { %5787 = vmatmul.mubr.msk.bf16.gmra.mrb[12].mxu1 %vm1357_vm2, %v7439_v47  ;;  %5785 = vmatmul.mubr.msk.bf16.gmra.mrb[12].mxu0 %vm1357_vm2, %v7439_v47 }
  0x53   : > { %1652 = vmatpush1.bf16.msra.mxu0 %v6541_v17  ;;  %1703 = vmatpush1.bf16.msra.mxu1 %v6544_v18  ;;  %v6595_v17 = vld [vmem:[%s7380_s10 + $0x108] ss:$100 sps:$4 sm:$0xff]   ;;  %v6600_v18 = vld [vmem:[%s7380_s10 + $0x1d4] ss:$100 sps:$4 sm:$0xff]  }
  0x54   : > { %1653 = vmatprep.subr.bf16.mxu0 %v6549_v19  ;;  %1704 = vmatprep.subr.bf16.mxu1 %v6552_v20  ;;  %v6663_v19 = vld [vmem:[%s7380_s10 + $0x110] ss:$100 sps:$4 sm:$0xff]   ;;  %v6669_v20 = vld [vmem:[%s7380_s10 + $0x1dc] ss:$100 sps:$4 sm:$0xff]  }
  0x55   : > { %1730 = vmatprep.mubr.bf16.mxu1 %v7314_v0  ;;  %1679 = vmatprep.mubr.bf16.mxu0 %v7314_v0 }
  0x57   : > { %1654 = vmatpush1.bf16.msra.mxu0 %v6547_v21  ;;  %1705 = vmatpush1.bf16.msra.mxu1 %v6550_v22  ;;  %v6598_v21 = vld [vmem:[%s7380_s10 + $0x1d0] ss:$100 sps:$4 sm:$0xff]   ;;  %v6603_v22 = vld [vmem:[%s7380_s10 + $0x29c] ss:$100 sps:$4 sm:$0xff]  }
  0x58   : > { %1655 = vmatprep.subr.bf16.mxu0 %v6555_v23  ;;  %1706 = vmatprep.subr.bf16.mxu1 %v6558_v24  ;;  %v6667_v23 = vld [vmem:[%s7380_s10 + $0x1d8] ss:$100 sps:$4 sm:$0xff]   ;;  %v6673_v24 = vld [vmem:[%s7380_s10 + $0x2a4] ss:$100 sps:$4 sm:$0xff]  }
  0x5b   : > { %1656 = vmatpush1.bf16.msra.mxu0 %v6553_v25  ;;  %1707 = vmatpush1.bf16.msra.mxu1 %v6556_v26  ;;  %v6601_v25 = vld [vmem:[%s7380_s10 + $0x298] ss:$100 sps:$4 sm:$0xff]   ;;  %v6606_v26 = vld [vmem:[%s7380_s10 + $0x364] ss:$100 sps:$4 sm:$0xff]  }
  0x5c   : > { %1657 = vmatprep.subr.bf16.mxu0 %v6561_v27  ;;  %1708 = vmatprep.subr.bf16.mxu1 %v6564_v28  ;;  %v6604_v27 = vld [vmem:[%s7380_s10 + $0x360] ss:$100 sps:$4 sm:$0xff]  }
  0x5d   : > { %v6671_v28 = vld [vmem:[%s7380_s10 + $0x2a0] ss:$100 sps:$4 sm:$0xff]  }
  0x5f   : > { %1658 = vmatpush1.bf16.msra.mxu0 %v6559_v32  ;;  %1709 = vmatpush1.bf16.msra.mxu1 %v6562_v33  ;;  %v6612_v32 = vld [vmem:[%s7380_s10 + $0x4f4] ss:$100 sps:$4 sm:$0x7f]   ;;  %v6677_v33 = vld [vmem:[%s7380_s10 + $0x368] ss:$100 sps:$4 sm:$0xff]  }
  0x60   : > { %1659 = vmatprep.subr.bf16.mxu0 %v1396_v36  ;;  %1710 = vmatprep.subr.bf16.mxu1 %v1402_v37  ;;  %v6607_v36 = vld [vmem:[%s7380_s10 + $0x428] ss:$100 sps:$4 sm:$0xff]   ;;  %v6610_v37 = vld [vmem:[%s7380_s10 + $0x4f0] ss:$100 sps:$4 sm:$0x7f]  }
  0x63   : > { %1660 = vmatpush1.bf16.msra.mxu0 %v1393_v39  ;;  %1711 = vmatpush1.bf16.msra.mxu1 %v1399_v40  ;;  %v1420_v39 = vand.u32 %v6612_v32, %v7408_v29  ;;  %v6683_v40 = vld [vmem:[%s7380_s10 + $0x430] ss:$100 sps:$4 sm:$0xff]   ;;  %v6761_v32 = vld [vmem:[%s9122_s2 + $0x540] ss:$8 sps:$4 sm:$0xff]  }
  0x64   : > { %1749 = vmatprep.subr.bf16.mxu0 %v6573_v41  ;;  %1800 = vmatprep.subr.bf16.mxu1 %v6627_v42  ;;  %v6689_v41 = vld [vmem:[%s7380_s10 + $0x4f8] ss:$100 sps:$4 sm:$0x7f]   ;;  %v1426_v42 = vand.u32 %v6691_v35, %v7408_v29 }
  0x65   : > { %v6767_v35 = vld [vmem:[%s9122_s2 + $0x550] ss:$8 sps:$4 sm:$0xff]  }
  0x66   : > { %5790 = vmatmul.mubr.msk.bf16.vlgmr.msra.gmra.mrb[16].mxu1 %vm1357_vm2, %v7421_v38  ;;  %5788 = vmatmul.mubr.msk.bf16.vlgmr.msra.gmra.mrb[16].mxu0 %vm1357_vm2, %v7421_v38 }
  0x67   : > { %1750 = vmatpush1.bf16.msra.mxu0 %v6571_v43  ;;  %1689 = vmatprep.mubr.bf16.mxu0 %v7314_v0  ;;  %v1417_v43 = vand.u32 %v6610_v37, %v7408_v29  ;;  %v6676_v37 = vld [vmem:[%s9122_s2 + $0x4] ss:$8 sps:$4 sm:$0xff]  }
  0x68   : > { %1751 = vmatprep.subr.bf16.mxu0 %v6576_v44  ;;  %1740 = vmatprep.mubr.bf16.mxu1 %v7314_v0  ;;  %v6615_v44 = vld [vmem:[%s7380_s10 + $0x54] ss:$100 sps:$4 sm:$0xff]  }
  0x69   : > { %1801 = vmatpush1.bf16.msra.mxu1 %v6625_v45  ;;  %v1423_v45 = vand.u32 %v6689_v41, %v7408_v29  ;;  %v6682_v41 = vld [vmem:[%s9122_s2 + $0x14] ss:$8 sps:$4 sm:$0xff]  }
  0x6a   : > { %1802 = vmatprep.subr.bf16.mxu1 %v6633_v46  ;;  %v6697_v46 = vld [vmem:[%s7380_s10 + $0x5c] ss:$100 sps:$4 sm:$0xff]  }
  0x6b   : > { %1752 = vmatpush1.bf16.msra.mxu0 %v6574_v48  ;;  %v6613_v48 = vld [vmem:[%s7380_s10 + $0x50] ss:$100 sps:$4 sm:$0xff]  }
  0x6c   : > { %1753 = vmatprep.subr.bf16.mxu0 %v6579_v49  ;;  %v6618_v49 = vld [vmem:[%s7380_s10 + $0x11c] ss:$100 sps:$4 sm:$0xff]  }
  0x6d   : > { %1803 = vmatpush1.bf16.msra.mxu1 %v6631_v50  ;;  %v6695_v50 = vld [vmem:[%s7380_s10 + $0x58] ss:$100 sps:$4 sm:$0xff]  }
  0x6e   : > { %5789 = vmatmul.mubr.msk.bf16.gmra.mrb[20].mxu0 %vm1357_vm2, %v7439_v47  ;;  %5791 = vmatmul.mubr.msk.bf16.gmra.mrb[20].mxu1 %vm1357_vm2, %v7439_v47 }
  0x6f   : > { %1754 = vmatpush1.bf16.msra.mxu0 %v6577_v51  ;;  %1781 = vmatprep.mubr.bf16.mxu0 %v7314_v0  ;;  %v6703_v51 = vld [vmem:[%s7380_s10 + $0x124] ss:$100 sps:$4 sm:$0xff]  }
  0x70   : > { %1755 = vmatprep.subr.bf16.mxu0 %v6582_v52  ;;  %1804 = vmatprep.subr.bf16.mxu1 %v6639_v53  ;;  %v6616_v52 = vld [vmem:[%s7380_s10 + $0x118] ss:$100 sps:$4 sm:$0xff]   ;;  %v6621_v53 = vld [vmem:[%s7380_s10 + $0x1e4] ss:$100 sps:$4 sm:$0xff]  }
  0x71   : > { %1805 = vmatpush1.bf16.msra.mxu1 %v6637_v54  ;;  %1832 = vmatprep.mubr.bf16.mxu1 %v7314_v0  ;;  %v6701_v54 = vld [vmem:[%s7380_s10 + $0x120] ss:$100 sps:$4 sm:$0xff]  }
  0x72   : > { %1806 = vmatprep.subr.bf16.mxu1 %v6645_v55  ;;  %v6709_v55 = vld [vmem:[%s7380_s10 + $0x1ec] ss:$100 sps:$4 sm:$0xff]  }
  0x73   : > { %1756 = vmatpush1.bf16.msra.mxu0 %v6580_v56  ;;  %v6619_v56 = vld [vmem:[%s7380_s10 + $0x1e0] ss:$100 sps:$4 sm:$0xff]  }
  0x74   : > { %1757 = vmatprep.subr.bf16.mxu0 %v6585_v57  ;;  %v6624_v57 = vld [vmem:[%s7380_s10 + $0x2ac] ss:$100 sps:$4 sm:$0xff]  }
  0x75   : > { %1807 = vmatpush1.bf16.msra.mxu1 %v6643_v59  ;;  %v6622_v59 = vld [vmem:[%s7380_s10 + $0x2a8] ss:$100 sps:$4 sm:$0xff]  }
  0x76   : > { %1808 = vmatprep.subr.bf16.mxu1 %v6649_v60  ;;  %v6630_v60 = vld [vmem:[%s7380_s10 + $0x374] ss:$100 sps:$4 sm:$0xff]  }
  0x77   : > { %1758 = vmatpush1.bf16.msra.mxu0 %v6583_v58  ;;  %v6707_v58 = vld [vmem:[%s7380_s10 + $0x1e8] ss:$100 sps:$4 sm:$0xff]  }
  0x78   : > { %1759 = vmatprep.subr.bf16.mxu0 %v6588_v61  ;;  %v6713_v61 = vld [vmem:[%s7380_s10 + $0x2b0] ss:$100 sps:$4 sm:$0xff]  }
  0x79   : > { %1809 = vmatpush1.bf16.msra.mxu1 %v6647_v63  ;;  %v6628_v63 = vld [vmem:[%s7380_s10 + $0x370] ss:$100 sps:$4 sm:$0xff]  }
  0x7a   : > { %1810 = vmatprep.subr.bf16.mxu1 %v6653_v1  ;;  %v6636_v1 = vld [vmem:[%s7380_s10 + $0x43c] ss:$100 sps:$4 sm:$0xff]  }
  0x7b   : > { %1760 = vmatpush1.bf16.msra.mxu0 %v6586_v3  ;;  %v6719_v3 = vld [vmem:[%s7380_s10 + $0x378] ss:$100 sps:$4 sm:$0xff]  }
  0x7c   : > { %1761 = vmatprep.subr.bf16.mxu0 %v1408_v5  ;;  %v6634_v5 = vld [vmem:[%s7380_s10 + $0x438] ss:$100 sps:$4 sm:$0xff]  }
  0x7d   : > { %1811 = vmatpush1.bf16.msra.mxu1 %v6651_v6  ;;  %v6640_v6 = vld [vmem:[%s7380_s10 + $0x500] ss:$100 sps:$4 sm:$0x7f]  }
  0x7e   : > { %1812 = vmatprep.subr.bf16.mxu1 %v1414_v8  ;;  %v6725_v8 = vld [vmem:[%s7380_s10 + $0x440] ss:$100 sps:$4 sm:$0xff]  }
  0x7f   : > { %1762 = vmatpush1.bf16.msra.mxu0 %v1405_v9  ;;  %v6731_v9 = vld [vmem:[%s7380_s10 + $0x508] ss:$100 sps:$4 sm:$0x7f]  }
  0x80   : > { %1851 = vmatprep.subr.bf16.mxu0 %v6594_v10 }
  0x81   : > { %1813 = vmatpush1.bf16.msra.mxu1 %v1411_v11  ;;  %v1429_v11 = vand.u32 %v6640_v6, %v7408_v29  ;;  %v6821_v6 = vld [vmem:[%s9122_s2 + $0x5e0] ss:$8 sps:$4 sm:$0xff]  }
  0x82   : > { %5792 = vmatmul.mubr.msk.bf16.vlgmr.msra.gmra.mrb[24].mxu0 %vm1357_vm2, %v7421_v38  ;;  %1902 = vmatprep.subr.bf16.mxu1 %v6661_v12  ;;  %v6646_v12 = vld [vmem:[%s7380_s10 + $0x60] ss:$100 sps:$4 sm:$0xff]  }
  0x83   : > { %1852 = vmatpush1.bf16.msra.mxu0 %v6592_v13  ;;  %1791 = vmatprep.mubr.bf16.mxu0 %v7314_v0  ;;  %v1435_v13 = vand.u32 %v6731_v9, %v7408_v29  ;;  %v6730_v9 = vld [vmem:[%s9122_s2 + $0x94] ss:$8 sps:$4 sm:$0xff]  }
  0x84   : > { %1853 = vmatprep.subr.bf16.mxu0 %v6597_v14  ;;  %5794 = vmatmul.mubr.msk.bf16.vlgmr.msra.gmra.mrb[24].mxu1 %vm1357_vm2, %v7421_v38  ;;  %v6739_v14 = vld [vmem:[%s9122_s2 + $0x504] ss:$8 sps:$4 sm:$0xff]  }
  0x85   : > { %1903 = vmatpush1.bf16.msra.mxu1 %v6659_v15  ;;  %1842 = vmatprep.mubr.bf16.mxu1 %v7314_v0  ;;  %v6650_v15 = vld [vmem:[%s7380_s10 + $0x128] ss:$100 sps:$4 sm:$0xff]  }
  0x86   : > { %1904 = vmatprep.subr.bf16.mxu1 %v6665_v16  ;;  %v6737_v16 = vld [vmem:[%s9122_s2 + $0x500] ss:$8 sps:$4 sm:$0xff]  }
  0x87   : > { %1854 = vmatpush1.bf16.msra.mxu0 %v6595_v17  ;;  %v7304_v17 = vld [vmem:[%s9121_s1] sm:$0xff]  }
  0x88   : > { %1855 = vmatprep.subr.bf16.mxu0 %v6600_v18  ;;  %v6745_v18 = vld [vmem:[%s9122_s2 + $0x514] ss:$8 sps:$4 sm:$0xff]  }
  0x89   : > { %1905 = vmatpush1.bf16.msra.mxu1 %v6663_v19  ;;  %v6654_v19 = vld [vmem:[%s7380_s10 + $0x1f0] ss:$100 sps:$4 sm:$0xff]  }
  0x8a   : > { %5793 = vmatmul.mubr.msk.bf16.gmra.mrb[28].mxu0 %vm1357_vm2, %v7439_v47  ;;  %1906 = vmatprep.subr.bf16.mxu1 %v6669_v20  ;;  %v6743_v20 = vld [vmem:[%s9122_s2 + $0x510] ss:$8 sps:$4 sm:$0xff]  }
  0x8b   : > { %1856 = vmatpush1.bf16.msra.mxu0 %v6598_v21  ;;  %1883 = vmatprep.mubr.bf16.mxu0 %v7314_v0  ;;  %v6751_v21 = vld [vmem:[%s9122_s2 + $0x524] ss:$8 sps:$4 sm:$0xff]  }
  0x8c   : > { %1857 = vmatprep.subr.bf16.mxu0 %v6603_v22  ;;  %5795 = vmatmul.mubr.msk.bf16.gmra.mrb[28].mxu1 %vm1357_vm2, %v7439_v47  ;;  %v6658_v22 = vld [vmem:[%s7380_s10 + $0x2b8] ss:$100 sps:$4 sm:$0xff]  }
  0x8d   : > { %1907 = vmatpush1.bf16.msra.mxu1 %v6667_v23  ;;  %1934 = vmatprep.mubr.bf16.mxu1 %v7314_v0  ;;  %v6749_v23 = vld [vmem:[%s9122_s2 + $0x520] ss:$8 sps:$4 sm:$0xff]  }
  0x8e   : > { %1908 = vmatprep.subr.bf16.mxu1 %v6673_v24  ;;  %v6757_v24 = vld [vmem:[%s9122_s2 + $0x534] ss:$8 sps:$4 sm:$0xff]  }
  0x8f   : > { %1858 = vmatpush1.bf16.msra.mxu0 %v6601_v25  ;;  %v7305_v25 = vld [vmem:[%s9121_s1 + $0x8] ss:$0 sps:$4 sm:$0x33]  }
  0x90   : > { %1859 = vmatprep.subr.bf16.mxu0 %v6606_v26  ;;  %v6662_v26 = vld [vmem:[%s7380_s10 + $0x380] ss:$100 sps:$4 sm:$0xff]  }
  0x91   : > { %1909 = vmatpush1.bf16.msra.mxu1 %v6671_v28  ;;  %v6763_v28 = vld [vmem:[%s9122_s2 + $0x544] ss:$8 sps:$4 sm:$0xff]  }
  0x92   : > { %1910 = vmatprep.subr.bf16.mxu1 %v6679_v30  ;;  %v6666_v30 = vld [vmem:[%s7380_s10 + $0x448] ss:$100 sps:$4 sm:$0xff]  }
  0x93   : > { %1860 = vmatpush1.bf16.msra.mxu0 %v6604_v27  ;;  %v6755_v27 = vld [vmem:[%s9122_s2 + $0x530] ss:$8 sps:$4 sm:$0xff]  }
  0x94   : > { %1861 = vmatprep.subr.bf16.mxu0 %v6609_v31  ;;  %v6670_v31 = vld [vmem:[%s7380_s10 + $0x510] ss:$100 sps:$4 sm:$0x7f]  }
  0x95   : > { %1911 = vmatpush1.bf16.msra.mxu1 %v6677_v33  ;;  %v6769_v33 = vld [vmem:[%s9122_s2 + $0x554] ss:$8 sps:$4 sm:$0xff]  }
  0x96   : > { %1912 = vmatprep.subr.bf16.mxu1 %v6685_v34  ;;  %v1441_v34 = vand.u32 %v6670_v31, %v7408_v29  ;;  %v6754_v31 = vld [vmem:[%s9122_s2 + $0xd4] ss:$8 sps:$4 sm:$0xff]  }
  0x97   : > { %1862 = vmatpush1.bf16.msra.mxu0 %v6607_v36  ;;  %v6775_v36 = vld [vmem:[%s9122_s2 + $0x564] ss:$8 sps:$4 sm:$0xff]  }
  0x98   : > { %1863 = vmatprep.subr.bf16.mxu0 %v1420_v39  ;;  %v6781_v39 = vld [vmem:[%s9122_s2 + $0x574] ss:$8 sps:$4 sm:$0xff]  }
  0x99   : > { %1913 = vmatpush1.bf16.msra.mxu1 %v6683_v40  ;;  %v6674_v40 = vld [vmem:[%s9122_s2] ss:$8 sps:$4 sm:$0xff]  }
  0x9a   : > { %1914 = vmatprep.subr.bf16.mxu1 %v1426_v42  ;;  %v6680_v42 = vld [vmem:[%s9122_s2 + $0x10] ss:$8 sps:$4 sm:$0xff]  }
  0x9b   : > { %1864 = vmatpush1.bf16.msra.mxu0 %v1417_v43  ;;  %v6779_v43 = vld [vmem:[%s9122_s2 + $0x570] ss:$8 sps:$4 sm:$0xff]  }
  0x9c   : > { %1953 = vmatprep.subr.bf16.mxu0 %v6615_v44  ;;  %v6787_v44 = vld [vmem:[%s9122_s2 + $0x584] ss:$8 sps:$4 sm:$0xff]  }
  0x9d   : > { %1915 = vmatpush1.bf16.msra.mxu1 %v1423_v45  ;;  %v6688_v45 = vld [vmem:[%s9122_s2 + $0x24] ss:$8 sps:$4 sm:$0xff]  }
  0x9e   : > { %5796 = vmatmul.mubr.msk.bf16.vlgmr.msra.gmra.mrb[32].mxu0 %vm1357_vm2, %v7421_v38  ;;  %2004 = vmatprep.subr.bf16.mxu1 %v6697_v46  ;;  %v6785_v46 = vld [vmem:[%s9122_s2 + $0x580] ss:$8 sps:$4 sm:$0xff]  }
  0x9f   : > { %1954 = vmatpush1.bf16.msra.mxu0 %v6613_v48  ;;  %1893 = vmatprep.mubr.bf16.mxu0 %v7314_v0  ;;  %v6686_v48 = vld [vmem:[%s9122_s2 + $0x20] ss:$8 sps:$4 sm:$0xff]  }
  0xa0   : > { %1955 = vmatprep.subr.bf16.mxu0 %v6618_v49  ;;  %5798 = vmatmul.mubr.msk.bf16.vlgmr.msra.gmra.mrb[32].mxu1 %vm1357_vm2, %v7421_v38  ;;  %v6715_v38 = vld [vmem:[%s7380_s10 + $0x2b4] ss:$100 sps:$4 sm:$0xff]  }
  0xa1   : > { %2005 = vmatpush1.bf16.msra.mxu1 %v6695_v50  ;;  %1944 = vmatprep.mubr.bf16.mxu1 %v7314_v0  ;;  %v6793_v49 = vld [vmem:[%s9122_s2 + $0x594] ss:$8 sps:$4 sm:$0xff]  }
  0xa2   : > { %2006 = vmatprep.subr.bf16.mxu1 %v6703_v51  ;;  %v6694_v50 = vld [vmem:[%s9122_s2 + $0x34] ss:$8 sps:$4 sm:$0xff]   ;;  %v6692_v51 = vld [vmem:[%s9122_s2 + $0x30] ss:$8 sps:$4 sm:$0xff]  }
  0xa3   : > { %1956 = vmatpush1.bf16.msra.mxu0 %v6616_v52  ;;  %v6791_v52 = vld [vmem:[%s9122_s2 + $0x590] ss:$8 sps:$4 sm:$0xff]  }
  0xa4   : > { %1957 = vmatprep.subr.bf16.mxu0 %v6621_v53  ;;  %v6799_v53 = vld [vmem:[%s9122_s2 + $0x5a4] ss:$8 sps:$4 sm:$0xff]  }
  0xa5   : > { %2007 = vmatpush1.bf16.msra.mxu1 %v6701_v54  ;;  %v6700_v54 = vld [vmem:[%s9122_s2 + $0x44] ss:$8 sps:$4 sm:$0xff]  }
  0xa6   : > { %5797 = vmatmul.mubr.msk.bf16.gmra.mrb[36].mxu0 %vm1357_vm2, %v7439_v47  ;;  %2008 = vmatprep.subr.bf16.mxu1 %v6709_v55  ;;  %v6797_v55 = vld [vmem:[%s9122_s2 + $0x5a0] ss:$8 sps:$4 sm:$0xff]  }
  0xa7   : > { %1958 = vmatpush1.bf16.msra.mxu0 %v6619_v56  ;;  %1985 = vmatprep.mubr.bf16.mxu0 %v7314_v0  ;;  %v6698_v56 = vld [vmem:[%s9122_s2 + $0x40] ss:$8 sps:$4 sm:$0xff]  }
  0xa8   : > { %1959 = vmatprep.subr.bf16.mxu0 %v6624_v57  ;;  %5799 = vmatmul.mubr.msk.bf16.gmra.mrb[36].mxu1 %vm1357_vm2, %v7439_v47  ;;  %v6733_v47 = vld [vmem:[%s7380_s10 + $0x50c] ss:$100 sps:$4 sm:$0x7f]   ;;  %v6805_v57 = vld [vmem:[%s9122_s2 + $0x5b4] ss:$8 sps:$4 sm:$0xff]   ;;  %s6429_s10 = smul.u32 24, %s9130_s28 }
  0xa9   : > { %2009 = vmatpush1.bf16.msra.mxu1 %v6707_v58  ;;  %2036 = vmatprep.mubr.bf16.mxu1 %v7314_v0  ;;  %v1438_v10 = vand.u32 %v6733_v47, %v7408_v29  ;;  %v6773_v29 = vld [vmem:[%s9122_s2 + $0x560] ss:$8 sps:$4 sm:$0xff]   ;;  %v6706_v58 = vld [vmem:[%s9122_s2 + $0x54] ss:$8 sps:$4 sm:$0xff]   ;;  %v6823_v47 = vld [vmem:[%s9122_s2 + $0x5e4] ss:$8 sps:$4 sm:$0xff]  }
  0xaa   : > { %2010 = vmatprep.subr.bf16.mxu1 %v6715_v38  ;;  %v6803_v38 = vld [vmem:[%s9122_s2 + $0x5b0] ss:$8 sps:$4 sm:$0xff]   ;;  %s305_s30 = scalar_lea.vmem %s9128_s8, %s6429_s10 }
  0xab   : > { %1960 = vmatpush1.bf16.msra.mxu0 %v6622_v59  ;;  %v6704_v59 = vld [vmem:[%s9122_s2 + $0x50] ss:$8 sps:$4 sm:$0xff]  }
  0xac   : > { %1961 = vmatprep.subr.bf16.mxu0 %v6630_v60  ;;  %v6811_v60 = vld [vmem:[%s9122_s2 + $0x5c4] ss:$8 sps:$4 sm:$0xff]  }
  0xad   : > { %2011 = vmatpush1.bf16.msra.mxu1 %v6713_v61  ;;  %v6712_v61 = vld [vmem:[%s9122_s2 + $0x64] ss:$8 sps:$4 sm:$0xff]  }
  0xae   : > { %2012 = vmatprep.subr.bf16.mxu1 %v6721_v62  ;;  %v6809_v62 = vld [vmem:[%s9122_s2 + $0x5c0] ss:$8 sps:$4 sm:$0xff]  }
  0xaf   : > { %1962 = vmatpush1.bf16.msra.mxu0 %v6628_v63  ;;  %v6710_v63 = vld [vmem:[%s9122_s2 + $0x60] ss:$8 sps:$4 sm:$0xff]  }
  0xb0   : > { %1963 = vmatprep.subr.bf16.mxu0 %v6636_v1  ;;  %v6817_v1 = vld [vmem:[%s9122_s2 + $0x5d4] ss:$8 sps:$4 sm:$0xff]  }
  0xb1   : > { %2013 = vmatpush1.bf16.msra.mxu1 %v6719_v3  ;;  %v6815_v3 = vld [vmem:[%s9122_s2 + $0x5d0] ss:$8 sps:$4 sm:$0xff]  }
  0xb2   : > { %2014 = vmatprep.subr.bf16.mxu1 %v6727_v4  ;;  %v6716_v4 = vld [vmem:[%s9122_s2 + $0x70] ss:$8 sps:$4 sm:$0xff]  }
  0xb3   : > { %1964 = vmatpush1.bf16.msra.mxu0 %v6634_v5  ;;  %v6724_v5 = vld [vmem:[%s9122_s2 + $0x84] ss:$8 sps:$4 sm:$0xff]  }
  0xb4   : > { %1965 = vmatprep.subr.bf16.mxu0 %v1432_v7  ;;  %v6722_v7 = vld [vmem:[%s9122_s2 + $0x80] ss:$8 sps:$4 sm:$0xff]  }
  0xb5   : > { %2015 = vmatpush1.bf16.msra.mxu1 %v6725_v8  ;;  %v6829_v8 = vld [vmem:[%s9122_s2 + $0x5f4] ss:$8 sps:$4 sm:$0xff]  }
  0xb6   : > { %2016 = vmatprep.subr.bf16.mxu1 %v1438_v10  ;;  %v6827_v10 = vld [vmem:[%s9122_s2 + $0x5f0] ss:$8 sps:$4 sm:$0xff]  }
  0xb7   : > { %1966 = vmatpush1.bf16.msra.mxu0 %v1429_v11  ;;  %v6728_v11 = vld [vmem:[%s9122_s2 + $0x90] ss:$8 sps:$4 sm:$0xff]  }
  0xb8   : > { %6238 = vmatprep.subr.bf16.mxu0 %v6646_v12 }
  0xb9   : > { %2017 = vmatpush1.bf16.msra.mxu1 %v1435_v13  ;;  %v6736_v13 = vld [vmem:[%s9122_s2 + $0xa4] ss:$8 sps:$4 sm:$0xff]  }
  0xba   : > { %5800 = vmatmul.mubr.msk.bf16.vlgmr.msra.gmra.mrb[40].mxu0 %vm1357_vm2, %v7304_v17  ;;  %4895 = vmatprep.subr.bf16.mxu1 %v6739_v14  ;;  %v6734_v14 = vld [vmem:[%s9122_s2 + $0xa0] ss:$8 sps:$4 sm:$0xff]  }
  0xbb   : > { %6239 = vmatpush3.bf16.msra.mxu0 %v6646_v12  ;;  %1995 = vmatprep.mubr.bf16.mxu0 %v7314_v0  ;;  %v6835_v12 = vld [vmem:[%s9122_s2 + $0x604] ss:$8 sps:$4 sm:$0xff]  }
  0xbc   : > { %6240 = vmatprep.subr.bf16.mxu0 %v6650_v15  ;;  %5802 = vmatmul.mubr.msk.bf16.vlgmr.msra.gmra.mrb[40].mxu1 %vm1357_vm2, %v7304_v17 }
  0xbd   : > { %4896 = vmatpush1.bf16.msra.mxu1 %v6737_v16  ;;  %2046 = vmatprep.mubr.bf16.mxu1 %v7314_v0  ;;  %v6740_v16 = vld [vmem:[%s9122_s2 + $0xb0] ss:$8 sps:$4 sm:$0xff]  }
  0xbe   : > { %4897 = vmatprep.subr.bf16.mxu1 %v6745_v18 }
  0xbf   : > { %6241 = vmatpush3.bf16.msra.mxu0 %v6650_v15  ;;  %v6742_v15 = vld [vmem:[%s9122_s2 + $0xb4] ss:$8 sps:$4 sm:$0xff]  }
  0xc0   : > { %6242 = vmatprep.subr.bf16.mxu0 %v6654_v19 }
  0xc1   : > { %4898 = vmatpush1.bf16.msra.mxu1 %v6743_v20 }
  0xc2   : > { %5801 = vmatmul.mubr.msk.bf16.gmra.mrb[44].mxu0 %vm1357_vm2, %v7305_v25  ;;  %4899 = vmatprep.subr.bf16.mxu1 %v6751_v21 }
  0xc3   : > { %6243 = vmatpush3.bf16.msra.mxu0 %v6654_v19  ;;  %6252 = vmatprep.mubr.msk.bf16.mxu0 %vm1357_vm2, %v7304_v17  ;;  %v6748_v17 = vld [vmem:[%s9122_s2 + $0xc4] ss:$8 sps:$4 sm:$0xff]  }
  0xc4   : > { %6244 = vmatprep.subr.bf16.mxu0 %v6658_v22  ;;  %5803 = vmatmul.mubr.msk.bf16.gmra.mrb[44].mxu1 %vm1357_vm2, %v7305_v25 }
  0xc5   : > { %4900 = vmatpush1.bf16.msra.mxu1 %v6749_v23 }
  0xc6   : > { %4901 = vmatprep.subr.bf16.mxu1 %v6757_v24 }
  0xc7   : > { %6245 = vmatpush3.bf16.msra.mxu0 %v6658_v22  ;;  %v6746_v22 = vld [vmem:[%s9122_s2 + $0xc0] ss:$8 sps:$4 sm:$0xff]  }
  0xc8   : > { %6246 = vmatprep.subr.bf16.mxu0 %v6662_v26 }
  0xc9   : > { %4902 = vmatpush1.bf16.msra.mxu1 %v6755_v27 }
  0xca   : > { %4903 = vmatprep.subr.bf16.mxu1 %v6763_v28 }
  0xcb   : > { %6247 = vmatpush3.bf16.msra.mxu0 %v6662_v26 }
  0xcc   : > { %6248 = vmatprep.subr.bf16.mxu0 %v6666_v30 }
  0xcd   : > { %4904 = vmatpush1.bf16.msra.mxu1 %v6761_v32 }
  0xce   : > { %4905 = vmatprep.subr.bf16.mxu1 %v6769_v33 }
  0xcf   : > { %6249 = vmatpush3.bf16.msra.mxu0 %v6666_v30 }
  0xd0   : > { %6250 = vmatprep.subr.bf16.mxu0 %v1441_v34 }
  0xd1   : > { %4906 = vmatpush1.bf16.msra.mxu1 %v6767_v35 }
  0xd2   : > { %4907 = vmatprep.subr.bf16.mxu1 %v6775_v36 }
  0xd3   : > { %6251 = vmatpush3.bf16.msra.mxu0 %v1441_v34 }
  0xd4   : > { %4640 = vmatprep.subr.bf16.mxu0 %v6676_v37 }
  0xd5   : > { %4908 = vmatpush1.bf16.msra.mxu1 %v6773_v29  ;;  %v6752_v29 = vld [vmem:[%s9122_s2 + $0xd0] ss:$8 sps:$4 sm:$0xff]  }
  0xd6   : > { %6253 = vmatmul.mubr.msk.bf16.vlgmr.msra.gmra.mrb[48].mxu0 %vm1357_vm2, %v7305_v25  ;;  %4909 = vmatprep.subr.bf16.mxu1 %v6781_v39 }
  0xd7   : > { %4641 = vmatpush1.bf16.msra.mxu0 %v6674_v40 }
  0xd8   : > { %4642 = vmatprep.subr.bf16.mxu0 %v6682_v41 }
  0xd9   : > { %4910 = vmatpush1.bf16.msra.mxu1 %v6779_v43 }
  0xda   : > { %4911 = vmatprep.subr.bf16.mxu1 %v6787_v44 }
  0xdb   : > { %4643 = vmatpush1.bf16.msra.mxu0 %v6680_v42  ;;  %v6760_v42 = vld [vmem:[%s9122_s2 + $0xe4] ss:$8 sps:$4 sm:$0xff]  }
  0xdc   : > { %4644 = vmatprep.subr.bf16.mxu0 %v6688_v45 }
  0xdd   : > { %4912 = vmatpush1.bf16.msra.mxu1 %v6785_v46 }
  0xde   : > { %4913 = vmatprep.subr.bf16.mxu1 %v6793_v49 }
  0xdf   : > { %4645 = vmatpush1.bf16.msra.mxu0 %v6686_v48  ;;  %v6758_v48 = vld [vmem:[%s9122_s2 + $0xe0] ss:$8 sps:$4 sm:$0xff]  }
  0xe0   : > { %4646 = vmatprep.subr.bf16.mxu0 %v6694_v50 }
  0xe1   : > { %4914 = vmatpush1.bf16.msra.mxu1 %v6791_v52 }
  0xe2   : > { %4915 = vmatprep.subr.bf16.mxu1 %v6799_v53 }
  0xe3   : > { %4647 = vmatpush1.bf16.msra.mxu0 %v6692_v51  ;;  %v6766_v51 = vld [vmem:[%s9122_s2 + $0xf4] ss:$8 sps:$4 sm:$0xff]  }
  0xe4   : > { %4648 = vmatprep.subr.bf16.mxu0 %v6700_v54  ;;  %v6764_v54 = vld [vmem:[%s9122_s2 + $0xf0] ss:$8 sps:$4 sm:$0xff]  }
  0xe5   : > { %4916 = vmatpush1.bf16.msra.mxu1 %v6797_v55 }
  0xe6   : > { %4917 = vmatprep.subr.bf16.mxu1 %v6805_v57  ;;  %v6770_v57 = vld [vmem:[%s9122_s2 + $0x100] ss:$8 sps:$4 sm:$0xff]  }
  0xe7   : > { %4649 = vmatpush1.bf16.msra.mxu0 %v6698_v56  ;;  %v6772_v56 = vld [vmem:[%s9122_s2 + $0x104] ss:$8 sps:$4 sm:$0xff]  }
  0xe8   : > { %4650 = vmatprep.subr.bf16.mxu0 %v6706_v58 }
  0xe9   : > { %4918 = vmatpush1.bf16.msra.mxu1 %v6803_v38  ;;  %v6778_v38 = vld [vmem:[%s9122_s2 + $0x114] ss:$8 sps:$4 sm:$0xff]  }
  0xea   : > { %4919 = vmatprep.subr.bf16.mxu1 %v6811_v60  ;;  %v6776_v60 = vld [vmem:[%s9122_s2 + $0x110] ss:$8 sps:$4 sm:$0xff]  }
  0xeb   : > { %4651 = vmatpush1.bf16.msra.mxu0 %v6704_v59 }
  0xec   : > { %4652 = vmatprep.subr.bf16.mxu0 %v6712_v61  ;;  %v6784_v61 = vld [vmem:[%s9122_s2 + $0x124] ss:$8 sps:$4 sm:$0xff]  }
  0xed   : > { %4920 = vmatpush1.bf16.msra.mxu1 %v6809_v62  ;;  %v6782_v62 = vld [vmem:[%s9122_s2 + $0x120] ss:$8 sps:$4 sm:$0xff]  }
  0xee   : > { %4921 = vmatprep.subr.bf16.mxu1 %v6817_v1  ;;  %v6790_v1 = vld [vmem:[%s9122_s2 + $0x134] ss:$8 sps:$4 sm:$0xff]  }
  0xef   : > { %4653 = vmatpush1.bf16.msra.mxu0 %v6710_v63 }
  0xf0   : > { %4654 = vmatprep.subr.bf16.mxu0 %v6718_v2 }
  0xf1   : > { %4922 = vmatpush1.bf16.msra.mxu1 %v6815_v3 }
  0xf2   : > { %4923 = vmatprep.subr.bf16.mxu1 %v6823_v47 }
  0xf3   : > { %4655 = vmatpush1.bf16.msra.mxu0 %v6716_v4 }
  0xf4   : > { %4656 = vmatprep.subr.bf16.mxu0 %v6724_v5  ;;  %v6788_v5 = vld [vmem:[%s9122_s2 + $0x130] ss:$8 sps:$4 sm:$0xff]  }
  0xf5   : > { %4924 = vmatpush1.bf16.msra.mxu1 %v6821_v6 }
  0xf6   : > { %4925 = vmatprep.subr.bf16.mxu1 %v6829_v8 }
  0xf7   : > { %4657 = vmatpush1.bf16.msra.mxu0 %v6722_v7 }
  0xf8   : > { %4658 = vmatprep.subr.bf16.mxu0 %v6730_v9 }
  0xf9   : > { %4926 = vmatpush1.bf16.msra.mxu1 %v6827_v10 }
  0xfa   : > { %4946 = vmatprep.subr.bf16.mxu1 %v6835_v12 }
  0xfb   : > { %4659 = vmatpush1.bf16.msra.mxu0 %v6728_v11 }
  0xfc   : > { %4660 = vmatprep.subr.bf16.mxu0 %v6736_v13  ;;  %v6796_v13 = vld [vmem:[%s9122_s2 + $0x144] ss:$8 sps:$4 sm:$0xff]  }
  0xff   : > { %4661 = vmatpush1.bf16.msra.mxu0 %v6734_v14 }
 0x100   : > { %4662 = vmatprep.subr.bf16.mxu0 %v6742_v15 }
 0x101   : > { %v1528_v18 = vpop.f32.mrb[0].mxu1  ;;  %v1477_v19 = vpop.f32.mrb[0].mxu0 }
 0x102   : > { %v2105_v20 = vmax.f32 %v1528_v18, 0.0  ;;  %v1530_v21 = vpop.f32.mrb[1].mxu1  ;;  %v2103_v23 = vmax.f32 %v1477_v19, 0.0  ;;  %v1479_v24 = vpop.f32.mrb[1].mxu0 }
 0x103   : > { %v1532_v25 = vpop.f32.mrb[2].mxu1  ;;  %4663 = vmatpush1.bf16.msra.mxu0 %v6740_v16  ;;  %v2104_v26 = vmax.f32 %v1479_v24, 0.0  ;;  %v1481_v27 = vpop.f32.mrb[2].mxu0  ;;  %v2106_v34 = vmax.f32 %v1530_v21, 0.0  ;;  %v6802_v24 = vld [vmem:[%s9122_s2 + $0x154] ss:$8 sps:$4 sm:$0xff]  }
 0x104   : > { %v2130_v28 = vmax.f32 %v1532_v25, 0.0  ;;  %v1534_v30 = vpop.f32.mrb[3].mxu1  ;;  %4664 = vmatprep.subr.bf16.mxu0 %v6748_v17  ;;  %v2128_v32 = vmax.f32 %v1481_v27, 0.0  ;;  %v1483_v33 = vpop.f32.mrb[3].mxu0 }
 0x105   : > { %v2131_v35 = vmax.f32 %v1534_v30, 0.0  ;;  %v2129_v36 = vmax.f32 %v1483_v33, 0.0  ;;  %v6800_v30 = vld [vmem:[%s9122_s2 + $0x150] ss:$8 sps:$4 sm:$0xff]   ;;  %v6808_v33 = vld [vmem:[%s9122_s2 + $0x164] ss:$8 sps:$4 sm:$0xff]  }
 0x106   : > { %v7848_v37 = vpack.c.bf16 %v2130_v28, %v2105_v20  ;;  %v2178_v39 = vpack.c.bf16 %v2128_v32, %v2103_v23  ;;  %v6794_v20 = vld [vmem:[%s9122_s2 + $0x140] ss:$8 sps:$4 sm:$0xff]  }
 0x107   : > { %v2181_v40 = vpack.c.bf16 %v2131_v35, %v2106_v34  ;;  %4665 = vmatpush1.bf16.msra.mxu0 %v6746_v22  ;;  %v2179_v41 = vpack.c.bf16 %v2129_v36, %v2104_v26  ;;  %v6806_v36 = vld [vmem:[%s9122_s2 + $0x160] ss:$8 sps:$4 sm:$0xff]  }
 0x108   : > { %4666 = vmatprep.subr.bf16.mxu0 %v6754_v31 }
 0x109   : > { %v7856_v43 = vpop.f32.mrb[4].mxu1  ;;  %4672 = vmatprep.mubr.bf16.mxu0 %v2179_v41  ;;  %v1487_v44 = vpop.f32.mrb[4].mxu0  ;;  %v6818_v41 = vld [vmem:[%s9122_s2 + $0x180] ss:$8 sps:$4 sm:$0xff]  }
 0x10a   : > { %v7858_v45 = vpop.f32.mrb[5].mxu1  ;;  %v1489_v46 = vpop.f32.mrb[5].mxu0  ;;  %v2153_v59 = vmax.f32 %v1487_v44, 0.0  ;;  %v6824_v44 = vld [vmem:[%s9122_s2 + $0x190] ss:$8 sps:$4 sm:$0xff]  }
 0x10b   : > { %4667 = vmatpush1.bf16.msra.mxu0 %v6752_v29  ;;  %v1542_v49 = vpop.f32.mrb[6].mxu1  ;;  %v1491_v50 = vpop.f32.mrb[6].mxu0  ;;  %v2154_v55 = vmax.f32 %v1489_v46, 0.0  ;;  %v6814_v29 = vld [vmem:[%s9122_s2 + $0x174] ss:$8 sps:$4 sm:$0xff]  }
 0x10c   : > { %4668 = vmatprep.subr.bf16.mxu0 %v6760_v42  ;;  %v1543_v52 = vpop.f32.mrb[7].mxu1  ;;  %v1492_v53 = vpop.f32.mrb[7].mxu0  ;;  %v2203_v63 = vpack.c.bf16 %v2153_v59, %v2153_v59  ;;  %v6826_v42 = vld [vmem:[%s9122_s2 + $0x194] ss:$8 sps:$4 sm:$0xff]   ;;  %v6832_v46 = vld [vmem:[%s9122_s2 + $0x1a4] ss:$8 sps:$4 sm:$0xff]  }
 0x10d   : > { %v2204_v58 = vpack.c.bf16 %v2154_v55, %v2154_v55  ;;  %v6830_v49 = vld [vmem:[%s9122_s2 + $0x1a0] ss:$8 sps:$4 sm:$0xff]   ;;  %v6838_v52 = vld [vmem:[%s9122_s2 + $0x1b4] ss:$8 sps:$4 sm:$0xff]  }
 0x10f   : > { %4669 = vmatpush1.bf16.msra.mxu0 %v6758_v48 }
 0x110   : > { %4670 = vmatprep.subr.bf16.mxu0 %v6766_v51 }
 0x113   : > { %4671 = vmatpush1.bf16.msra.mxu0 %v6764_v54 }
 0x114   : > { %4691 = vmatprep.subr.bf16.mxu0 %v6772_v56 }
 0x116   : > { %4673 = vmatmul.mubr.bf16.vlgmr.msra.gmra.mrb[52].mxu0 %v2178_v39  ;;  %v6812_v39 = vld [vmem:[%s9122_s2 + $0x170] ss:$8 sps:$4 sm:$0xff]  }
 0x117   : > { %4692 = vmatpush1.bf16.msra.mxu0 %v6770_v57  ;;  %4682 = vmatprep.mubr.bf16.mxu0 %v2204_v58 }
 0x118   : > { %4693 = vmatprep.subr.bf16.mxu0 %v6778_v38 }
 0x11b   : > { %4694 = vmatpush1.bf16.msra.mxu0 %v6776_v60 }
 0x11c   : > { %4695 = vmatprep.subr.bf16.mxu0 %v6784_v61 }
 0x11d   : > { %v1630_v2 = vpop.f32.mrb[8].mxu1  ;;  %v1579_v3 = vpop.f32.mrb[8].mxu0 }
 0x11e   : > { %v2109_v4 = vmax.f32 %v1630_v2, 0.0  ;;  %v1632_v47 = vpop.f32.mrb[9].mxu1  ;;  %4683 = vmatmul.mubr.bf16.gmra.mrb[56].mxu0 %v2203_v63  ;;  %v2107_v6 = vmax.f32 %v1579_v3, 0.0  ;;  %v1581_v7 = vpop.f32.mrb[9].mxu0  ;;  %v6836_v2 = vld [vmem:[%s9122_s2 + $0x1b0] ss:$8 sps:$4 sm:$0xff]  }
 0x11f   : > { %v1634_v8 = vpop.f32.mrb[10].mxu1  ;;  %4696 = vmatpush1.bf16.msra.mxu0 %v6782_v62  ;;  %4723 = vmatprep.mubr.bf16.mxu0 %v2181_v40  ;;  %v2108_v9 = vmax.f32 %v1581_v7, 0.0  ;;  %v1583_v10 = vpop.f32.mrb[10].mxu0  ;;  %v2110_v16 = vmax.f32 %v1632_v47, 0.0  ;;  %v6820_v40 = vld [vmem:[%s9122_s2 + $0x184] ss:$8 sps:$4 sm:$0xff]  }
 0x120   : > { %v2134_v11 = vmax.f32 %v1634_v8, 0.0  ;;  %v1636_v12 = vpop.f32.mrb[11].mxu1  ;;  %4697 = vmatprep.subr.bf16.mxu0 %v6790_v1  ;;  %v2132_v14 = vmax.f32 %v1583_v10, 0.0  ;;  %v1585_v15 = vpop.f32.mrb[11].mxu0  ;;  %v6833_v1 = vld [vmem:[%s9122_s2 + $0x600] ss:$8 sps:$4 sm:$0xff]  }
 0x121   : > { %v2135_v17 = vmax.f32 %v1636_v12, 0.0  ;;  %v2133_v18 = vmax.f32 %v1585_v15, 0.0  ;;  %v6841_v47 = vld [vmem:[%s9122_s2 + $0x614] ss:$8 sps:$4 sm:$0xff]   ;;  %v6844_v8 = vld [vmem:[%s9122_s2 + $0x1c4] ss:$8 sps:$4 sm:$0xff]  }
 0x122   : > { %v7896_v19 = vpack.c.bf16 %v2134_v11, %v2109_v4  ;;  %v7901_v21 = vpack.c.bf16 %v2132_v14, %v2107_v6  ;;  %v6842_v12 = vld [vmem:[%s9122_s2 + $0x1c0] ss:$8 sps:$4 sm:$0xff]  }
 0x123   : > { %v7903_v22 = vpack.c.bf16 %v2135_v17, %v2110_v16  ;;  %4698 = vmatpush1.bf16.msra.mxu0 %v6788_v5  ;;  %v7905_v23 = vpack.c.bf16 %v2133_v18, %v2108_v9  ;;  %v6839_v9 = vld [vmem:[%s9122_s2 + $0x610] ss:$8 sps:$4 sm:$0xff]  }
 0x124   : > { %4699 = vmatprep.subr.bf16.mxu0 %v6796_v13 }
 0x125   : > { %v7910_v25 = vpop.f32.mrb[12].mxu1  ;;  %v7912_v26 = vpop.f32.mrb[12].mxu0 }
 0x126   : > { %v7914_v27 = vpop.f32.mrb[13].mxu1  ;;  %v7916_v28 = vpop.f32.mrb[13].mxu0 }
 0x127   : > { %4700 = vmatpush1.bf16.msra.mxu0 %v6794_v20  ;;  %v1644_v31 = vpop.f32.mrb[14].mxu1  ;;  %v1593_v32 = vpop.f32.mrb[14].mxu0  ;;  %v6847_v20 = vld [vmem:[%s9122_s2 + $0x624] ss:$8 sps:$4 sm:$0xff]  }
 0x128   : > { %4701 = vmatprep.subr.bf16.mxu0 %v6802_v24  ;;  %v1645_v34 = vpop.f32.mrb[15].mxu1  ;;  %v1594_v35 = vpop.f32.mrb[15].mxu0  ;;  %v6850_v24 = vld [vmem:[%s9122_s2 + $0x1d4] ss:$8 sps:$4 sm:$0xff]   ;;  %v6845_v32 = vld [vmem:[%s9122_s2 + $0x620] ss:$8 sps:$4 sm:$0xff]  }
 0x129   : > { %v6853_v35 = vld [vmem:[%s9122_s2 + $0x634] ss:$8 sps:$4 sm:$0xff]  }
 0x12b   : > { %4702 = vmatpush1.bf16.msra.mxu0 %v6800_v30 }
 0x12c   : > { %4703 = vmatprep.subr.bf16.mxu0 %v6808_v33  ;;  %v6848_v33 = vld [vmem:[%s9122_s2 + $0x1d0] ss:$8 sps:$4 sm:$0xff]  }
 0x12f   : > { %4704 = vmatpush1.bf16.msra.mxu0 %v6806_v36 }
 0x130   : > { %4705 = vmatprep.subr.bf16.mxu0 %v6814_v29  ;;  %v6856_v29 = vld [vmem:[%s9122_s2 + $0x1e4] ss:$8 sps:$4 sm:$0xff]  }
 0x133   : > { %4706 = vmatpush1.bf16.msra.mxu0 %v6812_v39  ;;  %v6851_v39 = vld [vmem:[%s9122_s2 + $0x630] ss:$8 sps:$4 sm:$0xff]  }
 0x134   : > { %4707 = vmatprep.subr.bf16.mxu0 %v6820_v40  ;;  %v6854_v40 = vld [vmem:[%s9122_s2 + $0x1e0] ss:$8 sps:$4 sm:$0xff]  }
 0x137   : > { %4708 = vmatpush1.bf16.msra.mxu0 %v6818_v41  ;;  %v6859_v41 = vld [vmem:[%s9122_s2 + $0x644] ss:$8 sps:$4 sm:$0xff]  }
 0x138   : > { %4709 = vmatprep.subr.bf16.mxu0 %v6826_v42  ;;  %v6862_v42 = vld [vmem:[%s9122_s2 + $0x1f4] ss:$8 sps:$4 sm:$0xff]  }
 0x139   : > { %v1732_v48 = vpop.f32.mrb[16].mxu1  ;;  %v1681_v50 = vpop.f32.mrb[16].mxu0 }
 0x13a   : > { %v1734_v51 = vpop.f32.mrb[17].mxu1  ;;  %v2111_v53 = vmax.f32 %v1681_v50, 0.0  ;;  %v1683_v54 = vpop.f32.mrb[17].mxu0  ;;  %v2113_v58 = vmax.f32 %v1732_v48, 0.0  ;;  %v6865_v48 = vld [vmem:[%s9122_s2 + $0x654] ss:$8 sps:$4 sm:$0xff]  }
 0x13b   : > { %v1736_v55 = vpop.f32.mrb[18].mxu1  ;;  %4710 = vmatpush1.bf16.msra.mxu0 %v6824_v44  ;;  %v2112_v56 = vmax.f32 %v1683_v54, 0.0  ;;  %v1685_v57 = vpop.f32.mrb[18].mxu0  ;;  %v2114_v62 = vmax.f32 %v1734_v51, 0.0  ;;  %v6857_v44 = vld [vmem:[%s9122_s2 + $0x640] ss:$8 sps:$4 sm:$0xff]  }
 0x13c   : > { %v2138_v38 = vmax.f32 %v1736_v55, 0.0  ;;  %v1738_v59 = vpop.f32.mrb[19].mxu1  ;;  %4711 = vmatprep.subr.bf16.mxu0 %v6832_v46  ;;  %v2136_v60 = vmax.f32 %v1685_v57, 0.0  ;;  %v1687_v61 = vpop.f32.mrb[19].mxu0  ;;  %v6860_v46 = vld [vmem:[%s9122_s2 + $0x1f0] ss:$8 sps:$4 sm:$0xff]  }
 0x13d   : > { %v2139_v63 = vmax.f32 %v1738_v59, 0.0  ;;  %v2137_v3 = vmax.f32 %v1687_v61, 0.0  ;;  %v2156_v50 = vmax.f32 %v7858_v45, 0.0  ;;  %v6863_v51 = vld [vmem:[%s9122_s2 + $0x650] ss:$8 sps:$4 sm:$0xff]  }
 0x13e   : > { %v2188_v4 = vpack.c.bf16 %v2138_v38, %v2113_v58  ;;  %v7963_v5 = vpack.c.bf16 %v2136_v60, %v2111_v53  ;;  %v6871_v53 = vld [vmem:[%s9122_s2 + $0x664] ss:$8 sps:$4 sm:$0xff]   ;;  %v6869_v45 = vld [vmem:[%s9122_s2 + $0x660] ss:$8 sps:$4 sm:$0xff]   ;;  %v6874_v55 = vld [vmem:[%s9122_s2 + $0x214] ss:$8 sps:$4 sm:$0xff]  }
 0x13f   : > { %v2189_v6 = vpack.c.bf16 %v2139_v63, %v2114_v62  ;;  %4712 = vmatpush1.bf16.msra.mxu0 %v6830_v49  ;;  %v7965_v7 = vpack.c.bf16 %v2137_v3, %v2112_v56  ;;  %v6868_v49 = vld [vmem:[%s9122_s2 + $0x204] ss:$8 sps:$4 sm:$0xff]   ;;  %v2206_v54 = vpack.c.bf16 %v2156_v50, %v2156_v50  ;;  %v6872_v57 = vld [vmem:[%s9122_s2 + $0x210] ss:$8 sps:$4 sm:$0xff]   ;;  %v6877_v58 = vld [vmem:[%s9122_s2 + $0x674] ss:$8 sps:$4 sm:$0xff]  }
 0x140   : > { %4713 = vmatprep.subr.bf16.mxu0 %v6838_v52  ;;  %v6866_v52 = vld [vmem:[%s9122_s2 + $0x200] ss:$8 sps:$4 sm:$0xff]   ;;  %v2155_v63 = vmax.f32 %v7856_v43, 0.0  ;;  %v6898_v50 = vld [vmem:[%s9122_s2 + $0x254] ss:$8 sps:$4 sm:$0xff]  }
 0x141   : > { %4927 = vmatprep.mubr.bf16.mxu1 %v2189_v6  ;;  %v7973_v10 = vpop.f32.mrb[20].mxu0  ;;  %v1742_v11 = vpop.f32.mrb[20].mxu1 }
 0x142   : > { %4928 = vmatmul.mubr.bf16.vlgmr.msra.gmra.mrb[48].mxu1 %v2188_v4  ;;  %v7978_v13 = vpop.f32.mrb[21].mxu0  ;;  %v2163_v14 = vmax.f32 %v1742_v11, 0.0  ;;  %v1744_v15 = vpop.f32.mrb[21].mxu1  ;;  %v6880_v4 = vld [vmem:[%s9122_s2 + $0x224] ss:$8 sps:$4 sm:$0xff]  }
 0x143   : > { %4947 = vmatpush1.bf16.msra.mxu1 %v6833_v1  ;;  %4714 = vmatpush1.bf16.msra.mxu0 %v6836_v2  ;;  %v1695_v16 = vpop.f32.mrb[22].mxu0  ;;  %v2164_v17 = vmax.f32 %v1744_v15, 0.0  ;;  %v1746_v18 = vpop.f32.mrb[22].mxu1 }
 0x144   : > { %4948 = vmatprep.subr.bf16.mxu1 %v6841_v47  ;;  %4715 = vmatprep.subr.bf16.mxu0 %v6844_v8  ;;  %v1696_v30 = vpop.f32.mrb[23].mxu0  ;;  %v1747_v31 = vpop.f32.mrb[23].mxu1  ;;  %v2213_v36 = vpack.c.bf16 %v2163_v14, %v2163_v14  ;;  %v2205_v16 = vpack.c.bf16 %v2155_v63, %v2155_v63  ;;  %v6883_v18 = vld [vmem:[%s9122_s2 + $0x684] ss:$8 sps:$4 sm:$0xff]  }
 0x145   : > { %v2214_v34 = vpack.c.bf16 %v2164_v17, %v2164_v17  ;;  %v6878_v17 = vld [vmem:[%s9122_s2 + $0x220] ss:$8 sps:$4 sm:$0xff]   ;;  %v6886_v30 = vld [vmem:[%s9122_s2 + $0x234] ss:$8 sps:$4 sm:$0xff]   ;;  %v6919_v63 = vld [vmem:[%s9122_s2 + $0x6e4] ss:$8 sps:$4 sm:$0xff]  }
 0x147   : > { %4949 = vmatpush1.bf16.msra.mxu1 %v6839_v9  ;;  %4716 = vmatpush1.bf16.msra.mxu0 %v6842_v12  ;;  %v6875_v9 = vld [vmem:[%s9122_s2 + $0x670] ss:$8 sps:$4 sm:$0xff]  }
 0x148   : > { %4950 = vmatprep.subr.bf16.mxu1 %v6847_v20  ;;  %4717 = vmatprep.subr.bf16.mxu0 %v6850_v24  ;;  %v6881_v24 = vld [vmem:[%s9122_s2 + $0x680] ss:$8 sps:$4 sm:$0xff]  }
 0x149   : > { %4937 = vmatprep.mubr.bf16.mxu1 %v2214_v34 }
 0x14a   : > { %4938 = vmatmul.mubr.bf16.gmra.mrb[52].mxu1 %v2213_v36 }
 0x14b   : > { %4951 = vmatpush1.bf16.msra.mxu1 %v6845_v32  ;;  %4718 = vmatpush1.bf16.msra.mxu0 %v6848_v33  ;;  %v6884_v33 = vld [vmem:[%s9122_s2 + $0x230] ss:$8 sps:$4 sm:$0xff]  }
 0x14c   : > { %4952 = vmatprep.subr.bf16.mxu1 %v6853_v35  ;;  %4719 = vmatprep.subr.bf16.mxu0 %v6856_v29  ;;  %v6889_v29 = vld [vmem:[%s9122_s2 + $0x694] ss:$8 sps:$4 sm:$0xff]  }
 0x14f   : > { %4953 = vmatpush1.bf16.msra.mxu1 %v6851_v39  ;;  %4720 = vmatpush1.bf16.msra.mxu0 %v6854_v40 }
 0x150   : > { %4954 = vmatprep.subr.bf16.mxu1 %v6859_v41  ;;  %4721 = vmatprep.subr.bf16.mxu0 %v6862_v42  ;;  %v6892_v41 = vld [vmem:[%s9122_s2 + $0x244] ss:$8 sps:$4 sm:$0xff]  }
 0x153   : > { %4955 = vmatpush1.bf16.msra.mxu1 %v6857_v44  ;;  %4722 = vmatpush1.bf16.msra.mxu0 %v6860_v46  ;;  %v6890_v46 = vld [vmem:[%s9122_s2 + $0x240] ss:$8 sps:$4 sm:$0xff]  }
 0x154   : > { %4956 = vmatprep.subr.bf16.mxu1 %v6865_v48  ;;  %4742 = vmatprep.subr.bf16.mxu0 %v6868_v49  ;;  %v6895_v48 = vld [vmem:[%s9122_s2 + $0x6a4] ss:$8 sps:$4 sm:$0xff]   ;;  %v6893_v49 = vld [vmem:[%s9122_s2 + $0x6a0] ss:$8 sps:$4 sm:$0xff]  }
 0x155   : > { %v1783_v56 = vpop.f32.mrb[24].mxu0 }
 0x156   : > { %4724 = vmatmul.mubr.bf16.vlgmr.msra.gmra.mrb[52].mxu0 %v7848_v37  ;;  %v2115_v38 = vmax.f32 %v1783_v56, 0.0  ;;  %v1785_v59 = vpop.f32.mrb[25].mxu0  ;;  %v6910_v56 = vld [vmem:[%s9122_s2 + $0x274] ss:$8 sps:$4 sm:$0xff]  }
 0x157   : > { %4957 = vmatpush1.bf16.msra.mxu1 %v6863_v51  ;;  %4733 = vmatprep.mubr.bf16.mxu0 %v2206_v54  ;;  %v2116_v60 = vmax.f32 %v1785_v59, 0.0  ;;  %v1787_v61 = vpop.f32.mrb[26].mxu0  ;;  %v1834_v62 = vpop.f32.mrb[24].mxu1  ;;  %v6896_v51 = vld [vmem:[%s9122_s2 + $0x250] ss:$8 sps:$4 sm:$0xff]  }
 0x158   : > { %4743 = vmatpush1.bf16.msra.mxu0 %v6866_v52  ;;  %4958 = vmatprep.subr.bf16.mxu1 %v6871_v53  ;;  %v2140_v37 = vmax.f32 %v1787_v61, 0.0  ;;  %v1789_v1 = vpop.f32.mrb[27].mxu0  ;;  %v2117_v2 = vmax.f32 %v1834_v62, 0.0  ;;  %v1836_v3 = vpop.f32.mrb[25].mxu1  ;;  %v6901_v52 = vld [vmem:[%s9122_s2 + $0x6b4] ss:$8 sps:$4 sm:$0xff]  }
 0x159   : > { %4744 = vmatprep.subr.bf16.mxu0 %v6874_v55  ;;  %v2141_v47 = vmax.f32 %v1789_v1, 0.0  ;;  %v2118_v6 = vmax.f32 %v1836_v3, 0.0  ;;  %v1838_v8 = vpop.f32.mrb[26].mxu1  ;;  %v6904_v53 = vld [vmem:[%s9122_s2 + $0x264] ss:$8 sps:$4 sm:$0xff]  }
 0x15a   : > { %v8052_v11 = vpack.c.bf16 %v2140_v37, %v2115_v38  ;;  %v2142_v43 = vmax.f32 %v1838_v8, 0.0  ;;  %v1840_v12 = vpop.f32.mrb[27].mxu1  ;;  %v6899_v54 = vld [vmem:[%s9122_s2 + $0x6b0] ss:$8 sps:$4 sm:$0xff]   ;;  %v6907_v55 = vld [vmem:[%s9122_s2 + $0x6c4] ss:$8 sps:$4 sm:$0xff]  }
 0x15b   : > { %4959 = vmatpush1.bf16.msra.mxu1 %v6869_v45  ;;  %v2191_v14 = vpack.c.bf16 %v2141_v47, %v2116_v60  ;;  %v2143_v15 = vmax.f32 %v1840_v12, 0.0  ;;  %v6902_v45 = vld [vmem:[%s9122_s2 + $0x260] ss:$8 sps:$4 sm:$0xff]   ;;  %v6913_v38 = vld [vmem:[%s9122_s2 + $0x6d4] ss:$8 sps:$4 sm:$0xff]  }
 0x15c   : > { %4745 = vmatpush1.bf16.msra.mxu0 %v6872_v57  ;;  %4960 = vmatprep.subr.bf16.mxu1 %v6877_v58  ;;  %v8060_v20 = vpack.c.bf16 %v2142_v43, %v2117_v2  ;;  %v6905_v57 = vld [vmem:[%s9122_s2 + $0x6c0] ss:$8 sps:$4 sm:$0xff]   ;;  %v6908_v58 = vld [vmem:[%s9122_s2 + $0x270] ss:$8 sps:$4 sm:$0xff]   ;;  %v6916_v59 = vld [vmem:[%s9122_s2 + $0x284] ss:$8 sps:$4 sm:$0xff]  }
 0x15d   : > { %4746 = vmatprep.subr.bf16.mxu0 %v6880_v4  ;;  %4978 = vmatprep.mubr.bf16.mxu1 %v2191_v14  ;;  %v8068_v31 = vpop.f32.mrb[28].mxu0  ;;  %v8070_v32 = vpack.c.bf16 %v2143_v15, %v2118_v6  ;;  %v6911_v60 = vld [vmem:[%s9122_s2 + $0x6d0] ss:$8 sps:$4 sm:$0xff]   ;;  %v6914_v62 = vld [vmem:[%s9122_s2 + $0x280] ss:$8 sps:$4 sm:$0xff]  }
 0x15e   : > { %4734 = vmatmul.mubr.bf16.gmra.mrb[56].mxu0 %v2205_v16  ;;  %v8075_v34 = vpop.f32.mrb[29].mxu0  ;;  %v6922_v2 = vld [vmem:[%s9122_s2 + $0x294] ss:$8 sps:$4 sm:$0xff]   ;;  %v6920_v15 = vld [vmem:[%s9122_s2 + $0x290] ss:$8 sps:$4 sm:$0xff]  }
 0x15f   : > { %4961 = vmatpush1.bf16.msra.mxu1 %v6875_v9  ;;  %4774 = vmatprep.mubr.bf16.mxu0 %v7905_v23  ;;  %v8078_v35 = vpop.f32.mrb[28].mxu1  ;;  %v1797_v36 = vpop.f32.mrb[30].mxu0  ;;  %v6887_v23 = vld [vmem:[%s9122_s2 + $0x690] ss:$8 sps:$4 sm:$0xff]   ;;  %v6917_v9 = vld [vmem:[%s9122_s2 + $0x6e0] ss:$8 sps:$4 sm:$0xff]  }
 0x160   : > { %4747 = vmatpush1.bf16.msra.mxu0 %v6878_v17  ;;  %4962 = vmatprep.subr.bf16.mxu1 %v6883_v18  ;;  %v8083_v39 = vpop.f32.mrb[29].mxu1  ;;  %v1798_v40 = vpop.f32.mrb[31].mxu0  ;;  %v6925_v16 = vld [vmem:[%s9122_s2 + $0x6f4] ss:$8 sps:$4 sm:$0xff]  }
 0x161   : > { %4748 = vmatprep.subr.bf16.mxu0 %v6886_v30  ;;  %v1848_v42 = vpop.f32.mrb[30].mxu1  ;;  %v6928_v30 = vld [vmem:[%s9122_s2 + $0x2a4] ss:$8 sps:$4 sm:$0xff]  }
 0x162   : > { %v1849_v44 = vpop.f32.mrb[31].mxu1  ;;  %v2166_v42 = vmax.f32 %v8075_v34, 0.0  ;;  %v6934_v34 = vld [vmem:[%s9122_s2 + $0x2b4] ss:$8 sps:$4 sm:$0xff]  }
 0x163   : > { %4963 = vmatpush1.bf16.msra.mxu1 %v6881_v24 }
 0x164   : > { %4749 = vmatpush1.bf16.msra.mxu0 %v6884_v33  ;;  %4964 = vmatprep.subr.bf16.mxu1 %v6889_v29 }
 0x165   : > { %4750 = vmatprep.subr.bf16.mxu0 %v6892_v41  ;;  %v6923_v41 = vld [vmem:[%s9122_s2 + $0x6f0] ss:$8 sps:$4 sm:$0xff]  }
 0x167   : > { %4965 = vmatpush1.bf16.msra.mxu1 %v6887_v23 }
 0x168   : > { %4751 = vmatpush1.bf16.msra.mxu0 %v6890_v46  ;;  %4966 = vmatprep.subr.bf16.mxu1 %v6895_v48  ;;  %v6926_v46 = vld [vmem:[%s9122_s2 + $0x2a0] ss:$8 sps:$4 sm:$0xff]   ;;  %v6931_v48 = vld [vmem:[%s9122_s2 + $0x704] ss:$8 sps:$4 sm:$0xff]  }
 0x169   : > { %4752 = vmatprep.subr.bf16.mxu0 %v6898_v50 }
 0x16b   : > { %4967 = vmatpush1.bf16.msra.mxu1 %v6893_v49 }
 0x16c   : > { %4753 = vmatpush1.bf16.msra.mxu0 %v6896_v51  ;;  %4968 = vmatprep.subr.bf16.mxu1 %v6901_v52 }
 0x16d   : > { %4754 = vmatprep.subr.bf16.mxu0 %v6904_v53  ;;  %v6929_v53 = vld [vmem:[%s9122_s2 + $0x700] ss:$8 sps:$4 sm:$0xff]  }
 0x16f   : > { %4969 = vmatpush1.bf16.msra.mxu1 %v6899_v54  ;;  %v2216_v54 = vpack.c.bf16 %v2166_v42, %v2166_v42  ;;  %v6962_v42 = vld [vmem:[%s9122_s2 + $0x300] ss:$8 sps:$4 sm:$0xff]  }
 0x170   : > { %4755 = vmatpush1.bf16.msra.mxu0 %v6902_v45  ;;  %4970 = vmatprep.subr.bf16.mxu1 %v6907_v55  ;;  %v6932_v45 = vld [vmem:[%s9122_s2 + $0x2b0] ss:$8 sps:$4 sm:$0xff]   ;;  %v6937_v55 = vld [vmem:[%s9122_s2 + $0x714] ss:$8 sps:$4 sm:$0xff]  }
 0x171   : > { %4756 = vmatprep.subr.bf16.mxu0 %v6910_v56  ;;  %v1885_v47 = vpop.f32.mrb[32].mxu0  ;;  %v6940_v56 = vld [vmem:[%s9122_s2 + $0x2c4] ss:$8 sps:$4 sm:$0xff]  }
 0x172   : > { %v2119_v12 = vmax.f32 %v1885_v47, 0.0  ;;  %v1887_v14 = vpop.f32.mrb[33].mxu0  ;;  %v6950_v47 = vld [vmem:[%s9122_s2 + $0x2e0] ss:$8 sps:$4 sm:$0xff]  }
 0x173   : > { %4971 = vmatpush1.bf16.msra.mxu1 %v6905_v57  ;;  %v1936_v61 = vpop.f32.mrb[32].mxu1  ;;  %v2120_v18 = vmax.f32 %v1887_v14, 0.0  ;;  %v1889_v24 = vpop.f32.mrb[34].mxu0  ;;  %v2165_v57 = vmax.f32 %v8068_v31, 0.0 }
 0x174   : > { %4757 = vmatpush1.bf16.msra.mxu0 %v6908_v58  ;;  %4972 = vmatprep.subr.bf16.mxu1 %v6913_v38  ;;  %v2121_v37 = vmax.f32 %v1936_v61, 0.0  ;;  %v1938_v1 = vpop.f32.mrb[33].mxu1  ;;  %v2144_v36 = vmax.f32 %v1889_v24, 0.0  ;;  %v1891_v29 = vpop.f32.mrb[35].mxu0  ;;  %v6935_v38 = vld [vmem:[%s9122_s2 + $0x710] ss:$8 sps:$4 sm:$0xff]  }
 0x175   : > { %4758 = vmatprep.subr.bf16.mxu0 %v6916_v59  ;;  %v2122_v3 = vmax.f32 %v1938_v1, 0.0  ;;  %v1940_v4 = vpop.f32.mrb[34].mxu1  ;;  %v2145_v40 = vmax.f32 %v1891_v29, 0.0  ;;  %v6946_v61 = vld [vmem:[%s9122_s2 + $0x2d4] ss:$8 sps:$4 sm:$0xff]  }
 0x176   : > { %v2146_v6 = vmax.f32 %v1940_v4, 0.0  ;;  %v1942_v8 = vpop.f32.mrb[35].mxu1  ;;  %v8170_v44 = vpack.c.bf16 %v2144_v36, %v2119_v12  ;;  %v6944_v1 = vld [vmem:[%s9122_s2 + $0x2d0] ss:$8 sps:$4 sm:$0xff]   ;;  %v6961_v12 = vld [vmem:[%s9122_s2 + $0x754] ss:$8 sps:$4 sm:$0xff]  }
 0x177   : > { %4973 = vmatpush1.bf16.msra.mxu1 %v6911_v60  ;;  %v2147_v43 = vmax.f32 %v1942_v8, 0.0  ;;  %v8180_v50 = vpack.c.bf16 %v2145_v40, %v2120_v18  ;;  %v6938_v60 = vld [vmem:[%s9122_s2 + $0x2c0] ss:$8 sps:$4 sm:$0xff]   ;;  %v6947_v4 = vld [vmem:[%s9122_s2 + $0x730] ss:$8 sps:$4 sm:$0xff]  }
 0x178   : > { %4759 = vmatpush1.bf16.msra.mxu0 %v6914_v62  ;;  %4974 = vmatprep.subr.bf16.mxu1 %v6919_v63  ;;  %v8157_v17 = vpack.c.bf16 %v2146_v6, %v2121_v37  ;;  %v2215_v63 = vpack.c.bf16 %v2165_v57, %v2165_v57  ;;  %v6941_v37 = vld [vmem:[%s9122_s2 + $0x720] ss:$8 sps:$4 sm:$0xff]   ;;  %v6955_v6 = vld [vmem:[%s9122_s2 + $0x744] ss:$8 sps:$4 sm:$0xff]   ;;  %v6958_v8 = vld [vmem:[%s9122_s2 + $0x2f4] ss:$8 sps:$4 sm:$0xff]  }
 0x179   : > { %4760 = vmatprep.subr.bf16.mxu0 %v6922_v2  ;;  %v8162_v33 = vpack.c.bf16 %v2147_v43, %v2122_v3  ;;  %v8199_v58 = vpop.f32.mrb[36].mxu0  ;;  %v6949_v2 = vld [vmem:[%s9122_s2 + $0x734] ss:$8 sps:$4 sm:$0xff]   ;;  %v6952_v3 = vld [vmem:[%s9122_s2 + $0x2e4] ss:$8 sps:$4 sm:$0xff]  }
 0x17a   : > { %v8204_v59 = vpop.f32.mrb[37].mxu0  ;;  %v6956_v43 = vld [vmem:[%s9122_s2 + $0x2f0] ss:$8 sps:$4 sm:$0xff]   ;;  %v6976_v57 = vld [vmem:[%s9122_s2 + $0x324] ss:$8 sps:$4 sm:$0xff]  }
 0x17b   : > { %4975 = vmatpush1.bf16.msra.mxu1 %v6917_v9  ;;  %v8168_v23 = vpop.f32.mrb[36].mxu1  ;;  %v1899_v31 = vpop.f32.mrb[38].mxu0  ;;  %v6959_v40 = vld [vmem:[%s9122_s2 + $0x750] ss:$8 sps:$4 sm:$0xff]  }
 0x17c   : > { %4761 = vmatpush1.bf16.msra.mxu0 %v6920_v15  ;;  %4976 = vmatprep.subr.bf16.mxu1 %v6925_v16  ;;  %v8178_v49 = vpop.f32.mrb[37].mxu1  ;;  %v1900_v62 = vpop.f32.mrb[39].mxu0  ;;  %v6964_v16 = vld [vmem:[%s9122_s2 + $0x304] ss:$8 sps:$4 sm:$0xff]  }
 0x17d   : > { %4762 = vmatprep.subr.bf16.mxu0 %v6928_v30  ;;  %v1950_v51 = vpop.f32.mrb[38].mxu1  ;;  %v2158_v30 = vmax.f32 %v7916_v28, 0.0  ;;  %v6967_v28 = vld [vmem:[%s9122_s2 + $0x764] ss:$8 sps:$4 sm:$0xff]  }
 0x17e   : > { %v1951_v52 = vpop.f32.mrb[39].mxu1 }
 0x17f   : > { %4977 = vmatpush1.bf16.msra.mxu1 %v6923_v41  ;;  %v2208_v51 = vpack.c.bf16 %v2158_v30, %v2158_v30  ;;  %v6965_v52 = vld [vmem:[%s9122_s2 + $0x760] ss:$8 sps:$4 sm:$0xff]   ;;  %v6997_v30 = vld [vmem:[%s9122_s2 + $0x7b4] ss:$8 sps:$4 sm:$0xff]  }
 0x180   : > { %4763 = vmatpush1.bf16.msra.mxu0 %v6926_v46  ;;  %4997 = vmatprep.subr.bf16.mxu1 %v6931_v48  ;;  %v6970_v48 = vld [vmem:[%s9122_s2 + $0x314] ss:$8 sps:$4 sm:$0xff]  }
 0x181   : > { %4764 = vmatprep.subr.bf16.mxu0 %v6934_v34 }
 0x182   : > { %4979 = vmatmul.mubr.bf16.vlgmr.msra.gmra.mrb[48].mxu1 %v8052_v11  ;;  %v6943_v11 = vld [vmem:[%s9122_s2 + $0x724] ss:$8 sps:$4 sm:$0xff]  }
 0x183   : > { %4998 = vmatpush1.bf16.msra.mxu1 %v6929_v53  ;;  %4988 = vmatprep.mubr.bf16.mxu1 %v2216_v54  ;;  %v6968_v54 = vld [vmem:[%s9122_s2 + $0x310] ss:$8 sps:$4 sm:$0xff]  }
 0x184   : > { %4765 = vmatpush1.bf16.msra.mxu0 %v6932_v45  ;;  %4999 = vmatprep.subr.bf16.mxu1 %v6937_v55  ;;  %v6973_v45 = vld [vmem:[%s9122_s2 + $0x774] ss:$8 sps:$4 sm:$0xff]  }
 0x185   : > { %4766 = vmatprep.subr.bf16.mxu0 %v6940_v56  ;;  %v2157_v56 = vmax.f32 %v7912_v26, 0.0  ;;  %v6974_v26 = vld [vmem:[%s9122_s2 + $0x320] ss:$8 sps:$4 sm:$0xff]  }
 0x187   : > { %5000 = vmatpush1.bf16.msra.mxu1 %v6935_v38 }
 0x188   : > { %4767 = vmatpush1.bf16.msra.mxu0 %v6938_v60  ;;  %5001 = vmatprep.subr.bf16.mxu1 %v6943_v11 }
 0x189   : > { %4768 = vmatprep.subr.bf16.mxu0 %v6946_v61 }
 0x18a   : > { %4989 = vmatmul.mubr.bf16.gmra.mrb[52].mxu1 %v2215_v63  ;;  %v6971_v63 = vld [vmem:[%s9122_s2 + $0x770] ss:$8 sps:$4 sm:$0xff]  }
 0x18b   : > { %5002 = vmatpush1.bf16.msra.mxu1 %v6941_v37  ;;  %5029 = vmatprep.mubr.bf16.mxu1 %v8070_v32  ;;  %v6953_v32 = vld [vmem:[%s9122_s2 + $0x740] ss:$8 sps:$4 sm:$0xff]  }
 0x18c   : > { %4769 = vmatpush1.bf16.msra.mxu0 %v6944_v1  ;;  %5003 = vmatprep.subr.bf16.mxu1 %v6949_v2 }
 0x18d   : > { %4770 = vmatprep.subr.bf16.mxu0 %v6952_v3  ;;  %v2207_v3 = vpack.c.bf16 %v2157_v56, %v2157_v56  ;;  %v7004_v56 = vld [vmem:[%s9122_s2 + $0x370] ss:$8 sps:$4 sm:$0xff]  }
 0x18f   : > { %5004 = vmatpush1.bf16.msra.mxu1 %v6947_v4  ;;  %v2038_v9 = vpop.f32.mrb[40].mxu1  ;;  %v6979_v4 = vld [vmem:[%s9122_s2 + $0x784] ss:$8 sps:$4 sm:$0xff]  }
 0x190   : > { %4771 = vmatpush1.bf16.msra.mxu0 %v6950_v47  ;;  %5005 = vmatprep.subr.bf16.mxu1 %v6955_v6  ;;  %v2125_v14 = vmax.f32 %v2038_v9, 0.0  ;;  %v2040_v15 = vpop.f32.mrb[41].mxu1  ;;  %v6982_v47 = vld [vmem:[%s9122_s2 + $0x334] ss:$8 sps:$4 sm:$0xff]   ;;  %v6980_v9 = vld [vmem:[%s9122_s2 + $0x330] ss:$8 sps:$4 sm:$0xff]  }
 0x191   : > { %4772 = vmatprep.subr.bf16.mxu0 %v6958_v8  ;;  %v2126_v18 = vmax.f32 %v2040_v15, 0.0  ;;  %v2042_v24 = vpop.f32.mrb[42].mxu1  ;;  %v6991_v15 = vld [vmem:[%s9122_s2 + $0x7a4] ss:$8 sps:$4 sm:$0xff]  }
 0x192   : > { %v2150_v36 = vmax.f32 %v2042_v24, 0.0  ;;  %v2044_v29 = vpop.f32.mrb[43].mxu1  ;;  %v6992_v24 = vld [vmem:[%s9122_s2 + $0x350] ss:$8 sps:$4 sm:$0xff]  }
 0x193   : > { %5006 = vmatpush1.bf16.msra.mxu1 %v6953_v32  ;;  %v2151_v41 = vmax.f32 %v2044_v29, 0.0  ;;  %v6977_v32 = vld [vmem:[%s9122_s2 + $0x780] ss:$8 sps:$4 sm:$0xff]   ;;  %v7000_v29 = vld [vmem:[%s9122_s2 + $0x364] ss:$8 sps:$4 sm:$0xff]  }
 0x194   : > { %4773 = vmatpush1.bf16.msra.mxu0 %v6956_v43  ;;  %5007 = vmatprep.subr.bf16.mxu1 %v6961_v12  ;;  %v8259_v46 = vpack.c.bf16 %v2150_v36, %v2125_v14  ;;  %v6985_v43 = vld [vmem:[%s9122_s2 + $0x794] ss:$8 sps:$4 sm:$0xff]   ;;  %v6988_v12 = vld [vmem:[%s9122_s2 + $0x344] ss:$8 sps:$4 sm:$0xff]   ;;  %v6983_v14 = vld [vmem:[%s9122_s2 + $0x790] ss:$8 sps:$4 sm:$0xff]  }
 0x195   : > { %4793 = vmatprep.subr.bf16.mxu0 %v6964_v16  ;;  %v8267_v34 = vpack.c.bf16 %v2151_v41, %v2126_v18  ;;  %v6994_v16 = vld [vmem:[%s9122_s2 + $0x354] ss:$8 sps:$4 sm:$0xff]   ;;  %v6989_v18 = vld [vmem:[%s9122_s2 + $0x7a0] ss:$8 sps:$4 sm:$0xff]  }
 0x197   : > { %4775 = vmatmul.mubr.bf16.vlgmr.msra.gmra.mrb[52].mxu0 %v7901_v21  ;;  %5008 = vmatpush1.bf16.msra.mxu1 %v6959_v40  ;;  %v8273_v53 = vpop.f32.mrb[44].mxu1  ;;  %v1987_v21 = vpop.f32.mrb[40].mxu0  ;;  %v6995_v40 = vld [vmem:[%s9122_s2 + $0x7b0] ss:$8 sps:$4 sm:$0xff]  }
 0x198   : > { %4784 = vmatprep.mubr.bf16.mxu0 %v2208_v51  ;;  %4794 = vmatpush1.bf16.msra.mxu0 %v6962_v42  ;;  %v8281_v55 = vpop.f32.mrb[45].mxu1  ;;  %v2123_v60 = vmax.f32 %v1987_v21, 0.0  ;;  %v1989_v11 = vpop.f32.mrb[41].mxu0  ;;  %v6998_v42 = vld [vmem:[%s9122_s2 + $0x360] ss:$8 sps:$4 sm:$0xff]  }
 0x199   : > { %5009 = vmatprep.subr.bf16.mxu1 %v6967_v28  ;;  %4795 = vmatprep.subr.bf16.mxu0 %v6970_v48  ;;  %v2052_v38 = vpop.f32.mrb[46].mxu1  ;;  %v2124_v61 = vmax.f32 %v1989_v11, 0.0  ;;  %v1991_v62 = vpop.f32.mrb[42].mxu0  ;;  %v7003_v28 = vld [vmem:[%s9122_s2 + $0x7c4] ss:$8 sps:$4 sm:$0xff]  }
 0x19a   : > { %v2053_v31 = vpop.f32.mrb[47].mxu1  ;;  %v2148_v37 = vmax.f32 %v1991_v62, 0.0  ;;  %v1993_v1 = vpop.f32.mrb[43].mxu0  ;;  %v7006_v51 = vld [vmem:[%s9122_s2 + $0x374] ss:$8 sps:$4 sm:$0xff]  }
 0x19b   : > { %5010 = vmatpush1.bf16.msra.mxu1 %v6965_v52  ;;  %v2149_v2 = vmax.f32 %v1993_v1, 0.0  ;;  %v8337_v36 = vpop.f32.mrb[44].mxu0  ;;  %v7012_v11 = vld [vmem:[%s9122_s2 + $0x384] ss:$8 sps:$4 sm:$0xff]   ;;  %v7007_v62 = vld [vmem:[%s9122_s2 + $0x7d0] ss:$8 sps:$4 sm:$0xff]  }
 0x19c   : > { %4796 = vmatpush1.bf16.msra.mxu0 %v6968_v54  ;;  %5011 = vmatprep.subr.bf16.mxu1 %v6973_v45  ;;  %v8299_v6 = vpack.c.bf16 %v2148_v37, %v2123_v60  ;;  %v8345_v41 = vpop.f32.mrb[45].mxu0  ;;  %v7001_v45 = vld [vmem:[%s9122_s2 + $0x7c0] ss:$8 sps:$4 sm:$0xff]   ;;  %v7015_v37 = vld [vmem:[%s9122_s2 + $0x7e4] ss:$8 sps:$4 sm:$0xff]  }
 0x19d   : > { %4797 = vmatprep.subr.bf16.mxu0 %v6976_v57  ;;  %v8301_v8 = vpack.c.bf16 %v2149_v2, %v2124_v61  ;;  %v2001_v48 = vpop.f32.mrb[46].mxu0  ;;  %v7009_v57 = vld [vmem:[%s9122_s2 + $0x7d4] ss:$8 sps:$4 sm:$0xff]   ;;  %v7013_v2 = vld [vmem:[%s9122_s2 + $0x7e0] ss:$8 sps:$4 sm:$0xff]  }
 0x19e   : > { %v2002_v52 = vpop.f32.mrb[47].mxu0  ;;  %v7045_v48 = vld [vmem:[%s9122_s2 + $0x834] ss:$8 sps:$4 sm:$0xff]  }
 0x19f   : > { %4785 = vmatmul.mubr.bf16.gmra.mrb[56].mxu0 %v2207_v3  ;;  %5012 = vmatpush1.bf16.msra.mxu1 %v6971_v63  ;;  %v7010_v63 = vld [vmem:[%s9122_s2 + $0x380] ss:$8 sps:$4 sm:$0xff]   ;;  %v7016_v3 = vld [vmem:[%s9122_s2 + $0x390] ss:$8 sps:$4 sm:$0xff]  }
 0x1a0   : > { %4798 = vmatpush1.bf16.msra.mxu0 %v6974_v26  ;;  %4825 = vmatprep.mubr.bf16.mxu0 %v7903_v22  ;;  %v6986_v22 = vld [vmem:[%s9122_s2 + $0x340] ss:$8 sps:$4 sm:$0xff]   ;;  %v7018_v26 = vld [vmem:[%s9122_s2 + $0x394] ss:$8 sps:$4 sm:$0xff]   ;;  %v7043_v52 = vld [vmem:[%s9122_s2 + $0x830] ss:$8 sps:$4 sm:$0xff]  }
 0x1a1   : > { %5013 = vmatprep.subr.bf16.mxu1 %v6979_v4  ;;  %4799 = vmatprep.subr.bf16.mxu0 %v6982_v47  ;;  %v7021_v4 = vld [vmem:[%s9122_s2 + $0x7f4] ss:$8 sps:$4 sm:$0xff]   ;;  %v7024_v47 = vld [vmem:[%s9122_s2 + $0x3a4] ss:$8 sps:$4 sm:$0xff]  }
 0x1a3   : > { %5014 = vmatpush1.bf16.msra.mxu1 %v6977_v32  ;;  %v7019_v32 = vld [vmem:[%s9122_s2 + $0x7f0] ss:$8 sps:$4 sm:$0xff]  }
 0x1a4   : > { %4800 = vmatpush1.bf16.msra.mxu0 %v6980_v9  ;;  %5015 = vmatprep.subr.bf16.mxu1 %v6985_v43  ;;  %v7022_v9 = vld [vmem:[%s9122_s2 + $0x3a0] ss:$8 sps:$4 sm:$0xff]   ;;  %v7027_v43 = vld [vmem:[%s9122_s2 + $0x804] ss:$8 sps:$4 sm:$0xff]  }
 0x1a5   : > { %4801 = vmatprep.subr.bf16.mxu0 %v6988_v12  ;;  %v2168_v12 = vmax.f32 %v8083_v39, 0.0  ;;  %v7033_v39 = vld [vmem:[%s9122_s2 + $0x814] ss:$8 sps:$4 sm:$0xff]  }
 0x1a7   : > { %5016 = vmatpush1.bf16.msra.mxu1 %v6983_v14  ;;  %v7030_v14 = vld [vmem:[%s9122_s2 + $0x3b4] ss:$8 sps:$4 sm:$0xff]  }
 0x1a8   : > { %4802 = vmatpush1.bf16.msra.mxu0 %v6986_v22  ;;  %5017 = vmatprep.subr.bf16.mxu1 %v6991_v15  ;;  %v7025_v22 = vld [vmem:[%s9122_s2 + $0x800] ss:$8 sps:$4 sm:$0xff]   ;;  %v7028_v15 = vld [vmem:[%s9122_s2 + $0x3b0] ss:$8 sps:$4 sm:$0xff]  }
 0x1a9   : > { %4803 = vmatprep.subr.bf16.mxu0 %v6994_v16  ;;  %v8356_v54 = vpop.f32.mrb[48].mxu0  ;;  %v2218_v16 = vpack.c.bf16 %v2168_v12, %v2168_v12  ;;  %v7076_v12 = vld [vmem:[%s9122_s2 + $0x430] ss:$8 sps:$4 sm:$0xff]  }
 0x1aa   : > { %v2089_v21 = vpop.f32.mrb[49].mxu0 }
 0x1ab   : > { %5018 = vmatpush1.bf16.msra.mxu1 %v6989_v18  ;;  %v2127_v38 = vmax.f32 %v2089_v21, 0.0  ;;  %v6255_v60 = vpop.f32.mrb[50].mxu0  ;;  %v7036_v18 = vld [vmem:[%s9122_s2 + $0x3c4] ss:$8 sps:$4 sm:$0xff]  }
 0x1ac   : > { %4804 = vmatpush1.bf16.msra.mxu0 %v6992_v24  ;;  %5019 = vmatprep.subr.bf16.mxu1 %v6997_v30  ;;  %v2092_v31 = vpop.f32.mrb[51].mxu0  ;;  %v7031_v24 = vld [vmem:[%s9122_s2 + $0x810] ss:$8 sps:$4 sm:$0xff]   ;;  %v2167_v30 = vmax.f32 %v8078_v35, 0.0  ;;  %v7037_v35 = vld [vmem:[%s9122_s2 + $0x820] ss:$8 sps:$4 sm:$0xff]  }
 0x1ad   : > { %4805 = vmatprep.subr.bf16.mxu0 %v7000_v29  ;;  %v2152_v61 = vmax.f32 %v2092_v31, 0.0  ;;  %v7034_v29 = vld [vmem:[%s9122_s2 + $0x3c0] ss:$8 sps:$4 sm:$0xff]   ;;  %v7051_v21 = vld [vmem:[%s9122_s2 + $0x844] ss:$8 sps:$4 sm:$0xff]  }
 0x1ae   : > { %v7060_v60 = vld [vmem:[%s9122_s2 + $0x404] ss:$8 sps:$4 sm:$0xff]   ;;  %v7055_v31 = vld [vmem:[%s9122_s2 + $0x850] ss:$8 sps:$4 sm:$0xff]  }
 0x1af   : > { %5020 = vmatpush1.bf16.msra.mxu1 %v6995_v40  ;;  %v8379_v1 = vpack.c.bf16 %v2152_v61, %v2127_v38  ;;  %v7039_v40 = vld [vmem:[%s9122_s2 + $0x824] ss:$8 sps:$4 sm:$0xff]   ;;  %v7057_v38 = vld [vmem:[%s9122_s2 + $0x854] ss:$8 sps:$4 sm:$0xff]   ;;  %v7058_v61 = vld [vmem:[%s9122_s2 + $0x400] ss:$8 sps:$4 sm:$0xff]  }
 0x1b0   : > { %4806 = vmatpush1.bf16.msra.mxu0 %v6998_v42  ;;  %5021 = vmatprep.subr.bf16.mxu1 %v7003_v28  ;;  %v2217_v42 = vpack.c.bf16 %v2167_v30, %v2167_v30  ;;  %v7040_v28 = vld [vmem:[%s9122_s2 + $0x3d0] ss:$8 sps:$4 sm:$0xff]   ;;  %v7093_v30 = vld [vmem:[%s9122_s2 + $0x8b4] ss:$8 sps:$4 sm:$0xff]  }
 0x1b1   : > { %4807 = vmatprep.subr.bf16.mxu0 %v7006_v51  ;;  %v7048_v51 = vld [vmem:[%s9122_s2 + $0x3e4] ss:$8 sps:$4 sm:$0xff]  }
 0x1b3   : > { %5022 = vmatpush1.bf16.msra.mxu1 %v7001_v45  ;;  %v7046_v45 = vld [vmem:[%s9122_s2 + $0x3e0] ss:$8 sps:$4 sm:$0xff]  }
 0x1b4   : > { %4808 = vmatpush1.bf16.msra.mxu0 %v7004_v56  ;;  %5023 = vmatprep.subr.bf16.mxu1 %v7009_v57  ;;  %v7054_v56 = vld [vmem:[%s9122_s2 + $0x3f4] ss:$8 sps:$4 sm:$0xff]   ;;  %v7052_v57 = vld [vmem:[%s9122_s2 + $0x3f0] ss:$8 sps:$4 sm:$0xff]  }
 0x1b5   : > { %4809 = vmatprep.subr.bf16.mxu0 %v7012_v11  ;;  %v2160_v11 = vmax.f32 %v7914_v27, 0.0  ;;  %v7066_v27 = vld [vmem:[%s9122_s2 + $0x414] ss:$8 sps:$4 sm:$0xff]  }
 0x1b7   : > { %5024 = vmatpush1.bf16.msra.mxu1 %v7007_v62  ;;  %v7063_v62 = vld [vmem:[%s9122_s2 + $0x864] ss:$8 sps:$4 sm:$0xff]  }
 0x1b8   : > { %4810 = vmatpush1.bf16.msra.mxu0 %v7010_v63  ;;  %5025 = vmatprep.subr.bf16.mxu1 %v7015_v37  ;;  %v2210_v63 = vpack.c.bf16 %v2160_v11, %v2160_v11  ;;  %v7061_v37 = vld [vmem:[%s9122_s2 + $0x860] ss:$8 sps:$4 sm:$0xff]   ;;  %v7120_v11 = vld [vmem:[%s9122_s2 + $0x4a4] ss:$8 sps:$4 sm:$0xff]  }
 0x1b9   : > { %4811 = vmatprep.subr.bf16.mxu0 %v7018_v26  ;;  %v7064_v26 = vld [vmem:[%s9122_s2 + $0x410] ss:$8 sps:$4 sm:$0xff]  }
 0x1bb   : > { %5026 = vmatpush1.bf16.msra.mxu1 %v7013_v2  ;;  %v7069_v2 = vld [vmem:[%s9122_s2 + $0x874] ss:$8 sps:$4 sm:$0xff]  }
 0x1bc   : > { %4812 = vmatpush1.bf16.msra.mxu0 %v7016_v3  ;;  %5027 = vmatprep.subr.bf16.mxu1 %v7021_v4  ;;  %v2159_v3 = vmax.f32 %v7910_v25, 0.0  ;;  %v7067_v4 = vld [vmem:[%s9122_s2 + $0x870] ss:$8 sps:$4 sm:$0xff]   ;;  %v7075_v25 = vld [vmem:[%s9122_s2 + $0x884] ss:$8 sps:$4 sm:$0xff]  }
 0x1bd   : > { %4813 = vmatprep.subr.bf16.mxu0 %v7024_v47  ;;  %v7070_v47 = vld [vmem:[%s9122_s2 + $0x420] ss:$8 sps:$4 sm:$0xff]  }
 0x1bf   : > { %5028 = vmatpush1.bf16.msra.mxu1 %v7019_v32  ;;  %v2209_v32 = vpack.c.bf16 %v2159_v3, %v2159_v3  ;;  %v7132_v3 = vld [vmem:[%s9122_s2 + $0x4c4] ss:$8 sps:$4 sm:$0xff]  }
 0x1c0   : > { %4814 = vmatpush1.bf16.msra.mxu0 %v7022_v9  ;;  %5048 = vmatprep.subr.bf16.mxu1 %v7027_v43  ;;  %v7078_v9 = vld [vmem:[%s9122_s2 + $0x434] ss:$8 sps:$4 sm:$0xff]   ;;  %v7073_v43 = vld [vmem:[%s9122_s2 + $0x880] ss:$8 sps:$4 sm:$0xff]  }
 0x1c1   : > { %4815 = vmatprep.subr.bf16.mxu0 %v7030_v14  ;;  %v7081_v14 = vld [vmem:[%s9122_s2 + $0x894] ss:$8 sps:$4 sm:$0xff]  }
 0x1c2   : > { %5030 = vmatmul.mubr.bf16.vlgmr.msra.gmra.mrb[48].mxu1 %v8060_v20  ;;  %v7042_v20 = vld [vmem:[%s9122_s2 + $0x3d4] ss:$8 sps:$4 sm:$0xff]  }
 0x1c3   : > { %5039 = vmatprep.mubr.bf16.mxu1 %v2218_v16  ;;  %5049 = vmatpush1.bf16.msra.mxu1 %v7025_v22  ;;  %v7084_v22 = vld [vmem:[%s9122_s2 + $0x444] ss:$8 sps:$4 sm:$0xff]   ;;  %v7090_v16 = vld [vmem:[%s9122_s2 + $0x454] ss:$8 sps:$4 sm:$0xff]  }
 0x1c4   : > { %4816 = vmatpush1.bf16.msra.mxu0 %v7028_v15  ;;  %5050 = vmatprep.subr.bf16.mxu1 %v7033_v39  ;;  %v7079_v15 = vld [vmem:[%s9122_s2 + $0x890] ss:$8 sps:$4 sm:$0xff]   ;;  %v7087_v39 = vld [vmem:[%s9122_s2 + $0x8a4] ss:$8 sps:$4 sm:$0xff]  }
 0x1c5   : > { %4817 = vmatprep.subr.bf16.mxu0 %v7036_v18  ;;  %v7085_v18 = vld [vmem:[%s9122_s2 + $0x8a0] ss:$8 sps:$4 sm:$0xff]  }
 0x1c7   : > { %5051 = vmatpush1.bf16.msra.mxu1 %v7031_v24  ;;  %v7088_v24 = vld [vmem:[%s9122_s2 + $0x450] ss:$8 sps:$4 sm:$0xff]  }
 0x1c8   : > { %4818 = vmatpush1.bf16.msra.mxu0 %v7034_v29  ;;  %5052 = vmatprep.subr.bf16.mxu1 %v7039_v40  ;;  %v7096_v29 = vld [vmem:[%s9122_s2 + $0x464] ss:$8 sps:$4 sm:$0xff]   ;;  %v7091_v40 = vld [vmem:[%s9122_s2 + $0x8b0] ss:$8 sps:$4 sm:$0xff]  }
 0x1c9   : > { %4819 = vmatprep.subr.bf16.mxu0 %v7042_v20  ;;  %v7094_v20 = vld [vmem:[%s9122_s2 + $0x460] ss:$8 sps:$4 sm:$0xff]  }
 0x1ca   : > { %5040 = vmatmul.mubr.bf16.gmra.mrb[52].mxu1 %v2217_v42  ;;  %v7102_v42 = vld [vmem:[%s9122_s2 + $0x474] ss:$8 sps:$4 sm:$0xff]  }
 0x1cb   : > { %5053 = vmatpush1.bf16.msra.mxu1 %v7037_v35  ;;  %5080 = vmatprep.mubr.bf16.mxu1 %v8180_v50  ;;  %v7049_v50 = vld [vmem:[%s9122_s2 + $0x840] ss:$8 sps:$4 sm:$0xff]   ;;  %v7099_v35 = vld [vmem:[%s9122_s2 + $0x8c4] ss:$8 sps:$4 sm:$0xff]  }
 0x1cc   : > { %4820 = vmatpush1.bf16.msra.mxu0 %v7040_v28  ;;  %5054 = vmatprep.subr.bf16.mxu1 %v7045_v48  ;;  %v7097_v28 = vld [vmem:[%s9122_s2 + $0x8c0] ss:$8 sps:$4 sm:$0xff]   ;;  %v7100_v48 = vld [vmem:[%s9122_s2 + $0x470] ss:$8 sps:$4 sm:$0xff]  }
 0x1cd   : > { %4821 = vmatprep.subr.bf16.mxu0 %v7048_v51  ;;  %v7105_v51 = vld [vmem:[%s9122_s2 + $0x8d4] ss:$8 sps:$4 sm:$0xff]  }
 0x1cf   : > { %5055 = vmatpush1.bf16.msra.mxu1 %v7043_v52  ;;  %v7108_v52 = vld [vmem:[%s9122_s2 + $0x484] ss:$8 sps:$4 sm:$0xff]  }
 0x1d0   : > { %4822 = vmatpush1.bf16.msra.mxu0 %v7046_v45  ;;  %5056 = vmatprep.subr.bf16.mxu1 %v7051_v21  ;;  %v7103_v45 = vld [vmem:[%s9122_s2 + $0x8d0] ss:$8 sps:$4 sm:$0xff]   ;;  %v7106_v21 = vld [vmem:[%s9122_s2 + $0x480] ss:$8 sps:$4 sm:$0xff]  }
 0x1d1   : > { %4823 = vmatprep.subr.bf16.mxu0 %v7054_v56  ;;  %v7111_v56 = vld [vmem:[%s9122_s2 + $0x8e4] ss:$8 sps:$4 sm:$0xff]  }
 0x1d3   : > { %5057 = vmatpush1.bf16.msra.mxu1 %v7049_v50  ;;  %v7114_v50 = vld [vmem:[%s9122_s2 + $0x494] ss:$8 sps:$4 sm:$0xff]  }
 0x1d4   : > { %4824 = vmatpush1.bf16.msra.mxu0 %v7052_v57  ;;  %5058 = vmatprep.subr.bf16.mxu1 %v7057_v38  ;;  %v7109_v57 = vld [vmem:[%s9122_s2 + $0x8e0] ss:$8 sps:$4 sm:$0xff]   ;;  %v7112_v38 = vld [vmem:[%s9122_s2 + $0x490] ss:$8 sps:$4 sm:$0xff]  }
 0x1d5   : > { %4844 = vmatprep.subr.bf16.mxu0 %v7060_v60  ;;  %v7117_v60 = vld [vmem:[%s9122_s2 + $0x8f4] ss:$8 sps:$4 sm:$0xff]  }
 0x1d7   : > { %4826 = vmatmul.mubr.bf16.vlgmr.msra.gmra.mrb[52].mxu0 %v7896_v19  ;;  %5059 = vmatpush1.bf16.msra.mxu1 %v7055_v31  ;;  %v7072_v19 = vld [vmem:[%s9122_s2 + $0x424] ss:$8 sps:$4 sm:$0xff]   ;;  %v7115_v31 = vld [vmem:[%s9122_s2 + $0x8f0] ss:$8 sps:$4 sm:$0xff]  }
 0x1d8   : > { %4835 = vmatprep.mubr.bf16.mxu0 %v2210_v63  ;;  %4845 = vmatpush1.bf16.msra.mxu0 %v7058_v61  ;;  %v2170_v61 = vmax.f32 %v8204_v59, 0.0  ;;  %v7126_v63 = vld [vmem:[%s9122_s2 + $0x4b4] ss:$8 sps:$4 sm:$0xff]   ;;  %v7121_v59 = vld [vmem:[%s9122_s2 + $0x900] ss:$8 sps:$4 sm:$0xff]  }
 0x1d9   : > { %5060 = vmatprep.subr.bf16.mxu1 %v7063_v62  ;;  %4846 = vmatprep.subr.bf16.mxu0 %v7066_v27  ;;  %v7118_v62 = vld [vmem:[%s9122_s2 + $0x4a0] ss:$8 sps:$4 sm:$0xff]   ;;  %v7123_v27 = vld [vmem:[%s9122_s2 + $0x904] ss:$8 sps:$4 sm:$0xff]  }
 0x1db   : > { %5061 = vmatpush1.bf16.msra.mxu1 %v7061_v37  ;;  %v2220_v37 = vpack.c.bf16 %v2170_v61, %v2170_v61  ;;  %v7186_v61 = vld [vmem:[%s9122_s2 + $0xc54] ss:$8 sps:$4 sm:$0xff]  }
 0x1dc   : > { %4847 = vmatpush1.bf16.msra.mxu0 %v7064_v26  ;;  %5062 = vmatprep.subr.bf16.mxu1 %v7069_v2  ;;  %v7124_v26 = vld [vmem:[%s9122_s2 + $0x4b0] ss:$8 sps:$4 sm:$0xff]   ;;  %v7129_v2 = vld [vmem:[%s9122_s2 + $0x914] ss:$8 sps:$4 sm:$0xff]  }
 0x1dd   : > { %4848 = vmatprep.subr.bf16.mxu0 %v7072_v19  ;;  %v2169_v19 = vmax.f32 %v8199_v58, 0.0 }
 0x1df   : > { %4836 = vmatmul.mubr.bf16.gmra.mrb[56].mxu0 %v2209_v32  ;;  %5063 = vmatpush1.bf16.msra.mxu1 %v7067_v4  ;;  %v7127_v4 = vld [vmem:[%s9122_s2 + $0x910] ss:$8 sps:$4 sm:$0xff]   ;;  %v7135_v32 = vld [vmem:[%s9122_s2 + $0x924] ss:$8 sps:$4 sm:$0xff]   ;;  %v2219_v58 = vpack.c.bf16 %v2169_v19, %v2169_v19  ;;  %v7193_v19 = vld [vmem:[%s9122_s2 + $0x9c0] ss:$8 sps:$4 sm:$0xff]  }
 0x1e0   : > { %4849 = vmatpush1.bf16.msra.mxu0 %v7070_v47  ;;  %4876 = vmatprep.mubr.bf16.mxu0 %v7965_v7  ;;  %v7082_v7 = vld [vmem:[%s9122_s2 + $0x440] ss:$8 sps:$4 sm:$0xff]  }
 0x1e1   : > { %5064 = vmatprep.subr.bf16.mxu1 %v7075_v25  ;;  %4850 = vmatprep.subr.bf16.mxu0 %v7078_v9  ;;  %v7130_v47 = vld [vmem:[%s9122_s2 + $0x4c0] ss:$8 sps:$4 sm:$0xff]   ;;  %v7136_v9 = vld [vmem:[%s9122_s2 + $0x4d0] ss:$8 sps:$4 sm:$0xff]  }
 0x1e2   : > { %v7133_v25 = vld [vmem:[%s9122_s2 + $0x920] ss:$8 sps:$4 sm:$0xff]  }
 0x1e3   : > { %5065 = vmatpush1.bf16.msra.mxu1 %v7073_v43  ;;  %v7141_v43 = vld [vmem:[%s9122_s2 + $0x934] ss:$8 sps:$4 sm:$0xff]  }
 0x1e4   : > { %4851 = vmatpush1.bf16.msra.mxu0 %v7076_v12  ;;  %5066 = vmatprep.subr.bf16.mxu1 %v7081_v14  ;;  %v7144_v12 = vld [vmem:[%s9122_s2 + $0x4e4] ss:$8 sps:$4 sm:$0xff]   ;;  %v7139_v14 = vld [vmem:[%s9122_s2 + $0x930] ss:$8 sps:$4 sm:$0xff]  }
 0x1e5   : > { %4852 = vmatprep.subr.bf16.mxu0 %v7084_v22  ;;  %v7142_v22 = vld [vmem:[%s9122_s2 + $0x4e0] ss:$8 sps:$4 sm:$0xff]  }
 0x1e7   : > { %5067 = vmatpush1.bf16.msra.mxu1 %v7079_v15  ;;  %v7147_v15 = vld [vmem:[%s9122_s2 + $0x944] ss:$8 sps:$4 sm:$0xff]  }
 0x1e8   : > { %4853 = vmatpush1.bf16.msra.mxu0 %v7082_v7  ;;  %5068 = vmatprep.subr.bf16.mxu1 %v7087_v39  ;;  %v7150_v7 = vld [vmem:[%s9122_s2 + $0x4f4] ss:$8 sps:$4 sm:$0xff]   ;;  %v7148_v39 = vld [vmem:[%s9122_s2 + $0x4f0] ss:$8 sps:$4 sm:$0xff]  }
 0x1e9   : > { %4854 = vmatprep.subr.bf16.mxu0 %v7090_v16  ;;  %v7153_v16 = vld [vmem:[%s9122_s2 + $0x954] ss:$8 sps:$4 sm:$0xff]  }
 0x1eb   : > { %5069 = vmatpush1.bf16.msra.mxu1 %v7085_v18  ;;  %v7156_v18 = vld [vmem:[%s9122_s2 + $0xc04] ss:$8 sps:$4 sm:$0xff]  }
 0x1ec   : > { %4855 = vmatpush1.bf16.msra.mxu0 %v7088_v24  ;;  %5070 = vmatprep.subr.bf16.mxu1 %v7093_v30  ;;  %v2162_v24 = vmax.f32 %v7978_v13, 0.0  ;;  %v7151_v30 = vld [vmem:[%s9122_s2 + $0x950] ss:$8 sps:$4 sm:$0xff]   ;;  %v7162_v13 = vld [vmem:[%s9122_s2 + $0xc14] ss:$8 sps:$4 sm:$0xff]  }
 0x1ed   : > { %4856 = vmatprep.subr.bf16.mxu0 %v7096_v29  ;;  %v7154_v29 = vld [vmem:[%s9122_s2 + $0xc00] ss:$8 sps:$4 sm:$0xff]  }
 0x1ef   : > { %5071 = vmatpush1.bf16.msra.mxu1 %v7091_v40  ;;  %v7159_v40 = vld [vmem:[%s9122_s2 + $0x964] ss:$8 sps:$4 sm:$0xff]  }
 0x1f0   : > { %4857 = vmatpush1.bf16.msra.mxu0 %v7094_v20  ;;  %5072 = vmatprep.subr.bf16.mxu1 %v7099_v35  ;;  %v2212_v20 = vpack.c.bf16 %v2162_v24, %v2162_v24  ;;  %v7157_v35 = vld [vmem:[%s9122_s2 + $0x960] ss:$8 sps:$4 sm:$0xff]   ;;  %v7225_v24 = vld [vmem:[%s9122_s2 + $0xa54] ss:$8 sps:$4 sm:$0xff]  }
 0x1f1   : > { %4858 = vmatprep.subr.bf16.mxu0 %v7102_v42  ;;  %v7160_v42 = vld [vmem:[%s9122_s2 + $0xc10] ss:$8 sps:$4 sm:$0xff]  }
 0x1f3   : > { %5073 = vmatpush1.bf16.msra.mxu1 %v7097_v28  ;;  %v7165_v28 = vld [vmem:[%s9122_s2 + $0x974] ss:$8 sps:$4 sm:$0xff]  }
 0x1f4   : > { %4859 = vmatpush1.bf16.msra.mxu0 %v7100_v48  ;;  %5074 = vmatprep.subr.bf16.mxu1 %v7105_v51  ;;  %v2161_v48 = vmax.f32 %v7973_v10, 0.0  ;;  %v7163_v51 = vld [vmem:[%s9122_s2 + $0x970] ss:$8 sps:$4 sm:$0xff]   ;;  %v7171_v10 = vld [vmem:[%s9122_s2 + $0x984] ss:$8 sps:$4 sm:$0xff]  }
 0x1f5   : > { %4860 = vmatprep.subr.bf16.mxu0 %v7108_v52  ;;  %v7166_v52 = vld [vmem:[%s9122_s2 + $0xc20] ss:$8 sps:$4 sm:$0xff]  }
 0x1f7   : > { %5075 = vmatpush1.bf16.msra.mxu1 %v7103_v45  ;;  %v2211_v45 = vpack.c.bf16 %v2161_v48, %v2161_v48  ;;  %v7240_v48 = vld [vmem:[%s9122_s2 + $0xaa4] ss:$8 sps:$4 sm:$0xff]  }
 0x1f8   : > { %4861 = vmatpush1.bf16.msra.mxu0 %v7106_v21  ;;  %5076 = vmatprep.subr.bf16.mxu1 %v7111_v56  ;;  %v7174_v21 = vld [vmem:[%s9122_s2 + $0xc34] ss:$8 sps:$4 sm:$0xff]   ;;  %v7169_v56 = vld [vmem:[%s9122_s2 + $0x980] ss:$8 sps:$4 sm:$0xff]  }
 0x1f9   : > { %4862 = vmatprep.subr.bf16.mxu0 %v7114_v50  ;;  %v7172_v50 = vld [vmem:[%s9122_s2 + $0xc30] ss:$8 sps:$4 sm:$0xff]  }
 0x1fb   : > { %5077 = vmatpush1.bf16.msra.mxu1 %v7109_v57  ;;  %v7177_v57 = vld [vmem:[%s9122_s2 + $0x994] ss:$8 sps:$4 sm:$0xff]  }
 0x1fc   : > { %4863 = vmatpush1.bf16.msra.mxu0 %v7112_v38  ;;  %5078 = vmatprep.subr.bf16.mxu1 %v7117_v60  ;;  %v7180_v38 = vld [vmem:[%s9122_s2 + $0xc44] ss:$8 sps:$4 sm:$0xff]   ;;  %v7175_v60 = vld [vmem:[%s9122_s2 + $0x990] ss:$8 sps:$4 sm:$0xff]  }
 0x1fd   : > { %4864 = vmatprep.subr.bf16.mxu0 %v7120_v11  ;;  %v7178_v11 = vld [vmem:[%s9122_s2 + $0xc40] ss:$8 sps:$4 sm:$0xff]  }
 0x1ff   : > { %5079 = vmatpush1.bf16.msra.mxu1 %v7115_v31  ;;  %v7183_v31 = vld [vmem:[%s9122_s2 + $0x9a4] ss:$8 sps:$4 sm:$0xff]  }
 0x200   : > { %4865 = vmatpush1.bf16.msra.mxu0 %v7118_v62  ;;  %5099 = vmatprep.subr.bf16.mxu1 %v7123_v27  ;;  %v7181_v62 = vld [vmem:[%s9122_s2 + $0x9a0] ss:$8 sps:$4 sm:$0xff]   ;;  %v7184_v27 = vld [vmem:[%s9122_s2 + $0xc50] ss:$8 sps:$4 sm:$0xff]  }
 0x201   : > { %4866 = vmatprep.subr.bf16.mxu0 %v7126_v63  ;;  %v7189_v63 = vld [vmem:[%s9122_s2 + $0x9b4] ss:$8 sps:$4 sm:$0xff]  }
 0x202   : > { %5081 = vmatmul.mubr.bf16.vlgmr.msra.gmra.mrb[48].mxu1 %v8170_v44  ;;  %v7138_v44 = vld [vmem:[%s9122_s2 + $0x4d4] ss:$8 sps:$4 sm:$0xff]  }
 0x203   : > { %5100 = vmatpush1.bf16.msra.mxu1 %v7121_v59  ;;  %5090 = vmatprep.mubr.bf16.mxu1 %v2220_v37  ;;  %v7192_v59 = vld [vmem:[%s9122_s2 + $0xc64] ss:$8 sps:$4 sm:$0xff]   ;;  %v7187_v37 = vld [vmem:[%s9122_s2 + $0x9b0] ss:$8 sps:$4 sm:$0xff]  }
 0x204   : > { %4867 = vmatpush1.bf16.msra.mxu0 %v7124_v26  ;;  %5101 = vmatprep.subr.bf16.mxu1 %v7129_v2  ;;  %v7190_v26 = vld [vmem:[%s9122_s2 + $0xc60] ss:$8 sps:$4 sm:$0xff]   ;;  %v7195_v2 = vld [vmem:[%s9122_s2 + $0x9c4] ss:$8 sps:$4 sm:$0xff]  }
 0x205   : > { %4868 = vmatprep.subr.bf16.mxu0 %v7132_v3  ;;  %v7198_v3 = vld [vmem:[%s9122_s2 + $0xc74] ss:$8 sps:$4 sm:$0xff]  }
 0x207   : > { %5102 = vmatpush1.bf16.msra.mxu1 %v7127_v4  ;;  %v7196_v4 = vld [vmem:[%s9122_s2 + $0xc70] ss:$8 sps:$4 sm:$0xff]  }
 0x208   : > { %4869 = vmatpush1.bf16.msra.mxu0 %v7130_v47  ;;  %5103 = vmatprep.subr.bf16.mxu1 %v7135_v32  ;;  %v7201_v47 = vld [vmem:[%s9122_s2 + $0x9d4] ss:$8 sps:$4 sm:$0xff]   ;;  %v7199_v32 = vld [vmem:[%s9122_s2 + $0x9d0] ss:$8 sps:$4 sm:$0xff]  }
 0x209   : > { %4870 = vmatprep.subr.bf16.mxu0 %v7138_v44  ;;  %v7204_v44 = vld [vmem:[%s9122_s2 + $0x9e4] ss:$8 sps:$4 sm:$0xff]  }
 0x20a   : > { %5091 = vmatmul.mubr.bf16.gmra.mrb[52].mxu1 %v2219_v58  ;;  %v7202_v58 = vld [vmem:[%s9122_s2 + $0x9e0] ss:$8 sps:$4 sm:$0xff]  }
 0x20b   : > { %5104 = vmatpush1.bf16.msra.mxu1 %v7133_v25  ;;  %5131 = vmatprep.mubr.bf16.mxu1 %v8162_v33  ;;  %v7145_v33 = vld [vmem:[%s9122_s2 + $0x940] ss:$8 sps:$4 sm:$0xff]   ;;  %v7207_v25 = vld [vmem:[%s9122_s2 + $0x9f4] ss:$8 sps:$4 sm:$0xff]  }
 0x20c   : > { %4871 = vmatpush1.bf16.msra.mxu0 %v7136_v9  ;;  %5105 = vmatprep.subr.bf16.mxu1 %v7141_v43  ;;  %v2177_v9 = vmax.f32 %v8356_v54, 0.0  ;;  %v7205_v43 = vld [vmem:[%s9122_s2 + $0x9f0] ss:$8 sps:$4 sm:$0xff]   ;;  %v7213_v54 = vld [vmem:[%s9122_s2 + $0xa14] ss:$8 sps:$4 sm:$0xff]  }
 0x20d   : > { %4872 = vmatprep.subr.bf16.mxu0 %v7144_v12  ;;  %v2172_v12 = vmax.f32 %v8178_v49, 0.0  ;;  %v7211_v49 = vld [vmem:[%s9122_s2 + $0xa10] ss:$8 sps:$4 sm:$0xff]  }
 0x20f   : > { %5106 = vmatpush1.bf16.msra.mxu1 %v7139_v14  ;;  %v2227_v14 = vpack.c.bf16 %v2177_v9, %v2177_v9  ;;  %v5312_v9 = vld [vmem:[%s9124_s4 + $0x18] sm:$0xff] }
 0x210   : > { %4873 = vmatpush1.bf16.msra.mxu0 %v7142_v22  ;;  %5107 = vmatprep.subr.bf16.mxu1 %v7147_v15  ;;  %v2222_v22 = vpack.c.bf16 %v2172_v12, %v2172_v12  ;;  %v2171_v15 = vmax.f32 %v8168_v23, 0.0  ;;  %v7217_v23 = vld [vmem:[%s9122_s2 + $0xa30] ss:$8 sps:$4 sm:$0xff]  }
 0x211   : > { %4874 = vmatprep.subr.bf16.mxu0 %v7150_v7  ;;  %v7216_v7 = vld [vmem:[%s9122_s2 + $0xa24] ss:$8 sps:$4 sm:$0xff]  }
 0x213   : > { %5108 = vmatpush1.bf16.msra.mxu1 %v7145_v33  ;;  %v7214_v33 = vld [vmem:[%s9122_s2 + $0xa20] ss:$8 sps:$4 sm:$0xff]  }
 0x214   : > { %4875 = vmatpush1.bf16.msra.mxu0 %v7148_v39  ;;  %5109 = vmatprep.subr.bf16.mxu1 %v7153_v16  ;;  %v2221_v39 = vpack.c.bf16 %v2171_v15, %v2171_v15  ;;  %v7222_v16 = vld [vmem:[%s9122_s2 + $0xa44] ss:$8 sps:$4 sm:$0xff]   ;;  %v5315_v15 = vld [vmem:[%s9124_s4 + $0x30] sm:$0xff] }
 0x215   : > { %5252 = vmatprep.subr.bf16.mxu0 %v7156_v18  ;;  %v7220_v18 = vld [vmem:[%s9122_s2 + $0xa40] ss:$8 sps:$4 sm:$0xff]  }
 0x217   : > { %4877 = vmatmul.mubr.bf16.vlgmr.msra.gmra.mrb[52].mxu0 %v7963_v5  ;;  %5110 = vmatpush1.bf16.msra.mxu1 %v7151_v30  ;;  %v7168_v5 = vld [vmem:[%s9122_s2 + $0xc24] ss:$8 sps:$4 sm:$0xff]  }
 0x218   : > { %4886 = vmatprep.mubr.bf16.mxu0 %v2212_v20  ;;  %5253 = vmatpush1.bf16.msra.mxu0 %v7154_v29  ;;  %v7228_v30 = vld [vmem:[%s9122_s2 + $0xa64] ss:$8 sps:$4 sm:$0xff]   ;;  %v7226_v29 = vld [vmem:[%s9122_s2 + $0xa60] ss:$8 sps:$4 sm:$0xff]  }
 0x219   : > { %5111 = vmatprep.subr.bf16.mxu1 %v7159_v40  ;;  %5254 = vmatprep.subr.bf16.mxu0 %v7162_v13  ;;  %v7231_v40 = vld [vmem:[%s9122_s2 + $0xa74] ss:$8 sps:$4 sm:$0xff]   ;;  %v7229_v13 = vld [vmem:[%s9122_s2 + $0xa70] ss:$8 sps:$4 sm:$0xff]   ;;  %v7234_v20 = vld [vmem:[%s9122_s2 + $0xa84] ss:$8 sps:$4 sm:$0xff]  }
 0x21b   : > { %5112 = vmatpush1.bf16.msra.mxu1 %v7157_v35  ;;  %v7232_v35 = vld [vmem:[%s9122_s2 + $0xa80] ss:$8 sps:$4 sm:$0xff]  }
 0x21c   : > { %5255 = vmatpush1.bf16.msra.mxu0 %v7160_v42  ;;  %5113 = vmatprep.subr.bf16.mxu1 %v7165_v28  ;;  %v7237_v42 = vld [vmem:[%s9122_s2 + $0xa94] ss:$8 sps:$4 sm:$0xff]   ;;  %v7235_v28 = vld [vmem:[%s9122_s2 + $0xa90] ss:$8 sps:$4 sm:$0xff]  }
 0x21d   : > { %5256 = vmatprep.subr.bf16.mxu0 %v7168_v5  ;;  %v7238_v5 = vld [vmem:[%s9122_s2 + $0xaa0] ss:$8 sps:$4 sm:$0xff]  }
 0x21f   : > { %4887 = vmatmul.mubr.bf16.gmra.mrb[56].mxu0 %v2211_v45  ;;  %5114 = vmatpush1.bf16.msra.mxu1 %v7163_v51  ;;  %v7243_v51 = vld [vmem:[%s9122_s2 + $0xab4] ss:$8 sps:$4 sm:$0xff]   ;;  %v7244_v45 = vld [vmem:[%s9122_s2 + $0xac0] ss:$8 sps:$4 sm:$0xff]  }
 0x220   : > { %5257 = vmatpush1.bf16.msra.mxu0 %v7166_v52  ;;  %5115 = vmatprep.subr.bf16.mxu1 %v7171_v10  ;;  %v7241_v52 = vld [vmem:[%s9122_s2 + $0xab0] ss:$8 sps:$4 sm:$0xff]   ;;  %v7246_v10 = vld [vmem:[%s9122_s2 + $0xac4] ss:$8 sps:$4 sm:$0xff]  }
 0x221   : > { %5258 = vmatprep.subr.bf16.mxu0 %v7174_v21  ;;  %5284 = vmatprep.mubr.bf16.mxu0 %v7314_v0  ;;  %v7249_v21 = vld [vmem:[%s9122_s2 + $0xad4] ss:$8 sps:$4 sm:$0xff]  }
 0x223   : > { %5116 = vmatpush1.bf16.msra.mxu1 %v7169_v56  ;;  %v7247_v56 = vld [vmem:[%s9122_s2 + $0xad0] ss:$8 sps:$4 sm:$0xff]  }
 0x224   : > { %5259 = vmatpush1.bf16.msra.mxu0 %v7172_v50  ;;  %5117 = vmatprep.subr.bf16.mxu1 %v7177_v57  ;;  %v7252_v50 = vld [vmem:[%s9122_s2 + $0xae4] ss:$8 sps:$4 sm:$0xff]   ;;  %v7250_v57 = vld [vmem:[%s9122_s2 + $0xae0] ss:$8 sps:$4 sm:$0xff]  }
 0x225   : > { %5260 = vmatprep.subr.bf16.mxu0 %v7180_v38  ;;  %v7255_v38 = vld [vmem:[%s9122_s2 + $0xaf4] ss:$8 sps:$4 sm:$0xff]  }
 0x227   : > { %5118 = vmatpush1.bf16.msra.mxu1 %v7175_v60  ;;  %v7253_v60 = vld [vmem:[%s9122_s2 + $0xaf0] ss:$8 sps:$4 sm:$0xff]  }
 0x228   : > { %5261 = vmatpush1.bf16.msra.mxu0 %v7178_v11  ;;  %5119 = vmatprep.subr.bf16.mxu1 %v7183_v31  ;;  %v7258_v11 = vld [vmem:[%s9122_s2 + $0xb04] ss:$8 sps:$4 sm:$0xff]   ;;  %v2174_v31 = vmax.f32 %v8345_v41, 0.0  ;;  %v2173_v41 = vmax.f32 %v8337_v36, 0.0  ;;  %v7265_v36 = vld [vmem:[%s9122_s2 + $0xb30] ss:$8 sps:$4 sm:$0xff]  }
 0x229   : > { %5262 = vmatprep.subr.bf16.mxu0 %v7186_v61  ;;  %v7256_v61 = vld [vmem:[%s9122_s2 + $0xb00] ss:$8 sps:$4 sm:$0xff]  }
 0x22b   : > { %5120 = vmatpush1.bf16.msra.mxu1 %v7181_v62  ;;  %v7261_v62 = vld [vmem:[%s9122_s2 + $0xb14] ss:$8 sps:$4 sm:$0xff]  }
 0x22c   : > { %5263 = vmatpush1.bf16.msra.mxu0 %v7184_v27  ;;  %5121 = vmatprep.subr.bf16.mxu1 %v7189_v63  ;;  %v2224_v27 = vpack.c.bf16 %v2174_v31, %v2174_v31  ;;  %v7259_v63 = vld [vmem:[%s9122_s2 + $0xb10] ss:$8 sps:$4 sm:$0xff]  }
 0x22d   : > { %5264 = vmatprep.subr.bf16.mxu0 %v7192_v59  ;;  %v7264_v59 = vld [vmem:[%s9122_s2 + $0xb24] ss:$8 sps:$4 sm:$0xff]  }
 0x22f   : > { %5122 = vmatpush1.bf16.msra.mxu1 %v7187_v37  ;;  %v7262_v37 = vld [vmem:[%s9122_s2 + $0xb20] ss:$8 sps:$4 sm:$0xff]  }
 0x230   : > { %5265 = vmatpush1.bf16.msra.mxu0 %v7190_v26  ;;  %5123 = vmatprep.subr.bf16.mxu1 %v7195_v2  ;;  %v2223_v26 = vpack.c.bf16 %v2173_v41, %v2173_v41  ;;  %v7270_v2 = vld [vmem:[%s9122_s2 + $0xb44] ss:$8 sps:$4 sm:$0xff]  }
 0x231   : > { %5266 = vmatprep.subr.bf16.mxu0 %v7198_v3  ;;  %v7268_v3 = vld [vmem:[%s9122_s2 + $0xb40] ss:$8 sps:$4 sm:$0xff]  }
 0x233   : > { %5124 = vmatpush1.bf16.msra.mxu1 %v7193_v19  ;;  %v7273_v19 = vld [vmem:[%s9122_s2 + $0xb54] ss:$8 sps:$4 sm:$0xff]  }
 0x234   : > { %5267 = vmatpush1.bf16.msra.mxu0 %v7196_v4  ;;  %5125 = vmatprep.subr.bf16.mxu1 %v7201_v47  ;;  %v7276_v4 = vld [vmem:[%s9122_s2 + $0xb64] ss:$8 sps:$4 sm:$0xff]  }
 0x235   : > { %v5309_v47 = vld [vmem:[%s9124_s4] sm:$0xff] }
 0x237   : > { %5126 = vmatpush1.bf16.msra.mxu1 %v7199_v32  ;;  %5285 = vmatmul.mubr.bf16.vlgmr.msra.gmra.mrb[60].mxu0 %v8379_v1  ;;  %v7210_v1 = vld [vmem:[%s9122_s2 + $0xa04] ss:$8 sps:$4 sm:$0xff]  }
 0x238   : > { %5127 = vmatprep.subr.bf16.mxu1 %v7204_v44  ;;  %5294 = vmatprep.mubr.bf16.mxu0 %v7314_v0  ;;  %v7208_v0 = vld [vmem:[%s9122_s2 + $0xa00] ss:$8 sps:$4 sm:$0xff]   ;;  %v5311_v44 = vld [vmem:[%s9124_s4 + $0x10] sm:$0xff] }
 0x239   : > { %v5310_v32 = vld [vmem:[%s9124_s4 + $0x8] sm:$0xff]  ;;  %v6289_v12 = vpack.c.bf16 %v5312_v9, %v5311_v44  ;;  %v5328_v9 = vld [vmem:[%s9124_s4 + $0x98] sm:$0xff] }
 0x23b   : > { %5128 = vmatpush1.bf16.msra.mxu1 %v7202_v58  ;;  %v7316_v58 = vmov 0.0|0.0  }
 0x23c   : > { %5129 = vmatprep.subr.bf16.mxu1 %v7207_v25  ;;  %6285 = vmatprep.subr.bf16.mxu0 %v7316_v58  ;;  %v6286_v25 = vpack.c.bf16 %v5310_v32, %v5309_v47  ;;  %v5326_v47 = vld [vmem:[%s9124_s4 + $0x88] sm:$0xff] }
 0x23e   : > { %6287 = vmatpush1.bf16.msra.mxu0 %v6286_v25  ;;  %v5327_v25 = vld [vmem:[%s9124_s4 + $0x90] sm:$0xff] }
 0x23f   : > { %5130 = vmatpush1.bf16.msra.mxu1 %v7205_v43  ;;  %5295 = vmatmul.mubr.bf16.gmra.mrb[64].mxu0 %v2227_v14  ;;  %v7274_v43 = vld [vmem:[%s9122_s2 + $0xb60] ss:$8 sps:$4 sm:$0xff]  }
 0x240   : > { %5150 = vmatprep.subr.bf16.mxu1 %v7210_v1  ;;  %v7279_v1 = vld [vmem:[%s9122_s2 + $0xb74] ss:$8 sps:$4 sm:$0xff]   ;;  %6288 = vmatprep.subr.bf16.mxu0 %v7316_v58  ;;  %v5313_v14 = vld [vmem:[%s9124_s4 + $0x20] sm:$0xff] }
 0x242   : > { %5132 = vmatmul.mubr.bf16.vlgmr.msra.gmra.mrb[48].mxu1 %v8157_v17  ;;  %v7219_v17 = vld [vmem:[%s9122_s2 + $0xa34] ss:$8 sps:$4 sm:$0xff]   ;;  %6290 = vmatpush1.bf16.msra.mxu0 %v6289_v12 }
 0x243   : > { %5141 = vmatprep.mubr.bf16.mxu1 %v2222_v22  ;;  %5151 = vmatpush1.bf16.msra.mxu1 %v7208_v0  ;;  %v5314_v0 = vld [vmem:[%s9124_s4 + $0x28] sm:$0xff] }
 0x244   : > { %5152 = vmatprep.subr.bf16.mxu1 %v7213_v54  ;;  %v7277_v54 = vld [vmem:[%s9122_s2 + $0xb70] ss:$8 sps:$4 sm:$0xff]   ;;  %v7282_v22 = vld [vmem:[%s9122_s2 + $0xb84] ss:$8 sps:$4 sm:$0xff]   ;;  %6291 = vmatprep.subr.bf16.mxu0 %v7316_v58 }
 0x247   : > { %5153 = vmatpush1.bf16.msra.mxu1 %v7211_v49  ;;  %v6292_v49 = vpack.c.bf16 %v5314_v0, %v5313_v14  ;;  %v2628_v0 = vld [vmem:[%s9123_s3] sm:$0x3] }
 0x248   : > { %5154 = vmatprep.subr.bf16.mxu1 %v7216_v7  ;;  %v5316_v7 = vld [vmem:[%s9124_s4 + $0x38] sm:$0xff] }
 0x249   : > { %6293 = vmatpush1.bf16.msra.mxu0 %v6292_v49 }
 0x24a   : > { %5142 = vmatmul.mubr.bf16.gmra.mrb[52].mxu1 %v2221_v39  ;;  %v7285_v39 = vld [vmem:[%s9122_s2 + $0xb94] ss:$8 sps:$4 sm:$0xff]   ;;  %6294 = vmatprep.subr.bf16.mxu0 %v7316_v58 }
 0x24b   : > { %5155 = vmatpush1.bf16.msra.mxu1 %v7214_v33  ;;  %5182 = vmatprep.mubr.bf16.mxu1 %v8301_v8  ;;  %v7223_v8 = vld [vmem:[%s9122_s2 + $0xa50] ss:$8 sps:$4 sm:$0xff]   ;;  %v7280_v33 = vld [vmem:[%s9122_s2 + $0xb80] ss:$8 sps:$4 sm:$0xff]  }
 0x24c   : > { %5156 = vmatprep.subr.bf16.mxu1 %v7219_v17  ;;  %v6295_v17 = vpack.c.bf16 %v5316_v7, %v5315_v15 }
 0x24e   : > { %6296 = vmatpush1.bf16.msra.mxu0 %v6295_v17 }
 0x24f   : > { %5157 = vmatpush1.bf16.msra.mxu1 %v7217_v23  ;;  %v5317_v23 = vld [vmem:[%s9124_s4 + $0x40] sm:$0xff]  ;;  %6297 = vmatprep.subr.bf16.mxu0 %v7316_v58 }
 0x250   : > { %5158 = vmatprep.subr.bf16.mxu1 %v7222_v16  ;;  %v5318_v16 = vld [vmem:[%s9124_s4 + $0x48] sm:$0xff] }
 0x253   : > { %5159 = vmatpush1.bf16.msra.mxu1 %v7220_v18  ;;  %v7283_v18 = vld [vmem:[%s9122_s2 + $0xb90] ss:$8 sps:$4 sm:$0xff]  }
 0x254   : > { %5160 = vmatprep.subr.bf16.mxu1 %v7225_v24  ;;  %v7288_v24 = vld [vmem:[%s9122_s2 + $0xba4] ss:$8 sps:$4 sm:$0xff]  }
 0x257   : > { %5161 = vmatpush1.bf16.msra.mxu1 %v7223_v8  ;;  %v6298_v8 = vpack.c.bf16 %v5318_v16, %v5317_v23 }
 0x258   : > { %5162 = vmatprep.subr.bf16.mxu1 %v7228_v30  ;;  %v5319_v30 = vld [vmem:[%s9124_s4 + $0x50] sm:$0xff] }
 0x259   : > { %6299 = vmatpush1.bf16.msra.mxu0 %v6298_v8 }
 0x25a   : > { %6300 = vmatprep.subr.bf16.mxu0 %v7316_v58 }
 0x25b   : > { %5163 = vmatpush1.bf16.msra.mxu1 %v7226_v29  ;;  %v5320_v29 = vld [vmem:[%s9124_s4 + $0x58] sm:$0xff] }
 0x25c   : > { %5164 = vmatprep.subr.bf16.mxu1 %v7231_v40  ;;  %v7286_v40 = vld [vmem:[%s9122_s2 + $0xba0] ss:$8 sps:$4 sm:$0xff]  }
 0x25f   : > { %5165 = vmatpush1.bf16.msra.mxu1 %v7229_v13  ;;  %v7291_v13 = vld [vmem:[%s9122_s2 + $0xbb4] ss:$8 sps:$4 sm:$0xff]  }
 0x260   : > { %5166 = vmatprep.subr.bf16.mxu1 %v7234_v20  ;;  %v6301_v20 = vpack.c.bf16 %v5320_v29, %v5319_v30 }
 0x262   : > { %6302 = vmatpush1.bf16.msra.mxu0 %v6301_v20 }
 0x263   : > { %5167 = vmatpush1.bf16.msra.mxu1 %v7232_v35  ;;  %v5321_v35 = vld [vmem:[%s9124_s4 + $0x60] sm:$0xff]  ;;  %6303 = vmatprep.subr.bf16.mxu0 %v7316_v58 }
 0x264   : > { %5168 = vmatprep.subr.bf16.mxu1 %v7237_v42  ;;  %v5322_v42 = vld [vmem:[%s9124_s4 + $0x68] sm:$0xff] }
 0x267   : > { %5169 = vmatpush1.bf16.msra.mxu1 %v7235_v28  ;;  %v7289_v28 = vld [vmem:[%s9122_s2 + $0xbb0] ss:$8 sps:$4 sm:$0xff]  }
 0x268   : > { %5170 = vmatprep.subr.bf16.mxu1 %v7240_v48  ;;  %v7294_v48 = vld [vmem:[%s9122_s2 + $0xbc4] ss:$8 sps:$4 sm:$0xff]  }
 0x26b   : > { %5171 = vmatpush1.bf16.msra.mxu1 %v7238_v5  ;;  %v6304_v5 = vpack.c.bf16 %v5322_v42, %v5321_v35 }
 0x26c   : > { %5172 = vmatprep.subr.bf16.mxu1 %v7243_v51  ;;  %v5323_v51 = vld [vmem:[%s9124_s4 + $0x70] sm:$0xff] }
 0x26d   : > { %6305 = vmatpush1.bf16.msra.mxu0 %v6304_v5 }
 0x26e   : > { %6306 = vmatprep.subr.bf16.mxu0 %v7316_v58 }
 0x26f   : > { %5173 = vmatpush1.bf16.msra.mxu1 %v7241_v52  ;;  %v5324_v52 = vld [vmem:[%s9124_s4 + $0x78] sm:$0xff] }
 0x270   : > { %5174 = vmatprep.subr.bf16.mxu1 %v7246_v10  ;;  %v7292_v10 = vld [vmem:[%s9122_s2 + $0xbc0] ss:$8 sps:$4 sm:$0xff]  }
 0x273   : > { %5175 = vmatpush1.bf16.msra.mxu1 %v7244_v45  ;;  %v7297_v45 = vld [vmem:[%s9122_s2 + $0xbd4] ss:$8 sps:$4 sm:$0xff]  }
 0x274   : > { %5176 = vmatprep.subr.bf16.mxu1 %v7249_v21  ;;  %v6307_v21 = vpack.c.bf16 %v5324_v52, %v5323_v51 }
 0x276   : > { %6308 = vmatpush1.bf16.msra.mxu0 %v6307_v21 }
 0x277   : > { %5177 = vmatpush1.bf16.msra.mxu1 %v7247_v56  ;;  %v7295_v56 = vld [vmem:[%s9122_s2 + $0xbd0] ss:$8 sps:$4 sm:$0xff]   ;;  %6309 = vmatprep.subr.bf16.mxu0 %v7316_v58 }
 0x278   : > { %5178 = vmatprep.subr.bf16.mxu1 %v7252_v50  ;;  %v7300_v50 = vld [vmem:[%s9122_s2 + $0xbe4] ss:$8 sps:$4 sm:$0xff]  }
 0x27b   : > { %5179 = vmatpush1.bf16.msra.mxu1 %v7250_v57  ;;  %v7298_v57 = vld [vmem:[%s9122_s2 + $0xbe0] ss:$8 sps:$4 sm:$0xff]  }
 0x27c   : > { %5180 = vmatprep.subr.bf16.mxu1 %v7255_v38  ;;  %v7303_v38 = vld [vmem:[%s9122_s2 + $0xbf4] ss:$8 sps:$4 sm:$0xff]  }
 0x27f   : > { %5181 = vmatpush1.bf16.msra.mxu1 %v7253_v60  ;;  %v7301_v60 = vld [vmem:[%s9122_s2 + $0xbf0] ss:$8 sps:$4 sm:$0xff]  }
 0x280   : > { %5201 = vmatprep.subr.bf16.mxu1 %v7258_v11  ;;  %v2176_v11 = vmax.f32 %v8281_v55, 0.0 }
 0x282   : > { %5183 = vmatmul.mubr.bf16.vlgmr.msra.gmra.mrb[48].mxu1 %v8299_v6  ;;  %v7267_v6 = vld [vmem:[%s9122_s2 + $0xb34] ss:$8 sps:$4 sm:$0xff]   ;;  %v2226_v31 = vpack.c.bf16 %v2176_v11, %v2176_v11 }
 0x283   : > { %5192 = vmatprep.mubr.bf16.mxu1 %v2224_v27  ;;  %5202 = vmatpush1.bf16.msra.mxu1 %v7256_v61  ;;  %v2175_v61 = vmax.f32 %v8273_v53, 0.0  ;;  %v5325_v53 = vld [vmem:[%s9124_s4 + $0x80] sm:$0xff] }
 0x284   : > { %5203 = vmatprep.subr.bf16.mxu1 %v7261_v62  ;;  %v6310_v44 = vpack.c.bf16 %v5326_v47, %v5325_v53 }
 0x285   : > { %v2225_v62 = vpack.c.bf16 %v2175_v61, %v2175_v61 }
 0x286   : > { %6311 = vmatpush1.bf16.msra.mxu0 %v6310_v44 }
 0x287   : > { %5204 = vmatpush1.bf16.msra.mxu1 %v7259_v63  ;;  %6312 = vmatprep.subr.bf16.mxu0 %v7316_v58 }
 0x288   : > { %5205 = vmatprep.subr.bf16.mxu1 %v7264_v59 }
 0x28a   : > { %5193 = vmatmul.mubr.bf16.gmra.mrb[52].mxu1 %v2223_v26 }
 0x28b   : > { %5206 = vmatpush1.bf16.msra.mxu1 %v7262_v37  ;;  %5233 = vmatprep.mubr.bf16.mxu1 %v8267_v34  ;;  %v7271_v34 = vld [vmem:[%s9122_s2 + $0xb50] ss:$8 sps:$4 sm:$0xff]  }
 0x28c   : > { %5207 = vmatprep.subr.bf16.mxu1 %v7267_v6 }
 0x28f   : > { %5208 = vmatpush1.bf16.msra.mxu1 %v7265_v36 }
 0x290   : > { %5209 = vmatprep.subr.bf16.mxu1 %v7270_v2 }
 0x293   : > { %5210 = vmatpush1.bf16.msra.mxu1 %v7268_v3 }
 0x294   : > { %5211 = vmatprep.subr.bf16.mxu1 %v7273_v19 }
 0x297   : > { %5212 = vmatpush1.bf16.msra.mxu1 %v7271_v34 }
 0x298   : > { %5213 = vmatprep.subr.bf16.mxu1 %v7276_v4 }
 0x29b   : > { %5214 = vmatpush1.bf16.msra.mxu1 %v7274_v43  ;;  %v6313_v43 = vpack.c.bf16 %v5328_v9, %v5327_v25 }
 0x29c   : > { %5215 = vmatprep.subr.bf16.mxu1 %v7279_v1  ;;  %v2630_v1 = vlaneseq }
 0x29d   : > { %6314 = vmatpush1.bf16.msra.mxu0 %v6313_v43 }
 0x29e   : > { %6315 = vmatprep.subr.bf16.mxu0 %v7316_v58  ;;  %v2631_v12 = vshrl.u32 %v2630_v1, 7 }
 0x29f   : > { %5216 = vmatpush1.bf16.msra.mxu1 %v7277_v54 }
 0x2a0   : > { %5217 = vmatprep.subr.bf16.mxu1 %v7282_v22  ;;  %v2632_v14 = vsub.s32 0, %v2631_v12  ;;  %v2636_v54 = vsub.s32 1, %v2631_v12 }
 0x2a2   : > { %v2633_v22 = vrot.slane %v2628_v0, %v2632_v14  ;;  %v2637_v49 = vrot.slane %v2628_v0, %v2636_v54  ;;  %v6210_v54 = vld [vmem:[%s9127_s7] ss:$0 sm:$0xff] }
 0x2a3   : > { %5218 = vmatpush1.bf16.msra.mxu1 %v7280_v33 }
 0x2a4   : > { %5219 = vmatprep.subr.bf16.mxu1 %v7285_v39 }
 0x2a7   : > { %5220 = vmatpush1.bf16.msra.mxu1 %v7283_v18 }
 0x2a8   : > { %5221 = vmatprep.subr.bf16.mxu1 %v7288_v24 }
 0x2ab   : > { %5222 = vmatpush1.bf16.msra.mxu1 %v7286_v40  ;;  %v5429_v40 = vld [vmem:[%s9126_s6] sm:$0xff] }
 0x2ac   : > { %5223 = vmatprep.subr.bf16.mxu1 %v7291_v13  ;;  %v5430_v13 = vld [vmem:[%s9126_s6 + $0x8] sm:$0xff] }
 0x2ad   : > { %v6316_v5 = vpack.c.bf16 %v5430_v13, %v5429_v40 }
 0x2af   : > { %5224 = vmatpush1.bf16.msra.mxu1 %v7289_v28 }
 0x2b0   : > { %5225 = vmatprep.subr.bf16.mxu1 %v7294_v48 }
 0x2b3   : > { %5226 = vmatpush1.bf16.msra.mxu1 %v7292_v10  ;;  %v5431_v10 = vld [vmem:[%s9126_s6 + $0x10] sm:$0xff] }
 0x2b4   : > { %5227 = vmatprep.subr.bf16.mxu1 %v7297_v45  ;;  %v5432_v45 = vld [vmem:[%s9126_s6 + $0x18] sm:$0xff] }
 0x2b7   : > { %5228 = vmatpush1.bf16.msra.mxu1 %v7295_v56 }
 0x2b8   : > { %5229 = vmatprep.subr.bf16.mxu1 %v7300_v50 }
 0x2bb   : > { %5230 = vmatpush1.bf16.msra.mxu1 %v7298_v57 }
 0x2bc   : > { %5231 = vmatprep.subr.bf16.mxu1 %v7303_v38 }
 0x2bf   : > { %5232 = vmatpush1.bf16.msra.mxu1 %v7301_v60 }
 0x2c2   : > { %5234 = vmatmul.mubr.bf16.vlgmr.msra.gmra.mrb[48].mxu1 %v8259_v46 }
 0x2c3   : > { %5243 = vmatprep.mubr.bf16.mxu1 %v2226_v31  ;;  %v6319_v31 = vpack.c.bf16 %v5432_v45, %v5431_v10 }
 0x2ca   : > { %5244 = vmatmul.mubr.bf16.gmra.mrb[52].mxu1 %v2225_v62 }
 0x2ea   : > { %v4878_v27 = vpop.f32.mrb[52].mxu0 }
 0x2eb   : > { %v4880_v63 = vpop.f32.mrb[53].mxu0  ;;  %v6330_v15 = vadd.f32 %v4878_v27, %v2633_v22 }
 0x2ec   : > { %v4882_v41 = vpop.f32.mrb[54].mxu0  ;;  %v6333_v7 = vadd.f32 %v4880_v63, %v2637_v49  ;;  %v5433_v63 = vld [vmem:[%s9126_s6 + $0x20] sm:$0xff] }
 0x2ed   : > { %v4884_v59 = vpop.f32.mrb[55].mxu0  ;;  %v6336_v39 = vadd.f32 %v4882_v41, %v2633_v22  ;;  %v5434_v41 = vld [vmem:[%s9126_s6 + $0x28] sm:$0xff] }
 0x2ee   : > { %v6339_v16 = vadd.f32 %v4884_v59, %v2637_v49 }
 0x2f2   : > { %v4888_v37 = vpop.f32.mrb[56].mxu0 }
 0x2f3   : > { %v4890_v26 = vpop.f32.mrb[57].mxu0  ;;  %v6342_v51 = vadd.f32 %v4888_v37, %v2633_v22 }
 0x2f4   : > { %v4892_v6 = vpop.f32.mrb[58].mxu0  ;;  %v6345_v21 = vadd.f32 %v4890_v26, %v2637_v49  ;;  %v6322_v26 = vpack.c.bf16 %v5434_v41, %v5433_v63 }
 0x2f5   : > { %v4893_v36 = vpop.f32.mrb[59].mxu0 }
 0x2f6   : > { %v5435_v36 = vld [vmem:[%s9126_s6 + $0x30] sm:$0xff] }
 0x30a   : > { %v5286_v2 = vpop.f32.mrb[60].mxu0 }
 0x30b   : > { %v5288_v3 = vpop.f32.mrb[61].mxu0 }
 0x30c   : > { %v5290_v55 = vpop.f32.mrb[62].mxu0 }
 0x30d   : > { %v5292_v19 = vpop.f32.mrb[63].mxu0 }
 0x312   : > { %v5296_v34 = vpop.f32.mrb[64].mxu0 }
 0x313   : > { %v9047_v4 = vpop.f32.mrb[65].mxu0 }
 0x314   : > { %v5300_v46 = vpop.f32.mrb[66].mxu0 }
 0x315   : > { %v5301_v32 = vpop.f32.mrb[67].mxu0  ;;  %v6206_v46 = vld [vmem:[%s9125_s5] ss:$0 sm:$0xff] }
 0x395   : > { %v5235_v33 = vpop.f32.mrb[48].mxu1 }
 0x396   : > { %v6331_v17 = vadd.f32 %v6330_v15, %v5235_v33  ;;  %v5237_v23 = vpop.f32.mrb[49].mxu1 }
 0x397   : > { %v6334_v18 = vadd.f32 %v6333_v7, %v5237_v23  ;;  %v5239_v24 = vpop.f32.mrb[50].mxu1 }
 0x398   : > { %v6332_v8 = vadd.f32 %v6331_v17, %v5286_v2  ;;  %v6337_v30 = vadd.f32 %v6336_v39, %v5239_v24  ;;  %v5241_v29 = vpop.f32.mrb[51].mxu1  ;;  %v5436_v2 = vld [vmem:[%s9126_s6 + $0x38] sm:$0xff] }
 0x399   : > { %v6335_v20 = vadd.f32 %v6334_v18, %v5288_v3  ;;  %v6340_v35 = vadd.f32 %v6339_v16, %v5241_v29  ;;  %v6325_v3 = vpack.c.bf16 %v5436_v2, %v5435_v36 }
 0x39a   : > { %v6338_v42 = vadd.f32 %v6337_v30, %v5290_v55  ;;  %v5303_v52 = vmax.f32 %v6332_v8, 0.0  ;;  %v5437_v55 = vld [vmem:[%s9126_s6 + $0x40] sm:$0xff] }
 0x39b   : > { %v5304_v28 = vmax.f32 %v6335_v20, 0.0  ;;  %v6341_v48 = vadd.f32 %v6340_v35, %v5292_v19  ;;  %v5438_v19 = vld [vmem:[%s9126_s6 + $0x48] sm:$0xff] }
 0x39c   : > { %v5305_v61 = vmax.f32 %v6338_v42, 0.0 }
 0x39d   : > { %v5306_v56 = vmax.f32 %v6341_v48, 0.0  ;;  %v5245_v50 = vpop.f32.mrb[52].mxu1  ;;  %6207 = vmatprep.mubr.msk.f32.mxu0 %vm5336_vm3, %v5304_v28 }
 0x39e   : > { %v6343_v57 = vadd.f32 %v6342_v51, %v5245_v50  ;;  %v5247_v38 = vpop.f32.mrb[53].mxu1  ;;  %5411 = vmatmul.mubr.f32.vlgmr.msra.gmra.mrb[68].mxu0 %v5303_v52 }
 0x39f   : > { %v6346_v60 = vadd.f32 %v6345_v21, %v5247_v38  ;;  %v5249_v11 = vpop.f32.mrb[54].mxu1  ;;  %6208 = vmatprep.mubr.msk.f32.mxu0 %vm5336_vm3, %v5306_v56  ;;  %6317 = vmatpush3.bf16.msra.mxu0 %v6316_v5 }
 0x3a0   : > { %v6344_v62 = vadd.f32 %v6343_v57, %v5296_v34  ;;  %v5250_v27 = vpop.f32.mrb[55].mxu1  ;;  %6318 = vmatprep.subr.bf16.mxu0 %v7316_v58  ;;  %v6328_v34 = vpack.c.bf16 %v5438_v19, %v5437_v55 }
 0x3a1   : > { %v6347_v59 = vadd.f32 %v6346_v60, %v9047_v4  ;;  %v7318_v4 = vmov 0.0  }
 0x3a2   : > { %5416 = vmatmul.mubr.f32.gmra.mrb[70].mxu0 %v5305_v61  ;;  %v5307_v6 = vmax.f32 %v6344_v62, 0.0 }
 0x3a3   : > { %v5308_v37 = vmax.f32 %v6347_v59, 0.0  ;;  %6320 = vmatpush3.bf16.msra.mxu0 %v6319_v31 }
 0x3a4   : > { %6321 = vmatprep.subr.bf16.mxu0 %v7316_v58 }
 0x3a5   : > { %6209 = vmatprep.mubr.msk.f32.mxu0 %vm5336_vm3, %v5308_v37 }
 0x3a6   : > { %5421 = vmatmul.mubr.f32.gmra.mrb[72].mxu0 %v5307_v6 }
 0x3a7   : > { %6323 = vmatpush3.bf16.msra.mxu0 %v6322_v26  ;;  %6276 = vmatprep.mubr.msk.f32.mxu0 %vm7317_vm4, %v7318_v4 }
 0x3a8   : > { %6324 = vmatprep.subr.bf16.mxu0 %v7316_v58 }
 0x3ab   : > { %6326 = vmatpush3.bf16.msra.mxu0 %v6325_v3 }
 0x3ac   : > { %6327 = vmatprep.subr.bf16.mxu0 %v7316_v58 }
 0x3af   : > { %6329 = vmatpush3.bf16.msra.mxu0 %v6328_v34 }
 0x471   : > { %v5412_v53 = vpop.f32.mrb[68].mxu0 }
 0x472   : > { %v5413_v58 = vadd.f32 %v6206_v46, %v5412_v53  ;;  %v5414_v47 = vpop.f32.mrb[69].mxu0 }
 0x474   : > { %v5426_v32 = vmax.f32 %v5413_v58, 0.0 }
 0x475   : > { %v5417_v44 = vpop.f32.mrb[70].mxu0 }
 0x476   : > { %v5418_v25 = vadd.f32 %v6206_v46, %v5417_v44  ;;  %v5419_v9 = vpop.f32.mrb[71].mxu0  ;;  %6277 = vmatmul.mubr.msk.f32.vlgmr.msra.gmra.mrb[74].mxu0 %vm5446_vm5, %v5426_v32 }
 0x477   : > { %6279 = vmatprep.mubr.msk.f32.mxu0 %vm7317_vm4, %v7318_v4 }
 0x478   : > { %v5427_v43 = vmax.f32 %v5418_v25, 0.0 }
 0x479   : > { %v5422_v1 = vpop.f32.mrb[72].mxu0 }
 0x47a   : > { %v5423_v12 = vadd.f32 %v6206_v46, %v5422_v1  ;;  %v5424_v14 = vpop.f32.mrb[73].mxu0  ;;  %6280 = vmatmul.mubr.msk.f32.gmra.mrb[76].mxu0 %vm5446_vm5, %v5427_v43 }
 0x47b   : > { %6282 = vmatprep.mubr.msk.f32.mxu0 %vm7317_vm4, %v7318_v4 }
 0x47c   : > { %v5428_v0 = vmax.f32 %v5423_v12, 0.0 }
 0x47e   : > { %6283 = vmatmul.mubr.msk.f32.gmra.mrb[78].mxu0 %vm5446_vm5, %v5428_v0 }
 0x549   : > { %v5522_v22 = vpop.f32.mrb[74].mxu0 }
 0x54a   : > { %v5523_v49 = vadd.f32 %v6210_v54, %v5522_v22  ;;  %v6278_v15 = vpop.f32.mrb[75].mxu0 }
 0x54c   : > { %5537 = vst.msk [vmem:[%s305_s30] sm:$0xff] %vm5536_vm6, %v5523_v49 }
 0x54d   : > { %v5527_v7 = vpop.f32.mrb[76].mxu0 }
 0x54e   : > { %v5528_v33 = vadd.f32 %v6210_v54, %v5527_v7  ;;  %v6281_v39 = vpop.f32.mrb[77].mxu0 }
 0x550   : > { %5538 = vst.msk [vmem:[%s305_s30 + $0x8] sm:$0xff] %vm5536_vm6, %v5528_v33 }
 0x551   : > { %v5532_v17 = vpop.f32.mrb[78].mxu0 }
 0x552   : > { %v5533_v23 = vadd.f32 %v6210_v54, %v5532_v17  ;;  %v6284_v16 = vpop.f32.mrb[79].mxu0 }
 0x554   : > { %5540 = vst.msk [vmem:[%s305_s30 + $0x10] sm:$0xf] %vm5539_vm7, %v5533_v23 }
 0x555 PF: > { %s18_s27 = sadd.s32 1, %s7312_s27  }
 0x556   : > { %p15_p4 = scmp.ge.s32.totalorder %s18_s27, 4  }
 0x558   :  { %17 = sbr.rel (!%p15_p4) target bundleno = 1 (0x1), region = 82 }

</bundles_post_ra>
